<compile_context>
chip_gen: v7x
topology: tpu7x:2x2x1
jax: 0.10.0
libtpu: 0.0.40
codegen_flags: <defaults>
</compile_context>

<pallas_src>
import jax
import jax.numpy as jnp
from jax import lax
from jax.experimental import pallas as pl
from jax.experimental.pallas import tpu as pltpu

_NEG = -1e30  # large-negative mask value (safer than -inf w.r.t. NaN)


def _round_up(x, m):
    return ((x + m - 1) // m) * m


def decoder_attn_kernel(
    emb_ref,        # (T, Bb, H)      bf16  time-major embedded decoder inputs
    h0_ref,         # (Bb, H)         f32   initial hidden state
    enc_ref,        # (Bb, S_pad, H)  bf16  encoder outputs (zero-padded along S)
    smask_ref,      # (1, S_pad)      f32   additive attention mask (0 / -1e30)
    w_i_ref,        # (H, 3H)         bf16  fused transposed GRU input weights [r|z|n]
    b_i_ref,        # (1, 3H)         f32
    w_h_ref,        # (H, 3H)         bf16  fused transposed GRU hidden weights [r|z|n]
    b_h_ref,        # (1, 3H)         f32
    w_att_ref,      # (H, H)          bf16  transposed att_mlp weight
    w_mlp_out_ref,  # (H, O_pad)      bf16  mlp columns acting on GRU out
    w_mlp_ctx_ref,  # (H, O_pad)      bf16  mlp columns acting on ctx
    b_mlp_ref,      # (1, O_pad)      f32   padded entries = -1e30
    out_ref,        # (Bb, T, O_pad)  f32   log-softmax output
    h_out_ref,      # (Bb, H)         f32   final hidden state
    attn_ref,       # (Bb, T, S_pad)  f32   attention weights
    gi_scratch,     # VMEM (T, Bb, 3H) f32  precomputed input gates (time-major)
    gru_scratch,    # VMEM (T, Bb, H)  bf16 GRU outputs (time-major)
):
    T, Bb, H = emb_ref.shape

    # ---- input gates for ALL timesteps: one big bf16 MXU matmul, f32 accumulate ----
    gi = jnp.dot(emb_ref[...].reshape(T * Bb, H), w_i_ref[...],
                 preferred_element_type=jnp.float32) + b_i_ref[...]
    gi_scratch[...] = gi.reshape(T, Bb, 3 * H)

    # ---- GRU recurrence (time-major): h carried in registers, 1 matmul/step ----
    w_h = w_h_ref[...]                              # bf16 (H, 3H)
    b_h = b_h_ref[...]                              # f32
    h = h0_ref[...]                                 # f32 carry
    for t in range(T):                              # static unroll (T small & fixed)
        gi_t = gi_scratch[t]                        # (Bb, 3H) contiguous leading-axis read
        gh = jnp.dot(h.astype(jnp.bfloat16), w_h,
                     preferred_element_type=jnp.float32) + b_h
        r = jax.nn.sigmoid(gi_t[:, :H] + gh[:, :H])
        z = jax.nn.sigmoid(gi_t[:, H:2 * H] + gh[:, H:2 * H])
        n = jnp.tanh(gi_t[:, 2 * H:] + r * gh[:, 2 * H:])
        h = (1.0 - z) * n + z * h                   # f32 blend / carry
        gru_scratch[t] = h.astype(jnp.bfloat16)     # leading-axis store, off crit path
    h_out_ref[...] = h

    # One bulk transpose back to batch-major (off the sequential critical path);
    # everything downstream (attention, MLP, outputs) is batch-major.
    gru_out = jnp.swapaxes(gru_scratch[...], 0, 1)  # (Bb, T, H) bf16
    enc = enc_ref[...]                              # (Bb, S_pad, H) bf16

    # ---- attention: softmax((out @ W_att^T) @ enc^T) @ enc (no in-kernel enc.T) ----
    out_proj = jnp.dot(gru_out.reshape(Bb * T, H), w_att_ref[...],
                       preferred_element_type=jnp.float32).reshape(Bb, T, H)
    e = jnp.einsum('bth,bsh->bts', out_proj.astype(jnp.bfloat16), enc,
                   preferred_element_type=jnp.float32)       # (Bb, T, S_pad)
    e = e + smask_ref[...]            # additive S-padding mask (broadcast add)
    e_max = jnp.max(e, axis=-1, keepdims=True)
    p = jnp.exp(e - e_max)
    denom = jnp.sum(p, axis=-1, keepdims=True)
    # approx=True -> EUP vrcp (free slot); use approx=False for bit-faithful attn.
    attn = p * pl.reciprocal(denom, approx=True)
    ctx = jnp.einsum('bts,bsh->bth', attn.astype(jnp.bfloat16), enc,
                     preferred_element_type=jnp.float32)     # (Bb, T, H) f32

    # ---- output MLP (concat folded into split weight matmuls) + log-softmax ----
    logits = (jnp.dot(gru_out.reshape(Bb * T, H), w_mlp_out_ref[...],
                      preferred_element_type=jnp.float32)
              + jnp.dot(ctx.astype(jnp.bfloat16).reshape(Bb * T, H),
                        w_mlp_ctx_ref[...],
                        preferred_element_type=jnp.float32)
              + b_mlp_ref[...])                              # (Bb*T, O_pad)
    logits = logits.reshape(Bb, T, -1)
    l_max = jnp.max(logits, axis=-1, keepdims=True)
    shifted = logits - l_max
    logz = jnp.log(jnp.sum(jnp.exp(shifted), axis=-1, keepdims=True))

    out_ref[...] = shifted - logz
    attn_ref[...] = attn


def _pick_block_b(B, T, S_pad, H, O_pad, max_block_b=128):
    """Largest VMEM-fitting batch block (multiple of 8, <= max_block_b).

    Keeps the grid at >= 2 steps whenever B allows it so that on v7x the
    "parallel" batch axis can be sharded across both TensorCores.  VMEM is
    budgeted from the actual chip capacity (64 MiB on v7x, 128 MiB v5e/v6e).
    """
    try:
        info = pltpu.get_tpu_info()
        phys_vmem = int(getattr(info, "vmem_capacity_bytes", 0)) or 128 * 1024 * 1024
    except Exception:
        phys_vmem = 128 * 1024 * 1024
    budget = int(phys_vmem * 0.70)                       # headroom for Mosaic internals
    vmem_limit = min(int(phys_vmem * 0.85), 100 * 1024 * 1024)

    # grid-invariant weights (single-buffered, bf16) + biases/mask (f32)
    w_bytes = ((2 * H * 3 * H + H * H + 2 * H * O_pad) * 2
               + (2 * 3 * H + O_pad + S_pad) * 4)
    # per-batch-row bytes: double-buffered pipeline blocks + time-major scratch
    per_row = (2 * (T * H * 2          # emb (bf16)
                    + H * 4            # h0 (f32)
                    + S_pad * H * 2    # enc (bf16)
                    + T * O_pad * 4    # out (f32)
                    + H * 4            # h_out (f32)
                    + T * S_pad * 4)   # attn (f32)
               + T * 3 * H * 4         # gi scratch (f32)
               + T * H * 2)            # gru scratch (bf16)
    cap = max(8, ((budget - w_bytes) // per_row) // 8 * 8)

    if B <= 8:
        return B, vmem_limit                              # single full-batch block
    two_step = max(8, _round_up(-(-B // 2), 8))           # keep >= 2 grid steps
    return min(max_block_b, cap, two_step), vmem_limit


def decoder_attn_forward(params, input_ids, hidden, encoder_outs, *, max_block_b=128):
    """input_ids: (B, T) int32; hidden: (1, B, H); encoder_outs: (B, S, H)."""
    B, T = input_ids.shape
    S = encoder_outs.shape[1]
    H = params["emb"].shape[1]
    O = params["b_mlp"].shape[-1]

    S_pad = _round_up(S, 128)            # lane-dense attention output
    O_pad = _round_up(O, 128)            # lane-dense logits output
    Bb, vmem_limit = _pick_block_b(B, T, S_pad, H, O_pad, max_block_b=max_block_b)
    B_pad = _round_up(B, Bb)

    bf16 = jnp.bfloat16

    # glue: embedding gather (emb_drop / gru_drop are identity in eval mode)
    emb = jnp.take(params["emb"], input_ids, axis=0).astype(bf16)     # (B, T, H)
    emb = jnp.transpose(emb, (1, 0, 2))                               # (T, B, H) time-major
    h0 = hidden[0].astype(jnp.float32)                                # (B, H)
    enc = encoder_outs.astype(bf16)                                   # (B, S, H)

    if B_pad != B:
        emb = jnp.pad(emb, ((0, 0), (0, B_pad - B), (0, 0)))
        h0 = jnp.pad(h0, ((0, B_pad - B), (0, 0)))
        enc = jnp.pad(enc, ((0, B_pad - B), (0, 0), (0, 0)))
    if S_pad != S:
        enc = jnp.pad(enc, ((0, 0), (0, S_pad - S), (0, 0)))

    # additive mask for padded encoder positions (replaces in-kernel iota+where)
    smask = jnp.where(jnp.arange(S_pad) < S, 0.0, _NEG).astype(jnp.float32)
    smask = smask.reshape(1, S_pad)

    # glue: fuse & pre-transpose weights so the kernel does `x @ W` (bf16 on MXU)
    w_i = params["w_ih"].T.astype(bf16)               # (H, 3H), gate order [r|z|n]
    w_h = params["w_hh"].T.astype(bf16)               # (H, 3H)
    b_i = params["b_ih"].reshape(1, 3 * H).astype(jnp.float32)
    b_h = params["b_hh"].reshape(1, 3 * H).astype(jnp.float32)
    w_att = params["w_att"].T.astype(bf16)            # (H, H)
    w_mlpT = params["w_mlp"].T.astype(bf16)           # (2H, O)
    w_mlp_out, w_mlp_ctx = w_mlpT[:H], w_mlpT[H:]     # (H, O) each
    b_mlp = params["b_mlp"].reshape(1, O).astype(jnp.float32)
    if O_pad != O:
        w_mlp_out = jnp.pad(w_mlp_out, ((0, 0), (0, O_pad - O)))
        w_mlp_ctx = jnp.pad(w_mlp_ctx, ((0, 0), (0, O_pad - O)))
        b_mlp = jnp.pad(b_mlp, ((0, 0), (0, O_pad - O)), constant_values=_NEG)

    grid = (B_pad // Bb,)
    out_shapes = (
        jax.ShapeDtypeStruct((B_pad, T, O_pad), jnp.float32),
        jax.ShapeDtypeStruct((B_pad, H), jnp.float32),
        jax.ShapeDtypeStruct((B_pad, T, S_pad), jnp.float32),
    )
    out_specs = (
        pl.BlockSpec((Bb, T, O_pad), lambda b: (b, 0, 0)),
        pl.BlockSpec((Bb, H), lambda b: (b, 0)),
        pl.BlockSpec((Bb, T, S_pad), lambda b: (b, 0, 0)),
    )
    scratch_shapes = [pltpu.VMEM((T, Bb, 3 * H), jnp.float32),
                      pltpu.VMEM((T, Bb, H), bf16)]

    def build(single_buffer_weights):
        def wspec(shape):                 # grid-invariant 2D weight block
            if single_buffer_weights:
                # never re-fetched -> single-buffer to reclaim VMEM for bigger Bb
                return pl.BlockSpec(shape, lambda b: (0, 0),
                                    pipeline_mode=pl.Buffered(1))
            return pl.BlockSpec(shape, lambda b: (0, 0))

        in_specs = [
            pl.BlockSpec((T, Bb, H), lambda b: (0, b, 0)),       # emb (time-major)
            pl.BlockSpec((Bb, H), lambda b: (b, 0)),             # h0
            pl.BlockSpec((Bb, S_pad, H), lambda b: (b, 0, 0)),   # encoder outputs
            wspec((1, S_pad)),                                   # additive S mask
            wspec((H, 3 * H)), wspec((1, 3 * H)),                # fused input gates
            wspec((H, 3 * H)), wspec((1, 3 * H)),                # fused hidden gates
            wspec((H, H)),                                       # att_mlp
            wspec((H, O_pad)), wspec((H, O_pad)), wspec((1, O_pad)),  # output mlp
        ]
        return pl.pallas_call(
            decoder_attn_kernel,
            out_shape=out_shapes,
            grid=grid,
            in_specs=in_specs,
            out_specs=out_specs,
            scratch_shapes=scratch_shapes,
            compiler_params=pltpu.CompilerParams(
                dimension_semantics=("parallel",),
                vmem_limit_bytes=vmem_limit),
        )

    args = (emb, h0, enc, smask, w_i, b_i, w_h, b_h,
            w_att, w_mlp_out, w_mlp_ctx, b_mlp)
    try:
        out_log, h_final, attn = jax.block_until_ready(build(True)(*args))
    except Exception:
        # pl.Buffered(1) single-buffering not supported by this jax/libtpu:
        # fall back to default double-buffered weight blocks.
        out_log, h_final, attn = build(False)(*args)

    # slice off batch / lane padding
    out_log = out_log[:B, :, :O]
    h_final = h_final[:B]
    attn = attn[:B, :, :S]
    return out_log, h_final[None], attn


def decoder_attn_reference(params, input_ids, hidden, encoder_outs):
    """Pure-JAX f32 reference matching PyTorch eval-mode semantics."""
    emb = jnp.take(params["emb"], input_ids, axis=0)
    w_ih, w_hh, b_ih, b_hh = params["w_ih"], params["w_hh"], params["b_ih"], params["b_hh"]

    def cell(h, x):
        gi = x @ w_ih.T + b_ih
        gh = h @ w_hh.T + b_hh
        i_r, i_z, i_n = jnp.split(gi, 3, axis=-1)
        h_r, h_z, h_n = jnp.split(gh, 3, axis=-1)
        r = jax.nn.sigmoid(i_r + h_r)
        z = jax.nn.sigmoid(i_z + h_z)
        n = jnp.tanh(i_n + r * h_n)
        h_new = (1.0 - z) * n + z * h
        return h_new, h_new

    h_final, outs = lax.scan(cell, hidden[0], jnp.swapaxes(emb, 0, 1))
    out = jnp.swapaxes(outs, 0, 1)                     # (B, T, H)
    out_proj = out @ params["w_att"].T
    e = jnp.einsum('bth,bsh->bts', out_proj, encoder_outs)
    attn = jax.nn.softmax(e, axis=2)
    ctx = jnp.einsum('bts,bsh->bth', attn, encoder_outs)
    full = jnp.concatenate([out, ctx], axis=2)
    logits = full @ params["w_mlp"].T + params["b_mlp"]
    return jax.nn.log_softmax(logits, axis=2), h_final[None], attn


if __name__ == "__main__":
    B, T, S = 2, 8, 16          # batch, decoder steps, encoder steps
    V, H, O = 20, 32, 16        # input_size (vocab), hidden_size, output_size

    key = jax.random.PRNGKey(0)
    ks = jax.random.split(key, 10)
    u = lambda k, shape: jax.random.uniform(k, shape, jnp.float32, -0.1, 0.1)

    params = {
        "emb":   u(ks[0], (V, H)),
        "w_ih":  u(ks[1], (3 * H, H)),
        "w_hh":  u(ks[2], (3 * H, H)),
        "b_ih":  u(ks[3], (3 * H,)),
        "b_hh":  u(ks[4], (3 * H,)),
        "w_att": u(ks[5], (H, H)),
        "w_mlp": u(ks[6], (O, 2 * H)),
        "b_mlp": u(ks[7], (O,)),
    }

    input_ids = jax.random.randint(ks[8], (B, T), 0, V, dtype=jnp.int32)
    hidden = u(ks[9], (1, B, H))
    encoder_outs = u(jax.random.PRNGKey(1), (B, S, H))

    out_log, h_final, attn = jax.block_until_ready(
        decoder_attn_forward(params, input_ids, hidden, encoder_outs))

    ref_log, ref_h, ref_attn = decoder_attn_reference(
        params, input_ids, hidden, encoder_outs)

    # bf16 weight/activation compression in the kernel -> bf16-level tolerance
    # against the f32 reference.
    assert jnp.allclose(out_log, ref_log, atol=1e-2, rtol=1e-2)
    assert jnp.allclose(h_final, ref_h, atol=1e-2, rtol=1e-2)
    assert jnp.allclose(attn, ref_attn, atol=1e-2, rtol=1e-2)

    print("KERNEL_OK")
</pallas_src>

<mosaic_0001>
module attributes {stable_mosaic.version = 11 : i64} {
  func.func @decoder_attn_kernel(%arg0: i32, %arg1: memref<8x2x32xbf16, #tpu.memory_space<vmem>>, %arg2: memref<2x32xf32, #tpu.memory_space<vmem>>, %arg3: memref<2x128x32xbf16, #tpu.memory_space<vmem>>, %arg4: memref<1x128xf32, #tpu.memory_space<vmem>>, %arg5: memref<32x96xbf16, #tpu.memory_space<vmem>>, %arg6: memref<1x96xf32, #tpu.memory_space<vmem>>, %arg7: memref<32x96xbf16, #tpu.memory_space<vmem>>, %arg8: memref<1x96xf32, #tpu.memory_space<vmem>>, %arg9: memref<32x32xbf16, #tpu.memory_space<vmem>>, %arg10: memref<32x128xbf16, #tpu.memory_space<vmem>>, %arg11: memref<32x128xbf16, #tpu.memory_space<vmem>>, %arg12: memref<1x128xf32, #tpu.memory_space<vmem>>, %arg13: memref<2x8x128xf32, #tpu.memory_space<vmem>>, %arg14: memref<2x32xf32, #tpu.memory_space<vmem>>, %arg15: memref<2x8x128xf32, #tpu.memory_space<vmem>>, %arg16: memref<8x2x96xf32, #tpu.memory_space<vmem>>, %arg17: memref<8x2x32xbf16, #tpu.memory_space<vmem>>) attributes {dimension_semantics = [#tpu.dimension_semantics<parallel>], iteration_bounds = array<i64: 1>, scalar_prefetch = 0 : i64, scratch_operands = 2 : i64, tpu.core_type = #tpu.core_type<tc>, window_params = [{transform_indices = @transform_0, window_bounds = array<i64: 8, 2, 32>}, {transform_indices = @transform_1, window_bounds = array<i64: 2, 32>}, {transform_indices = @transform_2, window_bounds = array<i64: 2, 128, 32>}, {pipeline_mode = #tpu.pipeline_mode<synchronous>, transform_indices = @transform_3, window_bounds = array<i64: 1, 128>}, {pipeline_mode = #tpu.pipeline_mode<synchronous>, transform_indices = @transform_4, window_bounds = array<i64: 32, 96>}, {pipeline_mode = #tpu.pipeline_mode<synchronous>, transform_indices = @transform_5, window_bounds = array<i64: 1, 96>}, {pipeline_mode = #tpu.pipeline_mode<synchronous>, transform_indices = @transform_6, window_bounds = array<i64: 32, 96>}, {pipeline_mode = #tpu.pipeline_mode<synchronous>, transform_indices = @transform_7, window_bounds = array<i64: 1, 96>}, {pipeline_mode = #tpu.pipeline_mode<synchronous>, transform_indices = @transform_8, window_bounds = array<i64: 32, 32>}, {pipeline_mode = #tpu.pipeline_mode<synchronous>, transform_indices = @transform_9, window_bounds = array<i64: 32, 128>}, {pipeline_mode = #tpu.pipeline_mode<synchronous>, transform_indices = @transform_10, window_bounds = array<i64: 32, 128>}, {pipeline_mode = #tpu.pipeline_mode<synchronous>, transform_indices = @transform_11, window_bounds = array<i64: 1, 128>}, {transform_indices = @transform_12, window_bounds = array<i64: 2, 8, 128>}, {transform_indices = @transform_13, window_bounds = array<i64: 2, 32>}, {transform_indices = @transform_14, window_bounds = array<i64: 2, 8, 128>}]} {
    %c0 = arith.constant 0 : index
    %c0_0 = arith.constant 0 : index
    %c0_1 = arith.constant 0 : index
    %0 = vector.load %arg1[%c0, %c0_0, %c0_1] : memref<8x2x32xbf16, #tpu.memory_space<vmem>>, vector<8x2x32xbf16>
    %1 = vector.shape_cast %0 : vector<8x2x32xbf16> to vector<16x32xbf16>
    %c0_2 = arith.constant 0 : index
    %c0_3 = arith.constant 0 : index
    %2 = vector.load %arg5[%c0_2, %c0_3] : memref<32x96xbf16, #tpu.memory_space<vmem>>, vector<32x96xbf16>
    %cst = arith.constant dense<0.000000e+00> : vector<16x96xf32>
    %3 = tpu.matmul %1, %2, %cst {dimension_numbers = #tpu.dot_dimension_numbers<[1], [0], [0], [1], [0, 0, 1, 1], [], []>} : vector<16x32xbf16>, vector<32x96xbf16>, vector<16x96xf32> -> vector<16x96xf32>
    %c0_4 = arith.constant 0 : index
    %c0_5 = arith.constant 0 : index
    %4 = vector.load %arg6[%c0_4, %c0_5] : memref<1x96xf32, #tpu.memory_space<vmem>>, vector<1x96xf32>
    %5 = vector.broadcast %4 : vector<1x96xf32> to vector<16x96xf32>
    %6 = arith.addf %3, %5 : vector<16x96xf32>
    %7 = vector.shape_cast %6 : vector<16x96xf32> to vector<8x2x96xf32>
    %c0_6 = arith.constant 0 : index
    %c0_7 = arith.constant 0 : index
    %c0_8 = arith.constant 0 : index
    %8 = vector.load %arg16[%c0_6, %c0_7, %c0_8] : memref<8x2x96xf32, #tpu.memory_space<vmem>>, vector<8x2x96xf32>
    tpu.vector_store %arg16[%c0_6, %c0_7, %c0_8], %7 {strides = array<i32>} : memref<8x2x96xf32, #tpu.memory_space<vmem>>, vector<8x2x96xf32>,
    %c0_9 = arith.constant 0 : index
    %c0_10 = arith.constant 0 : index
    %9 = vector.load %arg7[%c0_9, %c0_10] : memref<32x96xbf16, #tpu.memory_space<vmem>>, vector<32x96xbf16>
    %c0_11 = arith.constant 0 : index
    %c0_12 = arith.constant 0 : index
    %10 = vector.load %arg8[%c0_11, %c0_12] : memref<1x96xf32, #tpu.memory_space<vmem>>, vector<1x96xf32>
    %c0_13 = arith.constant 0 : index
    %c0_14 = arith.constant 0 : index
    %11 = vector.load %arg2[%c0_13, %c0_14] : memref<2x32xf32, #tpu.memory_space<vmem>>, vector<2x32xf32>
    %c0_15 = arith.constant 0 : index
    %c0_16 = arith.constant 0 : index
    %c0_17 = arith.constant 0 : index
    %12 = vector.load %arg16[%c0_15, %c0_16, %c0_17] : memref<8x2x96xf32, #tpu.memory_space<vmem>>, vector<1x2x96xf32>
    %13 = vector.shape_cast %12 : vector<1x2x96xf32> to vector<2x96xf32>
    %14 = arith.truncf %11 : vector<2x32xf32> to vector<2x32xbf16>
    %cst_18 = arith.constant dense<0.000000e+00> : vector<2x96xf32>
    %15 = tpu.matmul %14, %9, %cst_18 {dimension_numbers = #tpu.dot_dimension_numbers<[1], [0], [0], [1], [0, 0, 1, 1], [], []>} : vector<2x32xbf16>, vector<32x96xbf16>, vector<2x96xf32> -> vector<2x96xf32>
    %16 = vector.broadcast %10 : vector<1x96xf32> to vector<2x96xf32>
    %17 = arith.addf %15, %16 : vector<2x96xf32>
    %18 = vector.extract_strided_slice %13 {offsets = [0, 0], sizes = [2, 32], strides = [1, 1]} : vector<2x96xf32> to vector<2x32xf32>
    %19 = vector.extract_strided_slice %17 {offsets = [0, 0], sizes = [2, 32], strides = [1, 1]} : vector<2x96xf32> to vector<2x32xf32>
    %20 = arith.addf %18, %19 : vector<2x32xf32>
    %21 = arith.negf %20 : vector<2x32xf32>
    %22 = math.exp %21 : vector<2x32xf32>
    %cst_19 = arith.constant 1.000000e+00 : f32
    %23 = vector.broadcast %cst_19 : f32 to vector<2x32xf32>
    %24 = arith.addf %23, %22 : vector<2x32xf32>
    %25 = arith.divf %23, %24 : vector<2x32xf32>
    %26 = vector.extract_strided_slice %13 {offsets = [0, 32], sizes = [2, 32], strides = [1, 1]} : vector<2x96xf32> to vector<2x32xf32>
    %27 = vector.extract_strided_slice %17 {offsets = [0, 32], sizes = [2, 32], strides = [1, 1]} : vector<2x96xf32> to vector<2x32xf32>
    %28 = arith.addf %26, %27 : vector<2x32xf32>
    %29 = arith.negf %28 : vector<2x32xf32>
    %30 = math.exp %29 : vector<2x32xf32>
    %cst_20 = arith.constant 1.000000e+00 : f32
    %31 = vector.broadcast %cst_20 : f32 to vector<2x32xf32>
    %32 = arith.addf %31, %30 : vector<2x32xf32>
    %33 = arith.divf %31, %32 : vector<2x32xf32>
    %34 = vector.extract_strided_slice %13 {offsets = [0, 64], sizes = [2, 32], strides = [1, 1]} : vector<2x96xf32> to vector<2x32xf32>
    %35 = vector.extract_strided_slice %17 {offsets = [0, 64], sizes = [2, 32], strides = [1, 1]} : vector<2x96xf32> to vector<2x32xf32>
    %36 = arith.mulf %25, %35 : vector<2x32xf32>
    %37 = arith.addf %34, %36 : vector<2x32xf32>
    %38 = math.tanh %37 : vector<2x32xf32>
    %cst_21 = arith.constant 1.000000e+00 : f32
    %39 = vector.broadcast %cst_21 : f32 to vector<2x32xf32>
    %40 = arith.subf %39, %33 : vector<2x32xf32>
    %41 = arith.mulf %40, %38 : vector<2x32xf32>
    %42 = arith.mulf %33, %11 : vector<2x32xf32>
    %43 = arith.addf %41, %42 : vector<2x32xf32>
    %44 = arith.truncf %43 : vector<2x32xf32> to vector<2x32xbf16>
    %c0_22 = arith.constant 0 : index
    %c0_23 = arith.constant 0 : index
    %c0_24 = arith.constant 0 : index
    %45 = vector.load %arg17[%c0_22, %c0_23, %c0_24] : memref<8x2x32xbf16, #tpu.memory_space<vmem>>, vector<1x2x32xbf16>
    %46 = vector.shape_cast %45 : vector<1x2x32xbf16> to vector<2x32xbf16>
    %47 = vector.shape_cast %44 : vector<2x32xbf16> to vector<1x2x32xbf16>
    tpu.vector_store %arg17[%c0_22, %c0_23, %c0_24], %47 {strides = array<i32>} : memref<8x2x32xbf16, #tpu.memory_space<vmem>>, vector<1x2x32xbf16>,
    %c1 = arith.constant 1 : index
    %c0_25 = arith.constant 0 : index
    %c0_26 = arith.constant 0 : index
    %48 = vector.load %arg16[%c1, %c0_25, %c0_26] : memref<8x2x96xf32, #tpu.memory_space<vmem>>, vector<1x2x96xf32>
    %49 = vector.shape_cast %48 : vector<1x2x96xf32> to vector<2x96xf32>
    %50 = arith.truncf %43 : vector<2x32xf32> to vector<2x32xbf16>
    %cst_27 = arith.constant dense<0.000000e+00> : vector<2x96xf32>
    %51 = tpu.matmul %50, %9, %cst_27 {dimension_numbers = #tpu.dot_dimension_numbers<[1], [0], [0], [1], [0, 0, 1, 1], [], []>} : vector<2x32xbf16>, vector<32x96xbf16>, vector<2x96xf32> -> vector<2x96xf32>
    %52 = vector.broadcast %10 : vector<1x96xf32> to vector<2x96xf32>
    %53 = arith.addf %51, %52 : vector<2x96xf32>
    %54 = vector.extract_strided_slice %49 {offsets = [0, 0], sizes = [2, 32], strides = [1, 1]} : vector<2x96xf32> to vector<2x32xf32>
    %55 = vector.extract_strided_slice %53 {offsets = [0, 0], sizes = [2, 32], strides = [1, 1]} : vector<2x96xf32> to vector<2x32xf32>
    %56 = arith.addf %54, %55 : vector<2x32xf32>
    %57 = arith.negf %56 : vector<2x32xf32>
    %58 = math.exp %57 : vector<2x32xf32>
    %cst_28 = arith.constant 1.000000e+00 : f32
    %59 = vector.broadcast %cst_28 : f32 to vector<2x32xf32>
    %60 = arith.addf %59, %58 : vector<2x32xf32>
    %61 = arith.divf %59, %60 : vector<2x32xf32>
    %62 = vector.extract_strided_slice %49 {offsets = [0, 32], sizes = [2, 32], strides = [1, 1]} : vector<2x96xf32> to vector<2x32xf32>
    %63 = vector.extract_strided_slice %53 {offsets = [0, 32], sizes = [2, 32], strides = [1, 1]} : vector<2x96xf32> to vector<2x32xf32>
    %64 = arith.addf %62, %63 : vector<2x32xf32>
    %65 = arith.negf %64 : vector<2x32xf32>
    %66 = math.exp %65 : vector<2x32xf32>
    %cst_29 = arith.constant 1.000000e+00 : f32
    %67 = vector.broadcast %cst_29 : f32 to vector<2x32xf32>
    %68 = arith.addf %67, %66 : vector<2x32xf32>
    %69 = arith.divf %67, %68 : vector<2x32xf32>
    %70 = vector.extract_strided_slice %49 {offsets = [0, 64], sizes = [2, 32], strides = [1, 1]} : vector<2x96xf32> to vector<2x32xf32>
    %71 = vector.extract_strided_slice %53 {offsets = [0, 64], sizes = [2, 32], strides = [1, 1]} : vector<2x96xf32> to vector<2x32xf32>
    %72 = arith.mulf %61, %71 : vector<2x32xf32>
    %73 = arith.addf %70, %72 : vector<2x32xf32>
    %74 = math.tanh %73 : vector<2x32xf32>
    %cst_30 = arith.constant 1.000000e+00 : f32
    %75 = vector.broadcast %cst_30 : f32 to vector<2x32xf32>
    %76 = arith.subf %75, %69 : vector<2x32xf32>
    %77 = arith.mulf %76, %74 : vector<2x32xf32>
    %78 = arith.mulf %69, %43 : vector<2x32xf32>
    %79 = arith.addf %77, %78 : vector<2x32xf32>
    %80 = arith.truncf %79 : vector<2x32xf32> to vector<2x32xbf16>
    %c1_31 = arith.constant 1 : index
    %c0_32 = arith.constant 0 : index
    %c0_33 = arith.constant 0 : index
    %81 = vector.load %arg17[%c1_31, %c0_32, %c0_33] : memref<8x2x32xbf16, #tpu.memory_space<vmem>>, vector<1x2x32xbf16>
    %82 = vector.shape_cast %81 : vector<1x2x32xbf16> to vector<2x32xbf16>
    %83 = vector.shape_cast %80 : vector<2x32xbf16> to vector<1x2x32xbf16>
    tpu.vector_store %arg17[%c1_31, %c0_32, %c0_33], %83 {strides = array<i32>} : memref<8x2x32xbf16, #tpu.memory_space<vmem>>, vector<1x2x32xbf16>,
    %c2 = arith.constant 2 : index
    %c0_34 = arith.constant 0 : index
    %c0_35 = arith.constant 0 : index
    %84 = vector.load %arg16[%c2, %c0_34, %c0_35] : memref<8x2x96xf32, #tpu.memory_space<vmem>>, vector<1x2x96xf32>
    %85 = vector.shape_cast %84 : vector<1x2x96xf32> to vector<2x96xf32>
    %86 = arith.truncf %79 : vector<2x32xf32> to vector<2x32xbf16>
    %cst_36 = arith.constant dense<0.000000e+00> : vector<2x96xf32>
    %87 = tpu.matmul %86, %9, %cst_36 {dimension_numbers = #tpu.dot_dimension_numbers<[1], [0], [0], [1], [0, 0, 1, 1], [], []>} : vector<2x32xbf16>, vector<32x96xbf16>, vector<2x96xf32> -> vector<2x96xf32>
    %88 = vector.broadcast %10 : vector<1x96xf32> to vector<2x96xf32>
    %89 = arith.addf %87, %88 : vector<2x96xf32>
    %90 = vector.extract_strided_slice %85 {offsets = [0, 0], sizes = [2, 32], strides = [1, 1]} : vector<2x96xf32> to vector<2x32xf32>
    %91 = vector.extract_strided_slice %89 {offsets = [0, 0], sizes = [2, 32], strides = [1, 1]} : vector<2x96xf32> to vector<2x32xf32>
    %92 = arith.addf %90, %91 : vector<2x32xf32>
    %93 = arith.negf %92 : vector<2x32xf32>
    %94 = math.exp %93 : vector<2x32xf32>
    %cst_37 = arith.constant 1.000000e+00 : f32
    %95 = vector.broadcast %cst_37 : f32 to vector<2x32xf32>
    %96 = arith.addf %95, %94 : vector<2x32xf32>
    %97 = arith.divf %95, %96 : vector<2x32xf32>
    %98 = vector.extract_strided_slice %85 {offsets = [0, 32], sizes = [2, 32], strides = [1, 1]} : vector<2x96xf32> to vector<2x32xf32>
    %99 = vector.extract_strided_slice %89 {offsets = [0, 32], sizes = [2, 32], strides = [1, 1]} : vector<2x96xf32> to vector<2x32xf32>
    %100 = arith.addf %98, %99 : vector<2x32xf32>
    %101 = arith.negf %100 : vector<2x32xf32>
    %102 = math.exp %101 : vector<2x32xf32>
    %cst_38 = arith.constant 1.000000e+00 : f32
    %103 = vector.broadcast %cst_38 : f32 to vector<2x32xf32>
    %104 = arith.addf %103, %102 : vector<2x32xf32>
    %105 = arith.divf %103, %104 : vector<2x32xf32>
    %106 = vector.extract_strided_slice %85 {offsets = [0, 64], sizes = [2, 32], strides = [1, 1]} : vector<2x96xf32> to vector<2x32xf32>
    %107 = vector.extract_strided_slice %89 {offsets = [0, 64], sizes = [2, 32], strides = [1, 1]} : vector<2x96xf32> to vector<2x32xf32>
    %108 = arith.mulf %97, %107 : vector<2x32xf32>
    %109 = arith.addf %106, %108 : vector<2x32xf32>
    %110 = math.tanh %109 : vector<2x32xf32>
    %cst_39 = arith.constant 1.000000e+00 : f32
    %111 = vector.broadcast %cst_39 : f32 to vector<2x32xf32>
    %112 = arith.subf %111, %105 : vector<2x32xf32>
    %113 = arith.mulf %112, %110 : vector<2x32xf32>
    %114 = arith.mulf %105, %79 : vector<2x32xf32>
    %115 = arith.addf %113, %114 : vector<2x32xf32>
    %116 = arith.truncf %115 : vector<2x32xf32> to vector<2x32xbf16>
    %c2_40 = arith.constant 2 : index
    %c0_41 = arith.constant 0 : index
    %c0_42 = arith.constant 0 : index
    %117 = vector.load %arg17[%c2_40, %c0_41, %c0_42] : memref<8x2x32xbf16, #tpu.memory_space<vmem>>, vector<1x2x32xbf16>
    %118 = vector.shape_cast %117 : vector<1x2x32xbf16> to vector<2x32xbf16>
    %119 = vector.shape_cast %116 : vector<2x32xbf16> to vector<1x2x32xbf16>
    tpu.vector_store %arg17[%c2_40, %c0_41, %c0_42], %119 {strides = array<i32>} : memref<8x2x32xbf16, #tpu.memory_space<vmem>>, vector<1x2x32xbf16>,
    %c3 = arith.constant 3 : index
    %c0_43 = arith.constant 0 : index
    %c0_44 = arith.constant 0 : index
    %120 = vector.load %arg16[%c3, %c0_43, %c0_44] : memref<8x2x96xf32, #tpu.memory_space<vmem>>, vector<1x2x96xf32>
    %121 = vector.shape_cast %120 : vector<1x2x96xf32> to vector<2x96xf32>
    %122 = arith.truncf %115 : vector<2x32xf32> to vector<2x32xbf16>
    %cst_45 = arith.constant dense<0.000000e+00> : vector<2x96xf32>
    %123 = tpu.matmul %122, %9, %cst_45 {dimension_numbers = #tpu.dot_dimension_numbers<[1], [0], [0], [1], [0, 0, 1, 1], [], []>} : vector<2x32xbf16>, vector<32x96xbf16>, vector<2x96xf32> -> vector<2x96xf32>
    %124 = vector.broadcast %10 : vector<1x96xf32> to vector<2x96xf32>
    %125 = arith.addf %123, %124 : vector<2x96xf32>
    %126 = vector.extract_strided_slice %121 {offsets = [0, 0], sizes = [2, 32], strides = [1, 1]} : vector<2x96xf32> to vector<2x32xf32>
    %127 = vector.extract_strided_slice %125 {offsets = [0, 0], sizes = [2, 32], strides = [1, 1]} : vector<2x96xf32> to vector<2x32xf32>
    %128 = arith.addf %126, %127 : vector<2x32xf32>
    %129 = arith.negf %128 : vector<2x32xf32>
    %130 = math.exp %129 : vector<2x32xf32>
    %cst_46 = arith.constant 1.000000e+00 : f32
    %131 = vector.broadcast %cst_46 : f32 to vector<2x32xf32>
    %132 = arith.addf %131, %130 : vector<2x32xf32>
    %133 = arith.divf %131, %132 : vector<2x32xf32>
    %134 = vector.extract_strided_slice %121 {offsets = [0, 32], sizes = [2, 32], strides = [1, 1]} : vector<2x96xf32> to vector<2x32xf32>
    %135 = vector.extract_strided_slice %125 {offsets = [0, 32], sizes = [2, 32], strides = [1, 1]} : vector<2x96xf32> to vector<2x32xf32>
    %136 = arith.addf %134, %135 : vector<2x32xf32>
    %137 = arith.negf %136 : vector<2x32xf32>
    %138 = math.exp %137 : vector<2x32xf32>
    %cst_47 = arith.constant 1.000000e+00 : f32
    %139 = vector.broadcast %cst_47 : f32 to vector<2x32xf32>
    %140 = arith.addf %139, %138 : vector<2x32xf32>
    %141 = arith.divf %139, %140 : vector<2x32xf32>
    %142 = vector.extract_strided_slice %121 {offsets = [0, 64], sizes = [2, 32], strides = [1, 1]} : vector<2x96xf32> to vector<2x32xf32>
    %143 = vector.extract_strided_slice %125 {offsets = [0, 64], sizes = [2, 32], strides = [1, 1]} : vector<2x96xf32> to vector<2x32xf32>
    %144 = arith.mulf %133, %143 : vector<2x32xf32>
    %145 = arith.addf %142, %144 : vector<2x32xf32>
    %146 = math.tanh %145 : vector<2x32xf32>
    %cst_48 = arith.constant 1.000000e+00 : f32
    %147 = vector.broadcast %cst_48 : f32 to vector<2x32xf32>
    %148 = arith.subf %147, %141 : vector<2x32xf32>
    %149 = arith.mulf %148, %146 : vector<2x32xf32>
    %150 = arith.mulf %141, %115 : vector<2x32xf32>
    %151 = arith.addf %149, %150 : vector<2x32xf32>
    %152 = arith.truncf %151 : vector<2x32xf32> to vector<2x32xbf16>
    %c3_49 = arith.constant 3 : index
    %c0_50 = arith.constant 0 : index
    %c0_51 = arith.constant 0 : index
    %153 = vector.load %arg17[%c3_49, %c0_50, %c0_51] : memref<8x2x32xbf16, #tpu.memory_space<vmem>>, vector<1x2x32xbf16>
    %154 = vector.shape_cast %153 : vector<1x2x32xbf16> to vector<2x32xbf16>
    %155 = vector.shape_cast %152 : vector<2x32xbf16> to vector<1x2x32xbf16>
    tpu.vector_store %arg17[%c3_49, %c0_50, %c0_51], %155 {strides = array<i32>} : memref<8x2x32xbf16, #tpu.memory_space<vmem>>, vector<1x2x32xbf16>,
    %c4 = arith.constant 4 : index
    %c0_52 = arith.constant 0 : index
    %c0_53 = arith.constant 0 : index
    %156 = vector.load %arg16[%c4, %c0_52, %c0_53] : memref<8x2x96xf32, #tpu.memory_space<vmem>>, vector<1x2x96xf32>
    %157 = vector.shape_cast %156 : vector<1x2x96xf32> to vector<2x96xf32>
    %158 = arith.truncf %151 : vector<2x32xf32> to vector<2x32xbf16>
    %cst_54 = arith.constant dense<0.000000e+00> : vector<2x96xf32>
    %159 = tpu.matmul %158, %9, %cst_54 {dimension_numbers = #tpu.dot_dimension_numbers<[1], [0], [0], [1], [0, 0, 1, 1], [], []>} : vector<2x32xbf16>, vector<32x96xbf16>, vector<2x96xf32> -> vector<2x96xf32>
    %160 = vector.broadcast %10 : vector<1x96xf32> to vector<2x96xf32>
    %161 = arith.addf %159, %160 : vector<2x96xf32>
    %162 = vector.extract_strided_slice %157 {offsets = [0, 0], sizes = [2, 32], strides = [1, 1]} : vector<2x96xf32> to vector<2x32xf32>
    %163 = vector.extract_strided_slice %161 {offsets = [0, 0], sizes = [2, 32], strides = [1, 1]} : vector<2x96xf32> to vector<2x32xf32>
    %164 = arith.addf %162, %163 : vector<2x32xf32>
    %165 = arith.negf %164 : vector<2x32xf32>
    %166 = math.exp %165 : vector<2x32xf32>
    %cst_55 = arith.constant 1.000000e+00 : f32
    %167 = vector.broadcast %cst_55 : f32 to vector<2x32xf32>
    %168 = arith.addf %167, %166 : vector<2x32xf32>
    %169 = arith.divf %167, %168 : vector<2x32xf32>
    %170 = vector.extract_strided_slice %157 {offsets = [0, 32], sizes = [2, 32], strides = [1, 1]} : vector<2x96xf32> to vector<2x32xf32>
    %171 = vector.extract_strided_slice %161 {offsets = [0, 32], sizes = [2, 32], strides = [1, 1]} : vector<2x96xf32> to vector<2x32xf32>
    %172 = arith.addf %170, %171 : vector<2x32xf32>
    %173 = arith.negf %172 : vector<2x32xf32>
    %174 = math.exp %173 : vector<2x32xf32>
    %cst_56 = arith.constant 1.000000e+00 : f32
    %175 = vector.broadcast %cst_56 : f32 to vector<2x32xf32>
    %176 = arith.addf %175, %174 : vector<2x32xf32>
    %177 = arith.divf %175, %176 : vector<2x32xf32>
    %178 = vector.extract_strided_slice %157 {offsets = [0, 64], sizes = [2, 32], strides = [1, 1]} : vector<2x96xf32> to vector<2x32xf32>
    %179 = vector.extract_strided_slice %161 {offsets = [0, 64], sizes = [2, 32], strides = [1, 1]} : vector<2x96xf32> to vector<2x32xf32>
    %180 = arith.mulf %169, %179 : vector<2x32xf32>
    %181 = arith.addf %178, %180 : vector<2x32xf32>
    %182 = math.tanh %181 : vector<2x32xf32>
    %cst_57 = arith.constant 1.000000e+00 : f32
    %183 = vector.broadcast %cst_57 : f32 to vector<2x32xf32>
    %184 = arith.subf %183, %177 : vector<2x32xf32>
    %185 = arith.mulf %184, %182 : vector<2x32xf32>
    %186 = arith.mulf %177, %151 : vector<2x32xf32>
    %187 = arith.addf %185, %186 : vector<2x32xf32>
    %188 = arith.truncf %187 : vector<2x32xf32> to vector<2x32xbf16>
    %c4_58 = arith.constant 4 : index
    %c0_59 = arith.constant 0 : index
    %c0_60 = arith.constant 0 : index
    %189 = vector.load %arg17[%c4_58, %c0_59, %c0_60] : memref<8x2x32xbf16, #tpu.memory_space<vmem>>, vector<1x2x32xbf16>
    %190 = vector.shape_cast %189 : vector<1x2x32xbf16> to vector<2x32xbf16>
    %191 = vector.shape_cast %188 : vector<2x32xbf16> to vector<1x2x32xbf16>
    tpu.vector_store %arg17[%c4_58, %c0_59, %c0_60], %191 {strides = array<i32>} : memref<8x2x32xbf16, #tpu.memory_space<vmem>>, vector<1x2x32xbf16>,
    %c5 = arith.constant 5 : index
    %c0_61 = arith.constant 0 : index
    %c0_62 = arith.constant 0 : index
    %192 = vector.load %arg16[%c5, %c0_61, %c0_62] : memref<8x2x96xf32, #tpu.memory_space<vmem>>, vector<1x2x96xf32>
    %193 = vector.shape_cast %192 : vector<1x2x96xf32> to vector<2x96xf32>
    %194 = arith.truncf %187 : vector<2x32xf32> to vector<2x32xbf16>
    %cst_63 = arith.constant dense<0.000000e+00> : vector<2x96xf32>
    %195 = tpu.matmul %194, %9, %cst_63 {dimension_numbers = #tpu.dot_dimension_numbers<[1], [0], [0], [1], [0, 0, 1, 1], [], []>} : vector<2x32xbf16>, vector<32x96xbf16>, vector<2x96xf32> -> vector<2x96xf32>
    %196 = vector.broadcast %10 : vector<1x96xf32> to vector<2x96xf32>
    %197 = arith.addf %195, %196 : vector<2x96xf32>
    %198 = vector.extract_strided_slice %193 {offsets = [0, 0], sizes = [2, 32], strides = [1, 1]} : vector<2x96xf32> to vector<2x32xf32>
    %199 = vector.extract_strided_slice %197 {offsets = [0, 0], sizes = [2, 32], strides = [1, 1]} : vector<2x96xf32> to vector<2x32xf32>
    %200 = arith.addf %198, %199 : vector<2x32xf32>
    %201 = arith.negf %200 : vector<2x32xf32>
    %202 = math.exp %201 : vector<2x32xf32>
    %cst_64 = arith.constant 1.000000e+00 : f32
    %203 = vector.broadcast %cst_64 : f32 to vector<2x32xf32>
    %204 = arith.addf %203, %202 : vector<2x32xf32>
    %205 = arith.divf %203, %204 : vector<2x32xf32>
    %206 = vector.extract_strided_slice %193 {offsets = [0, 32], sizes = [2, 32], strides = [1, 1]} : vector<2x96xf32> to vector<2x32xf32>
    %207 = vector.extract_strided_slice %197 {offsets = [0, 32], sizes = [2, 32], strides = [1, 1]} : vector<2x96xf32> to vector<2x32xf32>
    %208 = arith.addf %206, %207 : vector<2x32xf32>
    %209 = arith.negf %208 : vector<2x32xf32>
    %210 = math.exp %209 : vector<2x32xf32>
    %cst_65 = arith.constant 1.000000e+00 : f32
    %211 = vector.broadcast %cst_65 : f32 to vector<2x32xf32>
    %212 = arith.addf %211, %210 : vector<2x32xf32>
    %213 = arith.divf %211, %212 : vector<2x32xf32>
    %214 = vector.extract_strided_slice %193 {offsets = [0, 64], sizes = [2, 32], strides = [1, 1]} : vector<2x96xf32> to vector<2x32xf32>
    %215 = vector.extract_strided_slice %197 {offsets = [0, 64], sizes = [2, 32], strides = [1, 1]} : vector<2x96xf32> to vector<2x32xf32>
    %216 = arith.mulf %205, %215 : vector<2x32xf32>
    %217 = arith.addf %214, %216 : vector<2x32xf32>
    %218 = math.tanh %217 : vector<2x32xf32>
    %cst_66 = arith.constant 1.000000e+00 : f32
    %219 = vector.broadcast %cst_66 : f32 to vector<2x32xf32>
    %220 = arith.subf %219, %213 : vector<2x32xf32>
    %221 = arith.mulf %220, %218 : vector<2x32xf32>
    %222 = arith.mulf %213, %187 : vector<2x32xf32>
    %223 = arith.addf %221, %222 : vector<2x32xf32>
    %224 = arith.truncf %223 : vector<2x32xf32> to vector<2x32xbf16>
    %c5_67 = arith.constant 5 : index
    %c0_68 = arith.constant 0 : index
    %c0_69 = arith.constant 0 : index
    %225 = vector.load %arg17[%c5_67, %c0_68, %c0_69] : memref<8x2x32xbf16, #tpu.memory_space<vmem>>, vector<1x2x32xbf16>
    %226 = vector.shape_cast %225 : vector<1x2x32xbf16> to vector<2x32xbf16>
    %227 = vector.shape_cast %224 : vector<2x32xbf16> to vector<1x2x32xbf16>
    tpu.vector_store %arg17[%c5_67, %c0_68, %c0_69], %227 {strides = array<i32>} : memref<8x2x32xbf16, #tpu.memory_space<vmem>>, vector<1x2x32xbf16>,
    %c6 = arith.constant 6 : index
    %c0_70 = arith.constant 0 : index
    %c0_71 = arith.constant 0 : index
    %228 = vector.load %arg16[%c6, %c0_70, %c0_71] : memref<8x2x96xf32, #tpu.memory_space<vmem>>, vector<1x2x96xf32>
    %229 = vector.shape_cast %228 : vector<1x2x96xf32> to vector<2x96xf32>
    %230 = arith.truncf %223 : vector<2x32xf32> to vector<2x32xbf16>
    %cst_72 = arith.constant dense<0.000000e+00> : vector<2x96xf32>
    %231 = tpu.matmul %230, %9, %cst_72 {dimension_numbers = #tpu.dot_dimension_numbers<[1], [0], [0], [1], [0, 0, 1, 1], [], []>} : vector<2x32xbf16>, vector<32x96xbf16>, vector<2x96xf32> -> vector<2x96xf32>
    %232 = vector.broadcast %10 : vector<1x96xf32> to vector<2x96xf32>
    %233 = arith.addf %231, %232 : vector<2x96xf32>
    %234 = vector.extract_strided_slice %229 {offsets = [0, 0], sizes = [2, 32], strides = [1, 1]} : vector<2x96xf32> to vector<2x32xf32>
    %235 = vector.extract_strided_slice %233 {offsets = [0, 0], sizes = [2, 32], strides = [1, 1]} : vector<2x96xf32> to vector<2x32xf32>
    %236 = arith.addf %234, %235 : vector<2x32xf32>
    %237 = arith.negf %236 : vector<2x32xf32>
    %238 = math.exp %237 : vector<2x32xf32>
    %cst_73 = arith.constant 1.000000e+00 : f32
    %239 = vector.broadcast %cst_73 : f32 to vector<2x32xf32>
    %240 = arith.addf %239, %238 : vector<2x32xf32>
    %241 = arith.divf %239, %240 : vector<2x32xf32>
    %242 = vector.extract_strided_slice %229 {offsets = [0, 32], sizes = [2, 32], strides = [1, 1]} : vector<2x96xf32> to vector<2x32xf32>
    %243 = vector.extract_strided_slice %233 {offsets = [0, 32], sizes = [2, 32], strides = [1, 1]} : vector<2x96xf32> to vector<2x32xf32>
    %244 = arith.addf %242, %243 : vector<2x32xf32>
    %245 = arith.negf %244 : vector<2x32xf32>
    %246 = math.exp %245 : vector<2x32xf32>
    %cst_74 = arith.constant 1.000000e+00 : f32
    %247 = vector.broadcast %cst_74 : f32 to vector<2x32xf32>
    %248 = arith.addf %247, %246 : vector<2x32xf32>
    %249 = arith.divf %247, %248 : vector<2x32xf32>
    %250 = vector.extract_strided_slice %229 {offsets = [0, 64], sizes = [2, 32], strides = [1, 1]} : vector<2x96xf32> to vector<2x32xf32>
    %251 = vector.extract_strided_slice %233 {offsets = [0, 64], sizes = [2, 32], strides = [1, 1]} : vector<2x96xf32> to vector<2x32xf32>
    %252 = arith.mulf %241, %251 : vector<2x32xf32>
    %253 = arith.addf %250, %252 : vector<2x32xf32>
    %254 = math.tanh %253 : vector<2x32xf32>
    %cst_75 = arith.constant 1.000000e+00 : f32
    %255 = vector.broadcast %cst_75 : f32 to vector<2x32xf32>
    %256 = arith.subf %255, %249 : vector<2x32xf32>
    %257 = arith.mulf %256, %254 : vector<2x32xf32>
    %258 = arith.mulf %249, %223 : vector<2x32xf32>
    %259 = arith.addf %257, %258 : vector<2x32xf32>
    %260 = arith.truncf %259 : vector<2x32xf32> to vector<2x32xbf16>
    %c6_76 = arith.constant 6 : index
    %c0_77 = arith.constant 0 : index
    %c0_78 = arith.constant 0 : index
    %261 = vector.load %arg17[%c6_76, %c0_77, %c0_78] : memref<8x2x32xbf16, #tpu.memory_space<vmem>>, vector<1x2x32xbf16>
    %262 = vector.shape_cast %261 : vector<1x2x32xbf16> to vector<2x32xbf16>
    %263 = vector.shape_cast %260 : vector<2x32xbf16> to vector<1x2x32xbf16>
    tpu.vector_store %arg17[%c6_76, %c0_77, %c0_78], %263 {strides = array<i32>} : memref<8x2x32xbf16, #tpu.memory_space<vmem>>, vector<1x2x32xbf16>,
    %c7 = arith.constant 7 : index
    %c0_79 = arith.constant 0 : index
    %c0_80 = arith.constant 0 : index
    %264 = vector.load %arg16[%c7, %c0_79, %c0_80] : memref<8x2x96xf32, #tpu.memory_space<vmem>>, vector<1x2x96xf32>
    %265 = vector.shape_cast %264 : vector<1x2x96xf32> to vector<2x96xf32>
    %266 = arith.truncf %259 : vector<2x32xf32> to vector<2x32xbf16>
    %cst_81 = arith.constant dense<0.000000e+00> : vector<2x96xf32>
    %267 = tpu.matmul %266, %9, %cst_81 {dimension_numbers = #tpu.dot_dimension_numbers<[1], [0], [0], [1], [0, 0, 1, 1], [], []>} : vector<2x32xbf16>, vector<32x96xbf16>, vector<2x96xf32> -> vector<2x96xf32>
    %268 = vector.broadcast %10 : vector<1x96xf32> to vector<2x96xf32>
    %269 = arith.addf %267, %268 : vector<2x96xf32>
    %270 = vector.extract_strided_slice %265 {offsets = [0, 0], sizes = [2, 32], strides = [1, 1]} : vector<2x96xf32> to vector<2x32xf32>
    %271 = vector.extract_strided_slice %269 {offsets = [0, 0], sizes = [2, 32], strides = [1, 1]} : vector<2x96xf32> to vector<2x32xf32>
    %272 = arith.addf %270, %271 : vector<2x32xf32>
    %273 = arith.negf %272 : vector<2x32xf32>
    %274 = math.exp %273 : vector<2x32xf32>
    %cst_82 = arith.constant 1.000000e+00 : f32
    %275 = vector.broadcast %cst_82 : f32 to vector<2x32xf32>
    %276 = arith.addf %275, %274 : vector<2x32xf32>
    %277 = arith.divf %275, %276 : vector<2x32xf32>
    %278 = vector.extract_strided_slice %265 {offsets = [0, 32], sizes = [2, 32], strides = [1, 1]} : vector<2x96xf32> to vector<2x32xf32>
    %279 = vector.extract_strided_slice %269 {offsets = [0, 32], sizes = [2, 32], strides = [1, 1]} : vector<2x96xf32> to vector<2x32xf32>
    %280 = arith.addf %278, %279 : vector<2x32xf32>
    %281 = arith.negf %280 : vector<2x32xf32>
    %282 = math.exp %281 : vector<2x32xf32>
    %cst_83 = arith.constant 1.000000e+00 : f32
    %283 = vector.broadcast %cst_83 : f32 to vector<2x32xf32>
    %284 = arith.addf %283, %282 : vector<2x32xf32>
    %285 = arith.divf %283, %284 : vector<2x32xf32>
    %286 = vector.extract_strided_slice %265 {offsets = [0, 64], sizes = [2, 32], strides = [1, 1]} : vector<2x96xf32> to vector<2x32xf32>
    %287 = vector.extract_strided_slice %269 {offsets = [0, 64], sizes = [2, 32], strides = [1, 1]} : vector<2x96xf32> to vector<2x32xf32>
    %288 = arith.mulf %277, %287 : vector<2x32xf32>
    %289 = arith.addf %286, %288 : vector<2x32xf32>
    %290 = math.tanh %289 : vector<2x32xf32>
    %cst_84 = arith.constant 1.000000e+00 : f32
    %291 = vector.broadcast %cst_84 : f32 to vector<2x32xf32>
    %292 = arith.subf %291, %285 : vector<2x32xf32>
    %293 = arith.mulf %292, %290 : vector<2x32xf32>
    %294 = arith.mulf %285, %259 : vector<2x32xf32>
    %295 = arith.addf %293, %294 : vector<2x32xf32>
    %296 = arith.truncf %295 : vector<2x32xf32> to vector<2x32xbf16>
    %c7_85 = arith.constant 7 : index
    %c0_86 = arith.constant 0 : index
    %c0_87 = arith.constant 0 : index
    %297 = vector.load %arg17[%c7_85, %c0_86, %c0_87] : memref<8x2x32xbf16, #tpu.memory_space<vmem>>, vector<1x2x32xbf16>
    %298 = vector.shape_cast %297 : vector<1x2x32xbf16> to vector<2x32xbf16>
    %299 = vector.shape_cast %296 : vector<2x32xbf16> to vector<1x2x32xbf16>
    tpu.vector_store %arg17[%c7_85, %c0_86, %c0_87], %299 {strides = array<i32>} : memref<8x2x32xbf16, #tpu.memory_space<vmem>>, vector<1x2x32xbf16>,
    %c0_88 = arith.constant 0 : index
    %c0_89 = arith.constant 0 : index
    %300 = vector.load %arg14[%c0_88, %c0_89] : memref<2x32xf32, #tpu.memory_space<vmem>>, vector<2x32xf32>
    tpu.vector_store %arg14[%c0_88, %c0_89], %295 {strides = array<i32>} : memref<2x32xf32, #tpu.memory_space<vmem>>, vector<2x32xf32>,
    %c0_90 = arith.constant 0 : index
    %c0_91 = arith.constant 0 : index
    %c0_92 = arith.constant 0 : index
    %301 = vector.load %arg17[%c0_90, %c0_91, %c0_92] : memref<8x2x32xbf16, #tpu.memory_space<vmem>>, vector<8x2x32xbf16>
    %302 = tpu.transpose %301, [1, 0, 2] : vector<8x2x32xbf16> -> vector<2x8x32xbf16>
    %c0_93 = arith.constant 0 : index
    %c0_94 = arith.constant 0 : index
    %c0_95 = arith.constant 0 : index
    %303 = vector.load %arg3[%c0_93, %c0_94, %c0_95] : memref<2x128x32xbf16, #tpu.memory_space<vmem>>, vector<2x128x32xbf16>
    %304 = vector.shape_cast %302 : vector<2x8x32xbf16> to vector<16x32xbf16>
    %c0_96 = arith.constant 0 : index
    %c0_97 = arith.constant 0 : index
    %305 = vector.load %arg9[%c0_96, %c0_97] : memref<32x32xbf16, #tpu.memory_space<vmem>>, vector<32x32xbf16>
    %cst_98 = arith.constant dense<0.000000e+00> : vector<16x32xf32>
    %306 = tpu.matmul %304, %305, %cst_98 {dimension_numbers = #tpu.dot_dimension_numbers<[1], [0], [0], [1], [0, 0, 1, 1], [], []>} : vector<16x32xbf16>, vector<32x32xbf16>, vector<16x32xf32> -> vector<16x32xf32>
    %307 = vector.shape_cast %306 : vector<16x32xf32> to vector<2x8x32xf32>
    %308 = arith.truncf %307 : vector<2x8x32xf32> to vector<2x8x32xbf16>
    "tpu.trace_start"() <{level = 10 : i32, message = "bth,bsh->bts"}> : () -> ()
    %cst_99 = arith.constant dense<0.000000e+00> : vector<2x8x128xf32>
    %309 = tpu.matmul %308, %303, %cst_99 {dimension_numbers = #tpu.dot_dimension_numbers<[2], [2], [1], [1], [0, 0, 0, 1, 1, 1], [0], [0]>} : vector<2x8x32xbf16>, vector<2x128x32xbf16>, vector<2x8x128xf32> -> vector<2x8x128xf32>
    "tpu.trace_stop"() : () -> ()
    %c0_100 = arith.constant 0 : index
    %c0_101 = arith.constant 0 : index
    %310 = vector.load %arg4[%c0_100, %c0_101] : memref<1x128xf32, #tpu.memory_space<vmem>>, vector<1x128xf32>
    %311 = vector.shape_cast %310 : vector<1x128xf32> to vector<1x1x128xf32>
    %312 = vector.broadcast %311 : vector<1x1x128xf32> to vector<2x8x128xf32>
    %313 = arith.addf %309, %312 : vector<2x8x128xf32>
    %cst_102 = arith.constant dense<0xFF800000> : vector<2x8xf32>
    %314 = vector.multi_reduction <maximumf>, %313, %cst_102 [2] : vector<2x8x128xf32> to vector<2x8xf32>
    %315 = vector.shape_cast %314 : vector<2x8xf32> to vector<2x8x1xf32>
    %316 = vector.broadcast %315 : vector<2x8x1xf32> to vector<2x8x128xf32>
    %317 = arith.subf %313, %316 : vector<2x8x128xf32>
    %318 = math.exp %317 : vector<2x8x128xf32>
    %cst_103 = arith.constant dense<0.000000e+00> : vector<2x8xf32>
    %319 = vector.multi_reduction <add>, %318, %cst_103 [2] : vector<2x8x128xf32> to vector<2x8xf32>
    %320 = vector.shape_cast %319 : vector<2x8xf32> to vector<2x8x1xf32>
    %321 = tpu.reciprocal %320 {approx = true} : vector<2x8x1xf32> -> vector<2x8x1xf32>
    %322 = vector.broadcast %321 : vector<2x8x1xf32> to vector<2x8x128xf32>
    %323 = arith.mulf %318, %322 : vector<2x8x128xf32>
    %324 = arith.truncf %323 : vector<2x8x128xf32> to vector<2x8x128xbf16>
    "tpu.trace_start"() <{level = 10 : i32, message = "bts,bsh->bth"}> : () -> ()
    %cst_104 = arith.constant dense<0.000000e+00> : vector<2x8x32xf32>
    %325 = tpu.matmul %324, %303, %cst_104 {dimension_numbers = #tpu.dot_dimension_numbers<[2], [1], [1], [2], [0, 0, 0, 1, 1, 2], [0], [0]>} : vector<2x8x128xbf16>, vector<2x128x32xbf16>, vector<2x8x32xf32> -> vector<2x8x32xf32>
    "tpu.trace_stop"() : () -> ()
    %326 = vector.shape_cast %302 : vector<2x8x32xbf16> to vector<16x32xbf16>
    %c0_105 = arith.constant 0 : index
    %c0_106 = arith.constant 0 : index
    %327 = vector.load %arg10[%c0_105, %c0_106] : memref<32x128xbf16, #tpu.memory_space<vmem>>, vector<32x128xbf16>
    %cst_107 = arith.constant dense<0.000000e+00> : vector<16x128xf32>
    %328 = tpu.matmul %326, %327, %cst_107 {dimension_numbers = #tpu.dot_dimension_numbers<[1], [0], [0], [1], [0, 0, 1, 1], [], []>} : vector<16x32xbf16>, vector<32x128xbf16>, vector<16x128xf32> -> vector<16x128xf32>
    %329 = arith.truncf %325 : vector<2x8x32xf32> to vector<2x8x32xbf16>
    %330 = vector.shape_cast %329 : vector<2x8x32xbf16> to vector<16x32xbf16>
    %c0_108 = arith.constant 0 : index
    %c0_109 = arith.constant 0 : index
    %331 = vector.load %arg11[%c0_108, %c0_109] : memref<32x128xbf16, #tpu.memory_space<vmem>>, vector<32x128xbf16>
    %cst_110 = arith.constant dense<0.000000e+00> : vector<16x128xf32>
    %332 = tpu.matmul %330, %331, %cst_110 {dimension_numbers = #tpu.dot_dimension_numbers<[1], [0], [0], [1], [0, 0, 1, 1], [], []>} : vector<16x32xbf16>, vector<32x128xbf16>, vector<16x128xf32> -> vector<16x128xf32>
    %333 = arith.addf %328, %332 : vector<16x128xf32>
    %c0_111 = arith.constant 0 : index
    %c0_112 = arith.constant 0 : index
    %334 = vector.load %arg12[%c0_111, %c0_112] : memref<1x128xf32, #tpu.memory_space<vmem>>, vector<1x128xf32>
    %335 = vector.broadcast %334 : vector<1x128xf32> to vector<16x128xf32>
    %336 = arith.addf %333, %335 : vector<16x128xf32>
    %337 = vector.shape_cast %336 : vector<16x128xf32> to vector<2x8x128xf32>
    %cst_113 = arith.constant dense<0xFF800000> : vector<2x8xf32>
    %338 = vector.multi_reduction <maximumf>, %337, %cst_113 [2] : vector<2x8x128xf32> to vector<2x8xf32>
    %339 = vector.shape_cast %338 : vector<2x8xf32> to vector<2x8x1xf32>
    %340 = vector.broadcast %339 : vector<2x8x1xf32> to vector<2x8x128xf32>
    %341 = arith.subf %337, %340 : vector<2x8x128xf32>
    %342 = math.exp %341 : vector<2x8x128xf32>
    %cst_114 = arith.constant dense<0.000000e+00> : vector<2x8xf32>
    %343 = vector.multi_reduction <add>, %342, %cst_114 [2] : vector<2x8x128xf32> to vector<2x8xf32>
    %344 = vector.shape_cast %343 : vector<2x8xf32> to vector<2x8x1xf32>
    %345 = math.log %344 : vector<2x8x1xf32>
    %346 = vector.broadcast %345 : vector<2x8x1xf32> to vector<2x8x128xf32>
    %347 = arith.subf %341, %346 : vector<2x8x128xf32>
    %c0_115 = arith.constant 0 : index
    %c0_116 = arith.constant 0 : index
    %c0_117 = arith.constant 0 : index
    %348 = vector.load %arg13[%c0_115, %c0_116, %c0_117] : memref<2x8x128xf32, #tpu.memory_space<vmem>>, vector<2x8x128xf32>
    tpu.vector_store %arg13[%c0_115, %c0_116, %c0_117], %347 {strides = array<i32>} : memref<2x8x128xf32, #tpu.memory_space<vmem>>, vector<2x8x128xf32>,
    %c0_118 = arith.constant 0 : index
    %c0_119 = arith.constant 0 : index
    %c0_120 = arith.constant 0 : index
    %349 = vector.load %arg15[%c0_118, %c0_119, %c0_120] : memref<2x8x128xf32, #tpu.memory_space<vmem>>, vector<2x8x128xf32>
    tpu.vector_store %arg15[%c0_118, %c0_119, %c0_120], %323 {strides = array<i32>} : memref<2x8x128xf32, #tpu.memory_space<vmem>>, vector<2x8x128xf32>,
    return
  }
  func.func @transform_0(%arg0: i32) -> (i32, i32, i32) {
    %c0_i32 = arith.constant 0 : i32
    %c0_i32_0 = arith.constant 0 : i32
    %c0_i32_1 = arith.constant 0 : i32
    return %c0_i32, %arg0, %c0_i32_0 : i32, i32, i32
  }
  func.func @transform_1(%arg0: i32) -> (i32, i32) {
    %c0_i32 = arith.constant 0 : i32
    %c0_i32_0 = arith.constant 0 : i32
    return %arg0, %c0_i32 : i32, i32
  }
  func.func @transform_2(%arg0: i32) -> (i32, i32, i32) {
    %c0_i32 = arith.constant 0 : i32
    %c0_i32_0 = arith.constant 0 : i32
    %c0_i32_1 = arith.constant 0 : i32
    return %arg0, %c0_i32, %c0_i32_0 : i32, i32, i32
  }
  func.func @transform_3(%arg0: i32) -> (i32, i32) {
    %c0_i32 = arith.constant 0 : i32
    %c0_i32_0 = arith.constant 0 : i32
    %c0_i32_1 = arith.constant 0 : i32
    return %c0_i32, %c0_i32_0 : i32, i32
  }
  func.func @transform_4(%arg0: i32) -> (i32, i32) {
    %c0_i32 = arith.constant 0 : i32
    %c0_i32_0 = arith.constant 0 : i32
    %c0_i32_1 = arith.constant 0 : i32
    return %c0_i32, %c0_i32_0 : i32, i32
  }
  func.func @transform_5(%arg0: i32) -> (i32, i32) {
    %c0_i32 = arith.constant 0 : i32
    %c0_i32_0 = arith.constant 0 : i32
    %c0_i32_1 = arith.constant 0 : i32
    return %c0_i32, %c0_i32_0 : i32, i32
  }
  func.func @transform_6(%arg0: i32) -> (i32, i32) {
    %c0_i32 = arith.constant 0 : i32
    %c0_i32_0 = arith.constant 0 : i32
    %c0_i32_1 = arith.constant 0 : i32
    return %c0_i32, %c0_i32_0 : i32, i32
  }
  func.func @transform_7(%arg0: i32) -> (i32, i32) {
    %c0_i32 = arith.constant 0 : i32
    %c0_i32_0 = arith.constant 0 : i32
    %c0_i32_1 = arith.constant 0 : i32
    return %c0_i32, %c0_i32_0 : i32, i32
  }
  func.func @transform_8(%arg0: i32) -> (i32, i32) {
    %c0_i32 = arith.constant 0 : i32
    %c0_i32_0 = arith.constant 0 : i32
    %c0_i32_1 = arith.constant 0 : i32
    return %c0_i32, %c0_i32_0 : i32, i32
  }
  func.func @transform_9(%arg0: i32) -> (i32, i32) {
    %c0_i32 = arith.constant 0 : i32
    %c0_i32_0 = arith.constant 0 : i32
    %c0_i32_1 = arith.constant 0 : i32
    return %c0_i32, %c0_i32_0 : i32, i32
  }
  func.func @transform_10(%arg0: i32) -> (i32, i32) {
    %c0_i32 = arith.constant 0 : i32
    %c0_i32_0 = arith.constant 0 : i32
    %c0_i32_1 = arith.constant 0 : i32
    return %c0_i32, %c0_i32_0 : i32, i32
  }
  func.func @transform_11(%arg0: i32) -> (i32, i32) {
    %c0_i32 = arith.constant 0 : i32
    %c0_i32_0 = arith.constant 0 : i32
    %c0_i32_1 = arith.constant 0 : i32
    return %c0_i32, %c0_i32_0 : i32, i32
  }
  func.func @transform_12(%arg0: i32) -> (i32, i32, i32) {
    %c0_i32 = arith.constant 0 : i32
    %c0_i32_0 = arith.constant 0 : i32
    %c0_i32_1 = arith.constant 0 : i32
    return %arg0, %c0_i32, %c0_i32_0 : i32, i32, i32
  }
  func.func @transform_13(%arg0: i32) -> (i32, i32) {
    %c0_i32 = arith.constant 0 : i32
    %c0_i32_0 = arith.constant 0 : i32
    return %arg0, %c0_i32 : i32, i32
  }
  func.func @transform_14(%arg0: i32) -> (i32, i32, i32) {
    %c0_i32 = arith.constant 0 : i32
    %c0_i32_0 = arith.constant 0 : i32
    %c0_i32_1 = arith.constant 0 : i32
    return %arg0, %c0_i32, %c0_i32_0 : i32, i32, i32
  }
}

module attributes {stable_mosaic.version = 11 : i64} {
  func.func @decoder_attn_kernel(%arg0: i32, %arg1: memref<8x2x32xbf16, #tpu.memory_space<vmem>>, %arg2: memref<2x32xf32, #tpu.memory_space<vmem>>, %arg3: memref<2x128x32xbf16, #tpu.memory_space<vmem>>, %arg4: memref<1x128xf32, #tpu.memory_space<vmem>>, %arg5: memref<32x96xbf16, #tpu.memory_space<vmem>>, %arg6: memref<1x96xf32, #tpu.memory_space<vmem>>, %arg7: memref<32x96xbf16, #tpu.memory_space<vmem>>, %arg8: memref<1x96xf32, #tpu.memory_space<vmem>>, %arg9: memref<32x32xbf16, #tpu.memory_space<vmem>>, %arg10: memref<32x128xbf16, #tpu.memory_space<vmem>>, %arg11: memref<32x128xbf16, #tpu.memory_space<vmem>>, %arg12: memref<1x128xf32, #tpu.memory_space<vmem>>, %arg13: memref<2x8x128xf32, #tpu.memory_space<vmem>>, %arg14: memref<2x32xf32, #tpu.memory_space<vmem>>, %arg15: memref<2x8x128xf32, #tpu.memory_space<vmem>>, %arg16: memref<8x2x96xf32, #tpu.memory_space<vmem>>, %arg17: memref<8x2x32xbf16, #tpu.memory_space<vmem>>) attributes {dimension_semantics = [#tpu.dimension_semantics<parallel>], iteration_bounds = array<i64: 1>, scalar_prefetch = 0 : i64, scratch_operands = 2 : i64, tpu.core_type = #tpu.core_type<tc>, window_params = [{transform_indices = @transform_0, window_bounds = array<i64: 8, 2, 32>}, {transform_indices = @transform_1, window_bounds = array<i64: 2, 32>}, {transform_indices = @transform_2, window_bounds = array<i64: 2, 128, 32>}, {pipeline_mode = #tpu.pipeline_mode<synchronous>, transform_indices = @transform_3, window_bounds = array<i64: 1, 128>}, {pipeline_mode = #tpu.pipeline_mode<synchronous>, transform_indices = @transform_4, window_bounds = array<i64: 32, 96>}, {pipeline_mode = #tpu.pipeline_mode<synchronous>, transform_indices = @transform_5, window_bounds = array<i64: 1, 96>}, {pipeline_mode = #tpu.pipeline_mode<synchronous>, transform_indices = @transform_6, window_bounds = array<i64: 32, 96>}, {pipeline_mode = #tpu.pipeline_mode<synchronous>, transform_indices = @transform_7, window_bounds = array<i64: 1, 96>}, {pipeline_mode = #tpu.pipeline_mode<synchronous>, transform_indices = @transform_8, window_bounds = array<i64: 32, 32>}, {pipeline_mode = #tpu.pipeline_mode<synchronous>, transform_indices = @transform_9, window_bounds = array<i64: 32, 128>}, {pipeline_mode = #tpu.pipeline_mode<synchronous>, transform_indices = @transform_10, window_bounds = array<i64: 32, 128>}, {pipeline_mode = #tpu.pipeline_mode<synchronous>, transform_indices = @transform_11, window_bounds = array<i64: 1, 128>}, {transform_indices = @transform_12, window_bounds = array<i64: 2, 8, 128>}, {transform_indices = @transform_13, window_bounds = array<i64: 2, 32>}, {transform_indices = @transform_14, window_bounds = array<i64: 2, 8, 128>}]} {
    %c0 = arith.constant 0 : index
    %c0_0 = arith.constant 0 : index
    %c0_1 = arith.constant 0 : index
    %0 = vector.load %arg1[%c0, %c0_0, %c0_1] : memref<8x2x32xbf16, #tpu.memory_space<vmem>>, vector<8x2x32xbf16>
    %1 = vector.shape_cast %0 : vector<8x2x32xbf16> to vector<16x32xbf16>
    %c0_2 = arith.constant 0 : index
    %c0_3 = arith.constant 0 : index
    %2 = vector.load %arg5[%c0_2, %c0_3] : memref<32x96xbf16, #tpu.memory_space<vmem>>, vector<32x96xbf16>
    %cst = arith.constant dense<0.000000e+00> : vector<16x96xf32>
    %3 = tpu.matmul %1, %2, %cst {dimension_numbers = #tpu.dot_dimension_numbers<[1], [0], [0], [1], [0, 0, 1, 1], [], []>} : vector<16x32xbf16>, vector<32x96xbf16>, vector<16x96xf32> -> vector<16x96xf32>
    %c0_4 = arith.constant 0 : index
    %c0_5 = arith.constant 0 : index
    %4 = vector.load %arg6[%c0_4, %c0_5] : memref<1x96xf32, #tpu.memory_space<vmem>>, vector<1x96xf32>
    %5 = vector.broadcast %4 : vector<1x96xf32> to vector<16x96xf32>
    %6 = arith.addf %3, %5 : vector<16x96xf32>
    %7 = vector.shape_cast %6 : vector<16x96xf32> to vector<8x2x96xf32>
    %c0_6 = arith.constant 0 : index
    %c0_7 = arith.constant 0 : index
    %c0_8 = arith.constant 0 : index
    %8 = vector.load %arg16[%c0_6, %c0_7, %c0_8] : memref<8x2x96xf32, #tpu.memory_space<vmem>>, vector<8x2x96xf32>
    tpu.vector_store %arg16[%c0_6, %c0_7, %c0_8], %7 {strides = array<i32>} : memref<8x2x96xf32, #tpu.memory_space<vmem>>, vector<8x2x96xf32>,
    %c0_9 = arith.constant 0 : index
    %c0_10 = arith.constant 0 : index
    %9 = vector.load %arg7[%c0_9, %c0_10] : memref<32x96xbf16, #tpu.memory_space<vmem>>, vector<32x96xbf16>
    %c0_11 = arith.constant 0 : index
    %c0_12 = arith.constant 0 : index
    %10 = vector.load %arg8[%c0_11, %c0_12] : memref<1x96xf32, #tpu.memory_space<vmem>>, vector<1x96xf32>
    %c0_13 = arith.constant 0 : index
    %c0_14 = arith.constant 0 : index
    %11 = vector.load %arg2[%c0_13, %c0_14] : memref<2x32xf32, #tpu.memory_space<vmem>>, vector<2x32xf32>
    %c0_15 = arith.constant 0 : index
    %c0_16 = arith.constant 0 : index
    %c0_17 = arith.constant 0 : index
    %12 = vector.load %arg16[%c0_15, %c0_16, %c0_17] : memref<8x2x96xf32, #tpu.memory_space<vmem>>, vector<1x2x96xf32>
    %13 = vector.shape_cast %12 : vector<1x2x96xf32> to vector<2x96xf32>
    %14 = arith.truncf %11 : vector<2x32xf32> to vector<2x32xbf16>
    %cst_18 = arith.constant dense<0.000000e+00> : vector<2x96xf32>
    %15 = tpu.matmul %14, %9, %cst_18 {dimension_numbers = #tpu.dot_dimension_numbers<[1], [0], [0], [1], [0, 0, 1, 1], [], []>} : vector<2x32xbf16>, vector<32x96xbf16>, vector<2x96xf32> -> vector<2x96xf32>
    %16 = vector.broadcast %10 : vector<1x96xf32> to vector<2x96xf32>
    %17 = arith.addf %15, %16 : vector<2x96xf32>
    %18 = vector.extract_strided_slice %13 {offsets = [0, 0], sizes = [2, 32], strides = [1, 1]} : vector<2x96xf32> to vector<2x32xf32>
    %19 = vector.extract_strided_slice %17 {offsets = [0, 0], sizes = [2, 32], strides = [1, 1]} : vector<2x96xf32> to vector<2x32xf32>
    %20 = arith.addf %18, %19 : vector<2x32xf32>
    %21 = arith.negf %20 : vector<2x32xf32>
    %22 = math.exp %21 : vector<2x32xf32>
    %cst_19 = arith.constant 1.000000e+00 : f32
    %23 = vector.broadcast %cst_19 : f32 to vector<2x32xf32>
    %24 = arith.addf %23, %22 : vector<2x32xf32>
    %25 = arith.divf %23, %24 : vector<2x32xf32>
    %26 = vector.extract_strided_slice %13 {offsets = [0, 32], sizes = [2, 32], strides = [1, 1]} : vector<2x96xf32> to vector<2x32xf32>
    %27 = vector.extract_strided_slice %17 {offsets = [0, 32], sizes = [2, 32], strides = [1, 1]} : vector<2x96xf32> to vector<2x32xf32>
    %28 = arith.addf %26, %27 : vector<2x32xf32>
    %29 = arith.negf %28 : vector<2x32xf32>
    %30 = math.exp %29 : vector<2x32xf32>
    %cst_20 = arith.constant 1.000000e+00 : f32
    %31 = vector.broadcast %cst_20 : f32 to vector<2x32xf32>
    %32 = arith.addf %31, %30 : vector<2x32xf32>
    %33 = arith.divf %31, %32 : vector<2x32xf32>
    %34 = vector.extract_strided_slice %13 {offsets = [0, 64], sizes = [2, 32], strides = [1, 1]} : vector<2x96xf32> to vector<2x32xf32>
    %35 = vector.extract_strided_slice %17 {offsets = [0, 64], sizes = [2, 32], strides = [1, 1]} : vector<2x96xf32> to vector<2x32xf32>
    %36 = arith.mulf %25, %35 : vector<2x32xf32>
    %37 = arith.addf %34, %36 : vector<2x32xf32>
    %38 = math.tanh %37 : vector<2x32xf32>
    %cst_21 = arith.constant 1.000000e+00 : f32
    %39 = vector.broadcast %cst_21 : f32 to vector<2x32xf32>
    %40 = arith.subf %39, %33 : vector<2x32xf32>
    %41 = arith.mulf %40, %38 : vector<2x32xf32>
    %42 = arith.mulf %33, %11 : vector<2x32xf32>
    %43 = arith.addf %41, %42 : vector<2x32xf32>
    %44 = arith.truncf %43 : vector<2x32xf32> to vector<2x32xbf16>
    %c0_22 = arith.constant 0 : index
    %c0_23 = arith.constant 0 : index
    %c0_24 = arith.constant 0 : index
    %45 = vector.load %arg17[%c0_22, %c0_23, %c0_24] : memref<8x2x32xbf16, #tpu.memory_space<vmem>>, vector<1x2x32xbf16>
    %46 = vector.shape_cast %45 : vector<1x2x32xbf16> to vector<2x32xbf16>
    %47 = vector.shape_cast %44 : vector<2x32xbf16> to vector<1x2x32xbf16>
    tpu.vector_store %arg17[%c0_22, %c0_23, %c0_24], %47 {strides = array<i32>} : memref<8x2x32xbf16, #tpu.memory_space<vmem>>, vector<1x2x32xbf16>,
    %c1 = arith.constant 1 : index
    %c0_25 = arith.constant 0 : index
    %c0_26 = arith.constant 0 : index
    %48 = vector.load %arg16[%c1, %c0_25, %c0_26] : memref<8x2x96xf32, #tpu.memory_space<vmem>>, vector<1x2x96xf32>
    %49 = vector.shape_cast %48 : vector<1x2x96xf32> to vector<2x96xf32>
    %50 = arith.truncf %43 : vector<2x32xf32> to vector<2x32xbf16>
    %cst_27 = arith.constant dense<0.000000e+00> : vector<2x96xf32>
    %51 = tpu.matmul %50, %9, %cst_27 {dimension_numbers = #tpu.dot_dimension_numbers<[1], [0], [0], [1], [0, 0, 1, 1], [], []>} : vector<2x32xbf16>, vector<32x96xbf16>, vector<2x96xf32> -> vector<2x96xf32>
    %52 = vector.broadcast %10 : vector<1x96xf32> to vector<2x96xf32>
    %53 = arith.addf %51, %52 : vector<2x96xf32>
    %54 = vector.extract_strided_slice %49 {offsets = [0, 0], sizes = [2, 32], strides = [1, 1]} : vector<2x96xf32> to vector<2x32xf32>
    %55 = vector.extract_strided_slice %53 {offsets = [0, 0], sizes = [2, 32], strides = [1, 1]} : vector<2x96xf32> to vector<2x32xf32>
    %56 = arith.addf %54, %55 : vector<2x32xf32>
    %57 = arith.negf %56 : vector<2x32xf32>
    %58 = math.exp %57 : vector<2x32xf32>
    %cst_28 = arith.constant 1.000000e+00 : f32
    %59 = vector.broadcast %cst_28 : f32 to vector<2x32xf32>
    %60 = arith.addf %59, %58 : vector<2x32xf32>
    %61 = arith.divf %59, %60 : vector<2x32xf32>
    %62 = vector.extract_strided_slice %49 {offsets = [0, 32], sizes = [2, 32], strides = [1, 1]} : vector<2x96xf32> to vector<2x32xf32>
    %63 = vector.extract_strided_slice %53 {offsets = [0, 32], sizes = [2, 32], strides = [1, 1]} : vector<2x96xf32> to vector<2x32xf32>
    %64 = arith.addf %62, %63 : vector<2x32xf32>
    %65 = arith.negf %64 : vector<2x32xf32>
    %66 = math.exp %65 : vector<2x32xf32>
    %cst_29 = arith.constant 1.000000e+00 : f32
    %67 = vector.broadcast %cst_29 : f32 to vector<2x32xf32>
    %68 = arith.addf %67, %66 : vector<2x32xf32>
    %69 = arith.divf %67, %68 : vector<2x32xf32>
    %70 = vector.extract_strided_slice %49 {offsets = [0, 64], sizes = [2, 32], strides = [1, 1]} : vector<2x96xf32> to vector<2x32xf32>
    %71 = vector.extract_strided_slice %53 {offsets = [0, 64], sizes = [2, 32], strides = [1, 1]} : vector<2x96xf32> to vector<2x32xf32>
    %72 = arith.mulf %61, %71 : vector<2x32xf32>
    %73 = arith.addf %70, %72 : vector<2x32xf32>
    %74 = math.tanh %73 : vector<2x32xf32>
    %cst_30 = arith.constant 1.000000e+00 : f32
    %75 = vector.broadcast %cst_30 : f32 to vector<2x32xf32>
    %76 = arith.subf %75, %69 : vector<2x32xf32>
    %77 = arith.mulf %76, %74 : vector<2x32xf32>
    %78 = arith.mulf %69, %43 : vector<2x32xf32>
    %79 = arith.addf %77, %78 : vector<2x32xf32>
    %80 = arith.truncf %79 : vector<2x32xf32> to vector<2x32xbf16>
    %c1_31 = arith.constant 1 : index
    %c0_32 = arith.constant 0 : index
    %c0_33 = arith.constant 0 : index
    %81 = vector.load %arg17[%c1_31, %c0_32, %c0_33] : memref<8x2x32xbf16, #tpu.memory_space<vmem>>, vector<1x2x32xbf16>
    %82 = vector.shape_cast %81 : vector<1x2x32xbf16> to vector<2x32xbf16>
    %83 = vector.shape_cast %80 : vector<2x32xbf16> to vector<1x2x32xbf16>
    tpu.vector_store %arg17[%c1_31, %c0_32, %c0_33], %83 {strides = array<i32>} : memref<8x2x32xbf16, #tpu.memory_space<vmem>>, vector<1x2x32xbf16>,
    %c2 = arith.constant 2 : index
    %c0_34 = arith.constant 0 : index
    %c0_35 = arith.constant 0 : index
    %84 = vector.load %arg16[%c2, %c0_34, %c0_35] : memref<8x2x96xf32, #tpu.memory_space<vmem>>, vector<1x2x96xf32>
    %85 = vector.shape_cast %84 : vector<1x2x96xf32> to vector<2x96xf32>
    %86 = arith.truncf %79 : vector<2x32xf32> to vector<2x32xbf16>
    %cst_36 = arith.constant dense<0.000000e+00> : vector<2x96xf32>
    %87 = tpu.matmul %86, %9, %cst_36 {dimension_numbers = #tpu.dot_dimension_numbers<[1], [0], [0], [1], [0, 0, 1, 1], [], []>} : vector<2x32xbf16>, vector<32x96xbf16>, vector<2x96xf32> -> vector<2x96xf32>
    %88 = vector.broadcast %10 : vector<1x96xf32> to vector<2x96xf32>
    %89 = arith.addf %87, %88 : vector<2x96xf32>
    %90 = vector.extract_strided_slice %85 {offsets = [0, 0], sizes = [2, 32], strides = [1, 1]} : vector<2x96xf32> to vector<2x32xf32>
    %91 = vector.extract_strided_slice %89 {offsets = [0, 0], sizes = [2, 32], strides = [1, 1]} : vector<2x96xf32> to vector<2x32xf32>
    %92 = arith.addf %90, %91 : vector<2x32xf32>
    %93 = arith.negf %92 : vector<2x32xf32>
    %94 = math.exp %93 : vector<2x32xf32>
    %cst_37 = arith.constant 1.000000e+00 : f32
    %95 = vector.broadcast %cst_37 : f32 to vector<2x32xf32>
    %96 = arith.addf %95, %94 : vector<2x32xf32>
    %97 = arith.divf %95, %96 : vector<2x32xf32>
    %98 = vector.extract_strided_slice %85 {offsets = [0, 32], sizes = [2, 32], strides = [1, 1]} : vector<2x96xf32> to vector<2x32xf32>
    %99 = vector.extract_strided_slice %89 {offsets = [0, 32], sizes = [2, 32], strides = [1, 1]} : vector<2x96xf32> to vector<2x32xf32>
    %100 = arith.addf %98, %99 : vector<2x32xf32>
    %101 = arith.negf %100 : vector<2x32xf32>
    %102 = math.exp %101 : vector<2x32xf32>
    %cst_38 = arith.constant 1.000000e+00 : f32
    %103 = vector.broadcast %cst_38 : f32 to vector<2x32xf32>
    %104 = arith.addf %103, %102 : vector<2x32xf32>
    %105 = arith.divf %103, %104 : vector<2x32xf32>
    %106 = vector.extract_strided_slice %85 {offsets = [0, 64], sizes = [2, 32], strides = [1, 1]} : vector<2x96xf32> to vector<2x32xf32>
    %107 = vector.extract_strided_slice %89 {offsets = [0, 64], sizes = [2, 32], strides = [1, 1]} : vector<2x96xf32> to vector<2x32xf32>
    %108 = arith.mulf %97, %107 : vector<2x32xf32>
    %109 = arith.addf %106, %108 : vector<2x32xf32>
    %110 = math.tanh %109 : vector<2x32xf32>
    %cst_39 = arith.constant 1.000000e+00 : f32
    %111 = vector.broadcast %cst_39 : f32 to vector<2x32xf32>
    %112 = arith.subf %111, %105 : vector<2x32xf32>
    %113 = arith.mulf %112, %110 : vector<2x32xf32>
    %114 = arith.mulf %105, %79 : vector<2x32xf32>
    %115 = arith.addf %113, %114 : vector<2x32xf32>
    %116 = arith.truncf %115 : vector<2x32xf32> to vector<2x32xbf16>
    %c2_40 = arith.constant 2 : index
    %c0_41 = arith.constant 0 : index
    %c0_42 = arith.constant 0 : index
    %117 = vector.load %arg17[%c2_40, %c0_41, %c0_42] : memref<8x2x32xbf16, #tpu.memory_space<vmem>>, vector<1x2x32xbf16>
    %118 = vector.shape_cast %117 : vector<1x2x32xbf16> to vector<2x32xbf16>
    %119 = vector.shape_cast %116 : vector<2x32xbf16> to vector<1x2x32xbf16>
    tpu.vector_store %arg17[%c2_40, %c0_41, %c0_42], %119 {strides = array<i32>} : memref<8x2x32xbf16, #tpu.memory_space<vmem>>, vector<1x2x32xbf16>,
    %c3 = arith.constant 3 : index
    %c0_43 = arith.constant 0 : index
    %c0_44 = arith.constant 0 : index
    %120 = vector.load %arg16[%c3, %c0_43, %c0_44] : memref<8x2x96xf32, #tpu.memory_space<vmem>>, vector<1x2x96xf32>
    %121 = vector.shape_cast %120 : vector<1x2x96xf32> to vector<2x96xf32>
    %122 = arith.truncf %115 : vector<2x32xf32> to vector<2x32xbf16>
    %cst_45 = arith.constant dense<0.000000e+00> : vector<2x96xf32>
    %123 = tpu.matmul %122, %9, %cst_45 {dimension_numbers = #tpu.dot_dimension_numbers<[1], [0], [0], [1], [0, 0, 1, 1], [], []>} : vector<2x32xbf16>, vector<32x96xbf16>, vector<2x96xf32> -> vector<2x96xf32>
    %124 = vector.broadcast %10 : vector<1x96xf32> to vector<2x96xf32>
    %125 = arith.addf %123, %124 : vector<2x96xf32>
    %126 = vector.extract_strided_slice %121 {offsets = [0, 0], sizes = [2, 32], strides = [1, 1]} : vector<2x96xf32> to vector<2x32xf32>
    %127 = vector.extract_strided_slice %125 {offsets = [0, 0], sizes = [2, 32], strides = [1, 1]} : vector<2x96xf32> to vector<2x32xf32>
    %128 = arith.addf %126, %127 : vector<2x32xf32>
    %129 = arith.negf %128 : vector<2x32xf32>
    %130 = math.exp %129 : vector<2x32xf32>
    %cst_46 = arith.constant 1.000000e+00 : f32
    %131 = vector.broadcast %cst_46 : f32 to vector<2x32xf32>
    %132 = arith.addf %131, %130 : vector<2x32xf32>
    %133 = arith.divf %131, %132 : vector<2x32xf32>
    %134 = vector.extract_strided_slice %121 {offsets = [0, 32], sizes = [2, 32], strides = [1, 1]} : vector<2x96xf32> to vector<2x32xf32>
    %135 = vector.extract_strided_slice %125 {offsets = [0, 32], sizes = [2, 32], strides = [1, 1]} : vector<2x96xf32> to vector<2x32xf32>
    %136 = arith.addf %134, %135 : vector<2x32xf32>
    %137 = arith.negf %136 : vector<2x32xf32>
    %138 = math.exp %137 : vector<2x32xf32>
    %cst_47 = arith.constant 1.000000e+00 : f32
    %139 = vector.broadcast %cst_47 : f32 to vector<2x32xf32>
    %140 = arith.addf %139, %138 : vector<2x32xf32>
    %141 = arith.divf %139, %140 : vector<2x32xf32>
    %142 = vector.extract_strided_slice %121 {offsets = [0, 64], sizes = [2, 32], strides = [1, 1]} : vector<2x96xf32> to vector<2x32xf32>
    %143 = vector.extract_strided_slice %125 {offsets = [0, 64], sizes = [2, 32], strides = [1, 1]} : vector<2x96xf32> to vector<2x32xf32>
    %144 = arith.mulf %133, %143 : vector<2x32xf32>
    %145 = arith.addf %142, %144 : vector<2x32xf32>
    %146 = math.tanh %145 : vector<2x32xf32>
    %cst_48 = arith.constant 1.000000e+00 : f32
    %147 = vector.broadcast %cst_48 : f32 to vector<2x32xf32>
    %148 = arith.subf %147, %141 : vector<2x32xf32>
    %149 = arith.mulf %148, %146 : vector<2x32xf32>
    %150 = arith.mulf %141, %115 : vector<2x32xf32>
    %151 = arith.addf %149, %150 : vector<2x32xf32>
    %152 = arith.truncf %151 : vector<2x32xf32> to vector<2x32xbf16>
    %c3_49 = arith.constant 3 : index
    %c0_50 = arith.constant 0 : index
    %c0_51 = arith.constant 0 : index
    %153 = vector.load %arg17[%c3_49, %c0_50, %c0_51] : memref<8x2x32xbf16, #tpu.memory_space<vmem>>, vector<1x2x32xbf16>
    %154 = vector.shape_cast %153 : vector<1x2x32xbf16> to vector<2x32xbf16>
    %155 = vector.shape_cast %152 : vector<2x32xbf16> to vector<1x2x32xbf16>
    tpu.vector_store %arg17[%c3_49, %c0_50, %c0_51], %155 {strides = array<i32>} : memref<8x2x32xbf16, #tpu.memory_space<vmem>>, vector<1x2x32xbf16>,
    %c4 = arith.constant 4 : index
    %c0_52 = arith.constant 0 : index
    %c0_53 = arith.constant 0 : index
    %156 = vector.load %arg16[%c4, %c0_52, %c0_53] : memref<8x2x96xf32, #tpu.memory_space<vmem>>, vector<1x2x96xf32>
    %157 = vector.shape_cast %156 : vector<1x2x96xf32> to vector<2x96xf32>
    %158 = arith.truncf %151 : vector<2x32xf32> to vector<2x32xbf16>
    %cst_54 = arith.constant dense<0.000000e+00> : vector<2x96xf32>
    %159 = tpu.matmul %158, %9, %cst_54 {dimension_numbers = #tpu.dot_dimension_numbers<[1], [0], [0], [1], [0, 0, 1, 1], [], []>} : vector<2x32xbf16>, vector<32x96xbf16>, vector<2x96xf32> -> vector<2x96xf32>
    %160 = vector.broadcast %10 : vector<1x96xf32> to vector<2x96xf32>
    %161 = arith.addf %159, %160 : vector<2x96xf32>
    %162 = vector.extract_strided_slice %157 {offsets = [0, 0], sizes = [2, 32], strides = [1, 1]} : vector<2x96xf32> to vector<2x32xf32>
    %163 = vector.extract_strided_slice %161 {offsets = [0, 0], sizes = [2, 32], strides = [1, 1]} : vector<2x96xf32> to vector<2x32xf32>
    %164 = arith.addf %162, %163 : vector<2x32xf32>
    %165 = arith.negf %164 : vector<2x32xf32>
    %166 = math.exp %165 : vector<2x32xf32>
    %cst_55 = arith.constant 1.000000e+00 : f32
    %167 = vector.broadcast %cst_55 : f32 to vector<2x32xf32>
    %168 = arith.addf %167, %166 : vector<2x32xf32>
    %169 = arith.divf %167, %168 : vector<2x32xf32>
    %170 = vector.extract_strided_slice %157 {offsets = [0, 32], sizes = [2, 32], strides = [1, 1]} : vector<2x96xf32> to vector<2x32xf32>
    %171 = vector.extract_strided_slice %161 {offsets = [0, 32], sizes = [2, 32], strides = [1, 1]} : vector<2x96xf32> to vector<2x32xf32>
    %172 = arith.addf %170, %171 : vector<2x32xf32>
    %173 = arith.negf %172 : vector<2x32xf32>
    %174 = math.exp %173 : vector<2x32xf32>
    %cst_56 = arith.constant 1.000000e+00 : f32
    %175 = vector.broadcast %cst_56 : f32 to vector<2x32xf32>
    %176 = arith.addf %175, %174 : vector<2x32xf32>
    %177 = arith.divf %175, %176 : vector<2x32xf32>
    %178 = vector.extract_strided_slice %157 {offsets = [0, 64], sizes = [2, 32], strides = [1, 1]} : vector<2x96xf32> to vector<2x32xf32>
    %179 = vector.extract_strided_slice %161 {offsets = [0, 64], sizes = [2, 32], strides = [1, 1]} : vector<2x96xf32> to vector<2x32xf32>
    %180 = arith.mulf %169, %179 : vector<2x32xf32>
    %181 = arith.addf %178, %180 : vector<2x32xf32>
    %182 = math.tanh %181 : vector<2x32xf32>
    %cst_57 = arith.constant 1.000000e+00 : f32
    %183 = vector.broadcast %cst_57 : f32 to vector<2x32xf32>
    %184 = arith.subf %183, %177 : vector<2x32xf32>
    %185 = arith.mulf %184, %182 : vector<2x32xf32>
    %186 = arith.mulf %177, %151 : vector<2x32xf32>
    %187 = arith.addf %185, %186 : vector<2x32xf32>
    %188 = arith.truncf %187 : vector<2x32xf32> to vector<2x32xbf16>
    %c4_58 = arith.constant 4 : index
    %c0_59 = arith.constant 0 : index
    %c0_60 = arith.constant 0 : index
    %189 = vector.load %arg17[%c4_58, %c0_59, %c0_60] : memref<8x2x32xbf16, #tpu.memory_space<vmem>>, vector<1x2x32xbf16>
    %190 = vector.shape_cast %189 : vector<1x2x32xbf16> to vector<2x32xbf16>
    %191 = vector.shape_cast %188 : vector<2x32xbf16> to vector<1x2x32xbf16>
    tpu.vector_store %arg17[%c4_58, %c0_59, %c0_60], %191 {strides = array<i32>} : memref<8x2x32xbf16, #tpu.memory_space<vmem>>, vector<1x2x32xbf16>,
    %c5 = arith.constant 5 : index
    %c0_61 = arith.constant 0 : index
    %c0_62 = arith.constant 0 : index
    %192 = vector.load %arg16[%c5, %c0_61, %c0_62] : memref<8x2x96xf32, #tpu.memory_space<vmem>>, vector<1x2x96xf32>
    %193 = vector.shape_cast %192 : vector<1x2x96xf32> to vector<2x96xf32>
    %194 = arith.truncf %187 : vector<2x32xf32> to vector<2x32xbf16>
    %cst_63 = arith.constant dense<0.000000e+00> : vector<2x96xf32>
    %195 = tpu.matmul %194, %9, %cst_63 {dimension_numbers = #tpu.dot_dimension_numbers<[1], [0], [0], [1], [0, 0, 1, 1], [], []>} : vector<2x32xbf16>, vector<32x96xbf16>, vector<2x96xf32> -> vector<2x96xf32>
    %196 = vector.broadcast %10 : vector<1x96xf32> to vector<2x96xf32>
    %197 = arith.addf %195, %196 : vector<2x96xf32>
    %198 = vector.extract_strided_slice %193 {offsets = [0, 0], sizes = [2, 32], strides = [1, 1]} : vector<2x96xf32> to vector<2x32xf32>
    %199 = vector.extract_strided_slice %197 {offsets = [0, 0], sizes = [2, 32], strides = [1, 1]} : vector<2x96xf32> to vector<2x32xf32>
    %200 = arith.addf %198, %199 : vector<2x32xf32>
    %201 = arith.negf %200 : vector<2x32xf32>
    %202 = math.exp %201 : vector<2x32xf32>
    %cst_64 = arith.constant 1.000000e+00 : f32
    %203 = vector.broadcast %cst_64 : f32 to vector<2x32xf32>
    %204 = arith.addf %203, %202 : vector<2x32xf32>
    %205 = arith.divf %203, %204 : vector<2x32xf32>
    %206 = vector.extract_strided_slice %193 {offsets = [0, 32], sizes = [2, 32], strides = [1, 1]} : vector<2x96xf32> to vector<2x32xf32>
    %207 = vector.extract_strided_slice %197 {offsets = [0, 32], sizes = [2, 32], strides = [1, 1]} : vector<2x96xf32> to vector<2x32xf32>
    %208 = arith.addf %206, %207 : vector<2x32xf32>
    %209 = arith.negf %208 : vector<2x32xf32>
    %210 = math.exp %209 : vector<2x32xf32>
    %cst_65 = arith.constant 1.000000e+00 : f32
    %211 = vector.broadcast %cst_65 : f32 to vector<2x32xf32>
    %212 = arith.addf %211, %210 : vector<2x32xf32>
    %213 = arith.divf %211, %212 : vector<2x32xf32>
    %214 = vector.extract_strided_slice %193 {offsets = [0, 64], sizes = [2, 32], strides = [1, 1]} : vector<2x96xf32> to vector<2x32xf32>
    %215 = vector.extract_strided_slice %197 {offsets = [0, 64], sizes = [2, 32], strides = [1, 1]} : vector<2x96xf32> to vector<2x32xf32>
    %216 = arith.mulf %205, %215 : vector<2x32xf32>
    %217 = arith.addf %214, %216 : vector<2x32xf32>
    %218 = math.tanh %217 : vector<2x32xf32>
    %cst_66 = arith.constant 1.000000e+00 : f32
    %219 = vector.broadcast %cst_66 : f32 to vector<2x32xf32>
    %220 = arith.subf %219, %213 : vector<2x32xf32>
    %221 = arith.mulf %220, %218 : vector<2x32xf32>
    %222 = arith.mulf %213, %187 : vector<2x32xf32>
    %223 = arith.addf %221, %222 : vector<2x32xf32>
    %224 = arith.truncf %223 : vector<2x32xf32> to vector<2x32xbf16>
    %c5_67 = arith.constant 5 : index
    %c0_68 = arith.constant 0 : index
    %c0_69 = arith.constant 0 : index
    %225 = vector.load %arg17[%c5_67, %c0_68, %c0_69] : memref<8x2x32xbf16, #tpu.memory_space<vmem>>, vector<1x2x32xbf16>
    %226 = vector.shape_cast %225 : vector<1x2x32xbf16> to vector<2x32xbf16>
    %227 = vector.shape_cast %224 : vector<2x32xbf16> to vector<1x2x32xbf16>
    tpu.vector_store %arg17[%c5_67, %c0_68, %c0_69], %227 {strides = array<i32>} : memref<8x2x32xbf16, #tpu.memory_space<vmem>>, vector<1x2x32xbf16>,
    %c6 = arith.constant 6 : index
    %c0_70 = arith.constant 0 : index
    %c0_71 = arith.constant 0 : index
    %228 = vector.load %arg16[%c6, %c0_70, %c0_71] : memref<8x2x96xf32, #tpu.memory_space<vmem>>, vector<1x2x96xf32>
    %229 = vector.shape_cast %228 : vector<1x2x96xf32> to vector<2x96xf32>
    %230 = arith.truncf %223 : vector<2x32xf32> to vector<2x32xbf16>
    %cst_72 = arith.constant dense<0.000000e+00> : vector<2x96xf32>
    %231 = tpu.matmul %230, %9, %cst_72 {dimension_numbers = #tpu.dot_dimension_numbers<[1], [0], [0], [1], [0, 0, 1, 1], [], []>} : vector<2x32xbf16>, vector<32x96xbf16>, vector<2x96xf32> -> vector<2x96xf32>
    %232 = vector.broadcast %10 : vector<1x96xf32> to vector<2x96xf32>
    %233 = arith.addf %231, %232 : vector<2x96xf32>
    %234 = vector.extract_strided_slice %229 {offsets = [0, 0], sizes = [2, 32], strides = [1, 1]} : vector<2x96xf32> to vector<2x32xf32>
    %235 = vector.extract_strided_slice %233 {offsets = [0, 0], sizes = [2, 32], strides = [1, 1]} : vector<2x96xf32> to vector<2x32xf32>
    %236 = arith.addf %234, %235 : vector<2x32xf32>
    %237 = arith.negf %236 : vector<2x32xf32>
    %238 = math.exp %237 : vector<2x32xf32>
    %cst_73 = arith.constant 1.000000e+00 : f32
    %239 = vector.broadcast %cst_73 : f32 to vector<2x32xf32>
    %240 = arith.addf %239, %238 : vector<2x32xf32>
    %241 = arith.divf %239, %240 : vector<2x32xf32>
    %242 = vector.extract_strided_slice %229 {offsets = [0, 32], sizes = [2, 32], strides = [1, 1]} : vector<2x96xf32> to vector<2x32xf32>
    %243 = vector.extract_strided_slice %233 {offsets = [0, 32], sizes = [2, 32], strides = [1, 1]} : vector<2x96xf32> to vector<2x32xf32>
    %244 = arith.addf %242, %243 : vector<2x32xf32>
    %245 = arith.negf %244 : vector<2x32xf32>
    %246 = math.exp %245 : vector<2x32xf32>
    %cst_74 = arith.constant 1.000000e+00 : f32
    %247 = vector.broadcast %cst_74 : f32 to vector<2x32xf32>
    %248 = arith.addf %247, %246 : vector<2x32xf32>
    %249 = arith.divf %247, %248 : vector<2x32xf32>
    %250 = vector.extract_strided_slice %229 {offsets = [0, 64], sizes = [2, 32], strides = [1, 1]} : vector<2x96xf32> to vector<2x32xf32>
    %251 = vector.extract_strided_slice %233 {offsets = [0, 64], sizes = [2, 32], strides = [1, 1]} : vector<2x96xf32> to vector<2x32xf32>
    %252 = arith.mulf %241, %251 : vector<2x32xf32>
    %253 = arith.addf %250, %252 : vector<2x32xf32>
    %254 = math.tanh %253 : vector<2x32xf32>
    %cst_75 = arith.constant 1.000000e+00 : f32
    %255 = vector.broadcast %cst_75 : f32 to vector<2x32xf32>
    %256 = arith.subf %255, %249 : vector<2x32xf32>
    %257 = arith.mulf %256, %254 : vector<2x32xf32>
    %258 = arith.mulf %249, %223 : vector<2x32xf32>
    %259 = arith.addf %257, %258 : vector<2x32xf32>
    %260 = arith.truncf %259 : vector<2x32xf32> to vector<2x32xbf16>
    %c6_76 = arith.constant 6 : index
    %c0_77 = arith.constant 0 : index
    %c0_78 = arith.constant 0 : index
    %261 = vector.load %arg17[%c6_76, %c0_77, %c0_78] : memref<8x2x32xbf16, #tpu.memory_space<vmem>>, vector<1x2x32xbf16>
    %262 = vector.shape_cast %261 : vector<1x2x32xbf16> to vector<2x32xbf16>
    %263 = vector.shape_cast %260 : vector<2x32xbf16> to vector<1x2x32xbf16>
    tpu.vector_store %arg17[%c6_76, %c0_77, %c0_78], %263 {strides = array<i32>} : memref<8x2x32xbf16, #tpu.memory_space<vmem>>, vector<1x2x32xbf16>,
    %c7 = arith.constant 7 : index
    %c0_79 = arith.constant 0 : index
    %c0_80 = arith.constant 0 : index
    %264 = vector.load %arg16[%c7, %c0_79, %c0_80] : memref<8x2x96xf32, #tpu.memory_space<vmem>>, vector<1x2x96xf32>
    %265 = vector.shape_cast %264 : vector<1x2x96xf32> to vector<2x96xf32>
    %266 = arith.truncf %259 : vector<2x32xf32> to vector<2x32xbf16>
    %cst_81 = arith.constant dense<0.000000e+00> : vector<2x96xf32>
    %267 = tpu.matmul %266, %9, %cst_81 {dimension_numbers = #tpu.dot_dimension_numbers<[1], [0], [0], [1], [0, 0, 1, 1], [], []>} : vector<2x32xbf16>, vector<32x96xbf16>, vector<2x96xf32> -> vector<2x96xf32>
    %268 = vector.broadcast %10 : vector<1x96xf32> to vector<2x96xf32>
    %269 = arith.addf %267, %268 : vector<2x96xf32>
    %270 = vector.extract_strided_slice %265 {offsets = [0, 0], sizes = [2, 32], strides = [1, 1]} : vector<2x96xf32> to vector<2x32xf32>
    %271 = vector.extract_strided_slice %269 {offsets = [0, 0], sizes = [2, 32], strides = [1, 1]} : vector<2x96xf32> to vector<2x32xf32>
    %272 = arith.addf %270, %271 : vector<2x32xf32>
    %273 = arith.negf %272 : vector<2x32xf32>
    %274 = math.exp %273 : vector<2x32xf32>
    %cst_82 = arith.constant 1.000000e+00 : f32
    %275 = vector.broadcast %cst_82 : f32 to vector<2x32xf32>
    %276 = arith.addf %275, %274 : vector<2x32xf32>
    %277 = arith.divf %275, %276 : vector<2x32xf32>
    %278 = vector.extract_strided_slice %265 {offsets = [0, 32], sizes = [2, 32], strides = [1, 1]} : vector<2x96xf32> to vector<2x32xf32>
    %279 = vector.extract_strided_slice %269 {offsets = [0, 32], sizes = [2, 32], strides = [1, 1]} : vector<2x96xf32> to vector<2x32xf32>
    %280 = arith.addf %278, %279 : vector<2x32xf32>
    %281 = arith.negf %280 : vector<2x32xf32>
    %282 = math.exp %281 : vector<2x32xf32>
    %cst_83 = arith.constant 1.000000e+00 : f32
    %283 = vector.broadcast %cst_83 : f32 to vector<2x32xf32>
    %284 = arith.addf %283, %282 : vector<2x32xf32>
    %285 = arith.divf %283, %284 : vector<2x32xf32>
    %286 = vector.extract_strided_slice %265 {offsets = [0, 64], sizes = [2, 32], strides = [1, 1]} : vector<2x96xf32> to vector<2x32xf32>
    %287 = vector.extract_strided_slice %269 {offsets = [0, 64], sizes = [2, 32], strides = [1, 1]} : vector<2x96xf32> to vector<2x32xf32>
    %288 = arith.mulf %277, %287 : vector<2x32xf32>
    %289 = arith.addf %286, %288 : vector<2x32xf32>
    %290 = math.tanh %289 : vector<2x32xf32>
    %cst_84 = arith.constant 1.000000e+00 : f32
    %291 = vector.broadcast %cst_84 : f32 to vector<2x32xf32>
    %292 = arith.subf %291, %285 : vector<2x32xf32>
    %293 = arith.mulf %292, %290 : vector<2x32xf32>
    %294 = arith.mulf %285, %259 : vector<2x32xf32>
    %295 = arith.addf %293, %294 : vector<2x32xf32>
    %296 = arith.truncf %295 : vector<2x32xf32> to vector<2x32xbf16>
    %c7_85 = arith.constant 7 : index
    %c0_86 = arith.constant 0 : index
    %c0_87 = arith.constant 0 : index
    %297 = vector.load %arg17[%c7_85, %c0_86, %c0_87] : memref<8x2x32xbf16, #tpu.memory_space<vmem>>, vector<1x2x32xbf16>
    %298 = vector.shape_cast %297 : vector<1x2x32xbf16> to vector<2x32xbf16>
    %299 = vector.shape_cast %296 : vector<2x32xbf16> to vector<1x2x32xbf16>
    tpu.vector_store %arg17[%c7_85, %c0_86, %c0_87], %299 {strides = array<i32>} : memref<8x2x32xbf16, #tpu.memory_space<vmem>>, vector<1x2x32xbf16>,
    %c0_88 = arith.constant 0 : index
    %c0_89 = arith.constant 0 : index
    %300 = vector.load %arg14[%c0_88, %c0_89] : memref<2x32xf32, #tpu.memory_space<vmem>>, vector<2x32xf32>
    tpu.vector_store %arg14[%c0_88, %c0_89], %295 {strides = array<i32>} : memref<2x32xf32, #tpu.memory_space<vmem>>, vector<2x32xf32>,
    %c0_90 = arith.constant 0 : index
    %c0_91 = arith.constant 0 : index
    %c0_92 = arith.constant 0 : index
    %301 = vector.load %arg17[%c0_90, %c0_91, %c0_92] : memref<8x2x32xbf16, #tpu.memory_space<vmem>>, vector<8x2x32xbf16>
    %302 = tpu.transpose %301, [1, 0, 2] : vector<8x2x32xbf16> -> vector<2x8x32xbf16>
    %c0_93 = arith.constant 0 : index
    %c0_94 = arith.constant 0 : index
    %c0_95 = arith.constant 0 : index
    %303 = vector.load %arg3[%c0_93, %c0_94, %c0_95] : memref<2x128x32xbf16, #tpu.memory_space<vmem>>, vector<2x128x32xbf16>
    %304 = vector.shape_cast %302 : vector<2x8x32xbf16> to vector<16x32xbf16>
    %c0_96 = arith.constant 0 : index
    %c0_97 = arith.constant 0 : index
    %305 = vector.load %arg9[%c0_96, %c0_97] : memref<32x32xbf16, #tpu.memory_space<vmem>>, vector<32x32xbf16>
    %cst_98 = arith.constant dense<0.000000e+00> : vector<16x32xf32>
    %306 = tpu.matmul %304, %305, %cst_98 {dimension_numbers = #tpu.dot_dimension_numbers<[1], [0], [0], [1], [0, 0, 1, 1], [], []>} : vector<16x32xbf16>, vector<32x32xbf16>, vector<16x32xf32> -> vector<16x32xf32>
    %307 = vector.shape_cast %306 : vector<16x32xf32> to vector<2x8x32xf32>
    %308 = arith.truncf %307 : vector<2x8x32xf32> to vector<2x8x32xbf16>
    "tpu.trace_start"() <{level = 10 : i32, message = "bth,bsh->bts"}> : () -> ()
    %cst_99 = arith.constant dense<0.000000e+00> : vector<2x8x128xf32>
    %309 = tpu.matmul %308, %303, %cst_99 {dimension_numbers = #tpu.dot_dimension_numbers<[2], [2], [1], [1], [0, 0, 0, 1, 1, 1], [0], [0]>} : vector<2x8x32xbf16>, vector<2x128x32xbf16>, vector<2x8x128xf32> -> vector<2x8x128xf32>
    "tpu.trace_stop"() : () -> ()
    %c0_100 = arith.constant 0 : index
    %c0_101 = arith.constant 0 : index
    %310 = vector.load %arg4[%c0_100, %c0_101] : memref<1x128xf32, #tpu.memory_space<vmem>>, vector<1x128xf32>
    %311 = vector.shape_cast %310 : vector<1x128xf32> to vector<1x1x128xf32>
    %312 = vector.broadcast %311 : vector<1x1x128xf32> to vector<2x8x128xf32>
    %313 = arith.addf %309, %312 : vector<2x8x128xf32>
    %cst_102 = arith.constant dense<0xFF800000> : vector<2x8xf32>
    %314 = vector.multi_reduction <maximumf>, %313, %cst_102 [2] : vector<2x8x128xf32> to vector<2x8xf32>
    %315 = vector.shape_cast %314 : vector<2x8xf32> to vector<2x8x1xf32>
    %316 = vector.broadcast %315 : vector<2x8x1xf32> to vector<2x8x128xf32>
    %317 = arith.subf %313, %316 : vector<2x8x128xf32>
    %318 = math.exp %317 : vector<2x8x128xf32>
    %cst_103 = arith.constant dense<0.000000e+00> : vector<2x8xf32>
    %319 = vector.multi_reduction <add>, %318, %cst_103 [2] : vector<2x8x128xf32> to vector<2x8xf32>
    %320 = vector.shape_cast %319 : vector<2x8xf32> to vector<2x8x1xf32>
    %321 = tpu.reciprocal %320 {approx = true} : vector<2x8x1xf32> -> vector<2x8x1xf32>
    %322 = vector.broadcast %321 : vector<2x8x1xf32> to vector<2x8x128xf32>
    %323 = arith.mulf %318, %322 : vector<2x8x128xf32>
    %324 = arith.truncf %323 : vector<2x8x128xf32> to vector<2x8x128xbf16>
    "tpu.trace_start"() <{level = 10 : i32, message = "bts,bsh->bth"}> : () -> ()
    %cst_104 = arith.constant dense<0.000000e+00> : vector<2x8x32xf32>
    %325 = tpu.matmul %324, %303, %cst_104 {dimension_numbers = #tpu.dot_dimension_numbers<[2], [1], [1], [2], [0, 0, 0, 1, 1, 2], [0], [0]>} : vector<2x8x128xbf16>, vector<2x128x32xbf16>, vector<2x8x32xf32> -> vector<2x8x32xf32>
    "tpu.trace_stop"() : () -> ()
    %326 = vector.shape_cast %302 : vector<2x8x32xbf16> to vector<16x32xbf16>
    %c0_105 = arith.constant 0 : index
    %c0_106 = arith.constant 0 : index
    %327 = vector.load %arg10[%c0_105, %c0_106] : memref<32x128xbf16, #tpu.memory_space<vmem>>, vector<32x128xbf16>
    %cst_107 = arith.constant dense<0.000000e+00> : vector<16x128xf32>
    %328 = tpu.matmul %326, %327, %cst_107 {dimension_numbers = #tpu.dot_dimension_numbers<[1], [0], [0], [1], [0, 0, 1, 1], [], []>} : vector<16x32xbf16>, vector<32x128xbf16>, vector<16x128xf32> -> vector<16x128xf32>
    %329 = arith.truncf %325 : vector<2x8x32xf32> to vector<2x8x32xbf16>
    %330 = vector.shape_cast %329 : vector<2x8x32xbf16> to vector<16x32xbf16>
    %c0_108 = arith.constant 0 : index
    %c0_109 = arith.constant 0 : index
    %331 = vector.load %arg11[%c0_108, %c0_109] : memref<32x128xbf16, #tpu.memory_space<vmem>>, vector<32x128xbf16>
    %cst_110 = arith.constant dense<0.000000e+00> : vector<16x128xf32>
    %332 = tpu.matmul %330, %331, %cst_110 {dimension_numbers = #tpu.dot_dimension_numbers<[1], [0], [0], [1], [0, 0, 1, 1], [], []>} : vector<16x32xbf16>, vector<32x128xbf16>, vector<16x128xf32> -> vector<16x128xf32>
    %333 = arith.addf %328, %332 : vector<16x128xf32>
    %c0_111 = arith.constant 0 : index
    %c0_112 = arith.constant 0 : index
    %334 = vector.load %arg12[%c0_111, %c0_112] : memref<1x128xf32, #tpu.memory_space<vmem>>, vector<1x128xf32>
    %335 = vector.broadcast %334 : vector<1x128xf32> to vector<16x128xf32>
    %336 = arith.addf %333, %335 : vector<16x128xf32>
    %337 = vector.shape_cast %336 : vector<16x128xf32> to vector<2x8x128xf32>
    %cst_113 = arith.constant dense<0xFF800000> : vector<2x8xf32>
    %338 = vector.multi_reduction <maximumf>, %337, %cst_113 [2] : vector<2x8x128xf32> to vector<2x8xf32>
    %339 = vector.shape_cast %338 : vector<2x8xf32> to vector<2x8x1xf32>
    %340 = vector.broadcast %339 : vector<2x8x1xf32> to vector<2x8x128xf32>
    %341 = arith.subf %337, %340 : vector<2x8x128xf32>
    %342 = math.exp %341 : vector<2x8x128xf32>
    %cst_114 = arith.constant dense<0.000000e+00> : vector<2x8xf32>
    %343 = vector.multi_reduction <add>, %342, %cst_114 [2] : vector<2x8x128xf32> to vector<2x8xf32>
    %344 = vector.shape_cast %343 : vector<2x8xf32> to vector<2x8x1xf32>
    %345 = math.log %344 : vector<2x8x1xf32>
    %346 = vector.broadcast %345 : vector<2x8x1xf32> to vector<2x8x128xf32>
    %347 = arith.subf %341, %346 : vector<2x8x128xf32>
    %c0_115 = arith.constant 0 : index
    %c0_116 = arith.constant 0 : index
    %c0_117 = arith.constant 0 : index
    %348 = vector.load %arg13[%c0_115, %c0_116, %c0_117] : memref<2x8x128xf32, #tpu.memory_space<vmem>>, vector<2x8x128xf32>
    tpu.vector_store %arg13[%c0_115, %c0_116, %c0_117], %347 {strides = array<i32>} : memref<2x8x128xf32, #tpu.memory_space<vmem>>, vector<2x8x128xf32>,
    %c0_118 = arith.constant 0 : index
    %c0_119 = arith.constant 0 : index
    %c0_120 = arith.constant 0 : index
    %349 = vector.load %arg15[%c0_118, %c0_119, %c0_120] : memref<2x8x128xf32, #tpu.memory_space<vmem>>, vector<2x8x128xf32>
    tpu.vector_store %arg15[%c0_118, %c0_119, %c0_120], %323 {strides = array<i32>} : memref<2x8x128xf32, #tpu.memory_space<vmem>>, vector<2x8x128xf32>,
    return
  }
  func.func @transform_0(%arg0: i32) -> (i32, i32, i32) {
    %c0_i32 = arith.constant 0 : i32
    %c0_i32_0 = arith.constant 0 : i32
    %c0_i32_1 = arith.constant 0 : i32
    return %c0_i32, %arg0, %c0_i32_0 : i32, i32, i32
  }
  func.func @transform_1(%arg0: i32) -> (i32, i32) {
    %c0_i32 = arith.constant 0 : i32
    %c0_i32_0 = arith.constant 0 : i32
    return %arg0, %c0_i32 : i32, i32
  }
  func.func @transform_2(%arg0: i32) -> (i32, i32, i32) {
    %c0_i32 = arith.constant 0 : i32
    %c0_i32_0 = arith.constant 0 : i32
    %c0_i32_1 = arith.constant 0 : i32
    return %arg0, %c0_i32, %c0_i32_0 : i32, i32, i32
  }
  func.func @transform_3(%arg0: i32) -> (i32, i32) {
    %c0_i32 = arith.constant 0 : i32
    %c0_i32_0 = arith.constant 0 : i32
    %c0_i32_1 = arith.constant 0 : i32
    return %c0_i32, %c0_i32_0 : i32, i32
  }
  func.func @transform_4(%arg0: i32) -> (i32, i32) {
    %c0_i32 = arith.constant 0 : i32
    %c0_i32_0 = arith.constant 0 : i32
    %c0_i32_1 = arith.constant 0 : i32
    return %c0_i32, %c0_i32_0 : i32, i32
  }
  func.func @transform_5(%arg0: i32) -> (i32, i32) {
    %c0_i32 = arith.constant 0 : i32
    %c0_i32_0 = arith.constant 0 : i32
    %c0_i32_1 = arith.constant 0 : i32
    return %c0_i32, %c0_i32_0 : i32, i32
  }
  func.func @transform_6(%arg0: i32) -> (i32, i32) {
    %c0_i32 = arith.constant 0 : i32
    %c0_i32_0 = arith.constant 0 : i32
    %c0_i32_1 = arith.constant 0 : i32
    return %c0_i32, %c0_i32_0 : i32, i32
  }
  func.func @transform_7(%arg0: i32) -> (i32, i32) {
    %c0_i32 = arith.constant 0 : i32
    %c0_i32_0 = arith.constant 0 : i32
    %c0_i32_1 = arith.constant 0 : i32
    return %c0_i32, %c0_i32_0 : i32, i32
  }
  func.func @transform_8(%arg0: i32) -> (i32, i32) {
    %c0_i32 = arith.constant 0 : i32
    %c0_i32_0 = arith.constant 0 : i32
    %c0_i32_1 = arith.constant 0 : i32
    return %c0_i32, %c0_i32_0 : i32, i32
  }
  func.func @transform_9(%arg0: i32) -> (i32, i32) {
    %c0_i32 = arith.constant 0 : i32
    %c0_i32_0 = arith.constant 0 : i32
    %c0_i32_1 = arith.constant 0 : i32
    return %c0_i32, %c0_i32_0 : i32, i32
  }
  func.func @transform_10(%arg0: i32) -> (i32, i32) {
    %c0_i32 = arith.constant 0 : i32
    %c0_i32_0 = arith.constant 0 : i32
    %c0_i32_1 = arith.constant 0 : i32
    return %c0_i32, %c0_i32_0 : i32, i32
  }
  func.func @transform_11(%arg0: i32) -> (i32, i32) {
    %c0_i32 = arith.constant 0 : i32
    %c0_i32_0 = arith.constant 0 : i32
    %c0_i32_1 = arith.constant 0 : i32
    return %c0_i32, %c0_i32_0 : i32, i32
  }
  func.func @transform_12(%arg0: i32) -> (i32, i32, i32) {
    %c0_i32 = arith.constant 0 : i32
    %c0_i32_0 = arith.constant 0 : i32
    %c0_i32_1 = arith.constant 0 : i32
    return %arg0, %c0_i32, %c0_i32_0 : i32, i32, i32
  }
  func.func @transform_13(%arg0: i32) -> (i32, i32) {
    %c0_i32 = arith.constant 0 : i32
    %c0_i32_0 = arith.constant 0 : i32
    return %arg0, %c0_i32 : i32, i32
  }
  func.func @transform_14(%arg0: i32) -> (i32, i32, i32) {
    %c0_i32 = arith.constant 0 : i32
    %c0_i32_0 = arith.constant 0 : i32
    %c0_i32_1 = arith.constant 0 : i32
    return %arg0, %c0_i32, %c0_i32_0 : i32, i32, i32
  }
}

</mosaic_0001>

<bundles_post_ra>
// kernel: tpu_custom_call.1
= control target key start
LH: loop header
LB: loop body
LE: loop exit
PB: predicated region body
PF: predicated region fallthrough
CT: control target
= control target key end

     0   :  { %20 = vsyncpa [#allocation5], 0  ;;  %s3295_s0 = inlined_call_operand.hbm [shape: bf16[8,2,32], index: 0, kind: input, shape index: {}]   ;;  %s3296_s1 = inlined_call_operand.hbm [shape: f32[2,32], index: 1, kind: input, shape index: {}]   ;;  %s3297_s2 = inlined_call_operand.hbm [shape: bf16[2,128,32], index: 2, kind: input, shape index: {}]   ;;  %s3298_s3 = inlined_call_operand.hbm [shape: f32[1,128], index: 3, kind: input, shape index: {}]   ;;  %s3299_s4 = inlined_call_operand.hbm [shape: bf16[32,96], index: 4, kind: input, shape index: {}]   ;;  %s3300_s5 = inlined_call_operand.hbm [shape: f32[1,96], index: 5, kind: input, shape index: {}]   ;;  %s3301_s6 = inlined_call_operand.hbm [shape: bf16[32,96], index: 6, kind: input, shape index: {}]   ;;  %s3302_s7 = inlined_call_operand.hbm [shape: f32[1,96], index: 7, kind: input, shape index: {}]   ;;  %s3303_s8 = inlined_call_operand.hbm [shape: bf16[32,32], index: 8, kind: input, shape index: {}]   ;;  %s3304_s9 = inlined_call_operand.hbm [shape: bf16[32,128], index: 9, kind: input, shape index: {}]   ;;  %s3305_s10 = inlined_call_operand.hbm [shape: bf16[32,128], index: 10, kind: input, shape index: {}]   ;;  %s3306_s11 = inlined_call_operand.hbm [shape: f32[1,128], index: 11, kind: input, shape index: {}]   ;;  %s3307_s12 = inlined_call_operand.hbm [shape: f32[2,8,128], index: 12, kind: output, shape index: {0}]   ;;  %s3308_s13 = inlined_call_operand.hbm [shape: f32[2,32], index: 13, kind: output, shape index: {1}]   ;;  %s3309_s14 = inlined_call_operand.hbm [shape: f32[2,8,128], index: 14, kind: output, shape index: {2}]  }
   0x1   :  { %21 = vsyncpa [#allocation8], 0 }
   0x2   :  { %22 = vsyncpa [#allocation11], 0 }
   0x3   :  { %23 = vsyncpa [#allocation14], 0 }
   0x4   :  { %24 = vsyncpa [#allocation17], 0 }
   0x5   :  { %25 = vsyncpa [#allocation20], 0 }
   0x6   :  { %26 = vsyncpa [#allocation23], 0 }
   0x7   :  { %27 = vsyncpa [#allocation6], 0 }
   0x8   :  { %28 = vsyncpa [#allocation26], 0  ;;  %s2658_s29 = smov [#allocation7]   ;;  %s2659_s15 = smov [#allocation10]  }
   0x9   :  { %s47_s30 = sshll.u32 %s2658_s29, 4  ;;  %s69_s16 = sshll.u32 %s2659_s15, 4  ;;  %s48_s30 = int_to_ptr.vmem [resolvable:$true] %s47_s30  ;;  %s70_s16 = int_to_ptr.vmem [resolvable:$true] %s69_s16 }
   0xa   :  { %s2310_s19 = scalar_lea.hbm %s3296_s1, 32 }
   0xb   :  { %p2311_p0 = scmp.ne.s32.totalorder %s3296_s1, %s2310_s19  ;;  %p2314_p1 = scmp.lt.u32.totalorder %s2310_s19, %s3296_s1 }
   0xd   :  { %p2316_p2 = pnand %p2314_p1, %p2311_p0 }
   0xf   :  { %2319 = shalt.err (!%p2316_p2)
}
  0x10   :  { %s2320_s24 = scalar_lea.vmem %s48_s30, 32  ;;  %p2325_p4 = scmp.lt.s32.totalorder %s48_s30, %s48_s30 }
  0x11   :  { %p2321_p3 = scmp.ne.s32.totalorder %s48_s30, %s2320_s24  ;;  %p2326_p5 = scmp.lt.s32.totalorder %s2320_s24, %s2320_s24 }
  0x13   :  { %p2327_p6 = por %p2326_p5, %p2325_p4 }
  0x15   :  { %p2328_p7 = pnand %p2327_p6, %p2321_p3 }
  0x17   :  { %2331 = shalt.err (!%p2328_p7)
}
  0x18   :  { %50 = dma.hbm_to_vmem [thread:$0]  %s3296_s1, 32, %s48_s30, [#allocation8]  }
  0x19   :  { %s2332_s29 = scalar_lea.hbm %s3298_s3, 16 }
  0x1a   :  { %p2333_p8 = scmp.ne.s32.totalorder %s3298_s3, %s2332_s29  ;;  %p2336_p9 = scmp.lt.u32.totalorder %s2332_s29, %s3298_s3 }
  0x1c   :  { %p2338_p10 = pnand %p2336_p9, %p2333_p8 }
  0x1e   :  { %2341 = shalt.err (!%p2338_p10)
}
  0x1f   :  { %s2342_s20 = scalar_lea.vmem %s70_s16, 16  ;;  %s2346_s21 = scalar_lea.vmem %s70_s16, 32 }
  0x20   :  { %p2343_p11 = scmp.ne.s32.totalorder %s70_s16, %s2342_s20  ;;  %p2347_p12 = scmp.lt.s32.totalorder %s70_s16, %s70_s16 }
  0x21   :  { %p2348_p13 = scmp.lt.s32.totalorder %s2346_s21, %s2342_s20 }
  0x23   :  { %p2349_p0 = por %p2348_p13, %p2347_p12 }
  0x25   :  { %p2350_p1 = pnand %p2349_p0, %p2343_p11 }
  0x27   :  { %2353 = shalt.err (!%p2350_p1)
}
  0x28   :  { %72 = dma.hbm_to_vmem [thread:$0]  %s3298_s3, 16, %s70_s16, [#allocation11]  }
  0x29   :  { %s2660_s22 = smov [#allocation13]   ;;  %s2661_s24 = smov [#allocation16]  }
  0x2a   :  { %s91_s23 = sshll.u32 %s2660_s22, 4  ;;  %s113_s25 = sshll.u32 %s2661_s24, 4  ;;  %s92_s23 = int_to_ptr.vmem [resolvable:$true] %s91_s23  ;;  %s114_s25 = int_to_ptr.vmem [resolvable:$true] %s113_s25 }
  0x2b   :  { %s2354_s28 = scalar_lea.hbm %s3300_s5, 16 }
  0x2c   :  { %p2355_p2 = scmp.ne.s32.totalorder %s3300_s5, %s2354_s28  ;;  %p2358_p3 = scmp.lt.u32.totalorder %s2354_s28, %s3300_s5 }
  0x2e   :  { %p2360_p4 = pnand %p2358_p3, %p2355_p2 }
  0x30   :  { %2363 = shalt.err (!%p2360_p4)
}
  0x31   :  { %s2364_s3 = scalar_lea.vmem %s92_s23, 16  ;;  %s2368_s16 = scalar_lea.vmem %s92_s23, 32 }
  0x32   :  { %p2365_p5 = scmp.ne.s32.totalorder %s92_s23, %s2364_s3  ;;  %p2369_p6 = scmp.lt.s32.totalorder %s92_s23, %s92_s23 }
  0x33   :  { %p2370_p7 = scmp.lt.s32.totalorder %s2368_s16, %s2364_s3 }
  0x35   :  { %p2371_p8 = por %p2370_p7, %p2369_p6 }
  0x37   :  { %p2372_p9 = pnand %p2371_p8, %p2365_p5 }
  0x39   :  { %2375 = shalt.err (!%p2372_p9)
}
  0x3a   :  { %94 = dma.hbm_to_vmem [thread:$0]  %s3300_s5, 16, %s92_s23, [#allocation14]  }
  0x3b   :  { %s2376_s30 = scalar_lea.hbm %s3302_s7, 16 }
  0x3c   :  { %p2377_p10 = scmp.ne.s32.totalorder %s3302_s7, %s2376_s30  ;;  %p2380_p11 = scmp.lt.u32.totalorder %s2376_s30, %s3302_s7 }
  0x3e   :  { %p2382_p12 = pnand %p2380_p11, %p2377_p10 }
  0x40   :  { %2385 = shalt.err (!%p2382_p12)
}
  0x41   :  { %s2386_s28 = scalar_lea.vmem %s114_s25, 16  ;;  %s2390_s29 = scalar_lea.vmem %s114_s25, 32 }
  0x42   :  { %p2387_p13 = scmp.ne.s32.totalorder %s114_s25, %s2386_s28  ;;  %p2391_p0 = scmp.lt.s32.totalorder %s114_s25, %s114_s25 }
  0x43   :  { %p2392_p1 = scmp.lt.s32.totalorder %s2390_s29, %s2386_s28 }
  0x45   :  { %p2393_p2 = por %p2392_p1, %p2391_p0 }
  0x47   :  { %p2394_p3 = pnand %p2393_p2, %p2387_p13 }
  0x49   :  { %2397 = shalt.err (!%p2394_p3)
}
  0x4a   :  { %116 = dma.hbm_to_vmem [thread:$0]  %s3302_s7, 16, %s114_s25, [#allocation17]  }
  0x4b   :  { %s2662_s15 = smov [#allocation19]   ;;  %s2663_s18 = smov [#allocation4]  }
  0x4c   :  { %s134_s17 = sshll.u32 %s2662_s15, 4  ;;  %s34_s3 = sshll.u32 %s2663_s18, 4  ;;  %s135_s17 = int_to_ptr.vmem [resolvable:$true] %s134_s17  ;;  %s2808_s3 = int_to_ptr.vmem [resolvable:$true] %s34_s3 }
  0x4d   :  { %s2398_s20 = scalar_lea.hbm %s3304_s9, 256 }
  0x4e   :  { %p2399_p4 = scmp.ne.s32.totalorder %s3304_s9, %s2398_s20  ;;  %p2402_p5 = scmp.lt.u32.totalorder %s2398_s20, %s3304_s9 }
  0x50   :  { %p2404_p6 = pnand %p2402_p5, %p2399_p4 }
  0x52   :  { %2407 = shalt.err (!%p2404_p6)
}
  0x53   :  { %s2408_s7 = scalar_lea.vmem %s135_s17, 256  ;;  %p2413_p8 = scmp.lt.s32.totalorder %s135_s17, %s135_s17 }
  0x54   :  { %p2409_p7 = scmp.ne.s32.totalorder %s135_s17, %s2408_s7  ;;  %p2414_p9 = scmp.lt.s32.totalorder %s2408_s7, %s2408_s7 }
  0x56   :  { %p2415_p10 = por %p2414_p9, %p2413_p8 }
  0x58   :  { %p2416_p11 = pnand %p2415_p10, %p2409_p7 }
  0x5a   :  { %2419 = shalt.err (!%p2416_p11)
}
  0x5b   :  { %s2664_s25 = smov 64   ;;  %s2665_s24 = smov 4  }
  0x5c   :  { %140 = dma.hbm_to_vmem [thread:$0]  %s3304_s9, 256, %s135_s17, [#allocation20], %s2664_s25, %s2664_s25, %s2665_s24  }
  0x5d   :  { %s2420_s5 = scalar_lea.hbm %s3295_s0, 128 }
  0x5e   :  { %p2421_p12 = scmp.ne.s32.totalorder %s3295_s0, %s2420_s5  ;;  %p2424_p13 = scmp.lt.u32.totalorder %s2420_s5, %s3295_s0 }
  0x60   :  { %p2426_p0 = pnand %p2424_p13, %p2421_p12 }
  0x62   :  { %2429 = shalt.err (!%p2426_p0)
}
  0x63   :  { %s2430_s19 = scalar_lea.vmem %s2808_s3, 128  ;;  %p2435_p2 = scmp.lt.s32.totalorder %s2808_s3, %s2808_s3 }
  0x64   :  { %p2431_p1 = scmp.ne.s32.totalorder %s2808_s3, %s2430_s19  ;;  %p2436_p3 = scmp.lt.s32.totalorder %s2430_s19, %s2430_s19 }
  0x66   :  { %p2437_p4 = por %p2436_p3, %p2435_p2 }
  0x68   :  { %p2438_p5 = pnand %p2437_p4, %p2431_p1 }
  0x6a   :  { %2441 = shalt.err (!%p2438_p5)
}
  0x6b   :  { %s2666_s9 = smov 16   ;;  %s2667_s17 = smov 1  }
  0x6c   :  { %40 = dma.hbm_to_vmem [thread:$0]  %s3295_s0, 128, %s2808_s3, [#allocation5], %s2666_s9, %s2666_s9, %s2667_s17  }
  0x6d   :  { %s2668_s1 = smov [#allocation9]   ;;  %s2669_s22 = smov [#allocation12]  }
  0x6e   :  { %s56_s30 = sshll.u32 %s2668_s1, 4  ;;  %s78_s7 = sshll.u32 %s2669_s22, 4  ;;  %s57_s30 = int_to_ptr.vmem [resolvable:$true] %s56_s30  ;;  %s2842_s7 = int_to_ptr.vmem [resolvable:$true] %s78_s7 }
  0x6f   :  { %s2442_s28 = scalar_lea.hbm %s3297_s2, 2048 }
  0x70   :  { %p2443_p6 = scmp.ne.s32.totalorder %s3297_s2, %s2442_s28  ;;  %p2446_p7 = scmp.lt.u32.totalorder %s2442_s28, %s3297_s2 }
  0x72   :  { %p2448_p8 = pnand %p2446_p7, %p2443_p6 }
  0x74   :  { %2451 = shalt.err (!%p2448_p8)
}
  0x75   :  { %s2452_s0 = scalar_lea.vmem %s57_s30, 2048  ;;  %p2457_p10 = scmp.lt.s32.totalorder %s57_s30, %s57_s30 }
  0x76   :  { %p2453_p9 = scmp.ne.s32.totalorder %s57_s30, %s2452_s0  ;;  %p2458_p11 = scmp.lt.s32.totalorder %s2452_s0, %s2452_s0 }
  0x78   :  { %p2459_p12 = por %p2458_p11, %p2457_p10 }
  0x7a   :  { %p2460_p13 = pnand %p2459_p12, %p2453_p9 }
  0x7c   :  { %2463 = shalt.err (!%p2460_p13)
}
  0x7d   :  { %62 = dma.hbm_to_vmem [thread:$0]  %s3297_s2, 2048, %s57_s30, [#allocation8], %s2664_s25, %s2664_s25, %s2665_s24  }
  0x7e   :  { %s2464_s9 = scalar_lea.hbm %s3299_s4, 256 }
  0x7f   :  { %p2465_p0 = scmp.ne.s32.totalorder %s3299_s4, %s2464_s9  ;;  %p2468_p1 = scmp.lt.u32.totalorder %s2464_s9, %s3299_s4 }
  0x81   :  { %p2470_p2 = pnand %p2468_p1, %p2465_p0 }
  0x83   :  { %2473 = shalt.err (!%p2470_p2)
}
  0x84   :  { %s2474_s22 = scalar_lea.vmem %s2842_s7, 256  ;;  %p2479_p4 = scmp.lt.s32.totalorder %s2842_s7, %s2842_s7 }
  0x85   :  { %p2475_p3 = scmp.ne.s32.totalorder %s2842_s7, %s2474_s22  ;;  %p2480_p5 = scmp.lt.s32.totalorder %s2474_s22, %s2474_s22 }
  0x87   :  { %p2481_p6 = por %p2480_p5, %p2479_p4 }
  0x89   :  { %p2482_p7 = pnand %p2481_p6, %p2475_p3 }
  0x8b   :  { %2485 = shalt.err (!%p2482_p7)
}
  0x8c   :  { %84 = dma.hbm_to_vmem [thread:$0]  %s3299_s4, 256, %s2842_s7, [#allocation11], %s2664_s25, %s2664_s25, %s2665_s24  }
  0x8d   :  { %s2670_s26 = smov [#allocation15]   ;;  %s2671_s28 = smov [#allocation18]  }
  0x8e   :  { %s100_s27 = sshll.u32 %s2670_s26, 4  ;;  %s122_s29 = sshll.u32 %s2671_s28, 4  ;;  %s101_s27 = int_to_ptr.vmem [resolvable:$true] %s100_s27  ;;  %s2879_s29 = int_to_ptr.vmem [resolvable:$true] %s122_s29 }
  0x8f   :  { %s2486_s15 = scalar_lea.hbm %s3301_s6, 256 }
  0x90   :  { %p2487_p8 = scmp.ne.s32.totalorder %s3301_s6, %s2486_s15  ;;  %p2490_p9 = scmp.lt.u32.totalorder %s2486_s15, %s3301_s6 }
  0x92   :  { %p2492_p10 = pnand %p2490_p9, %p2487_p8 }
  0x94   :  { %2495 = shalt.err (!%p2492_p10)
}
  0x95   :  { %s2496_s4 = scalar_lea.vmem %s101_s27, 256  ;;  %p2501_p12 = scmp.lt.s32.totalorder %s101_s27, %s101_s27 }
  0x96   :  { %p2497_p11 = scmp.ne.s32.totalorder %s101_s27, %s2496_s4  ;;  %p2502_p13 = scmp.lt.s32.totalorder %s2496_s4, %s2496_s4 }
  0x98   :  { %p2503_p0 = por %p2502_p13, %p2501_p12 }
  0x9a   :  { %p2504_p1 = pnand %p2503_p0, %p2497_p11 }
  0x9c   :  { %2507 = shalt.err (!%p2504_p1)
}
  0x9d   :  { %106 = dma.hbm_to_vmem [thread:$0]  %s3301_s6, 256, %s101_s27, [#allocation14], %s2664_s25, %s2664_s25, %s2665_s24  }
  0x9e   :  { %s2508_s20 = scalar_lea.hbm %s3303_s8, 256 }
  0x9f   :  { %p2509_p2 = scmp.ne.s32.totalorder %s3303_s8, %s2508_s20  ;;  %p2512_p3 = scmp.lt.u32.totalorder %s2508_s20, %s3303_s8 }
  0xa1   :  { %p2514_p4 = pnand %p2512_p3, %p2509_p2 }
  0xa3   :  { %2517 = shalt.err (!%p2514_p4)
}
  0xa4   :  { %s2518_s30 = scalar_lea.vmem %s2879_s29, 256  ;;  %p2523_p6 = scmp.lt.s32.totalorder %s2879_s29, %s2879_s29 }
  0xa5   :  { %p2519_p5 = scmp.ne.s32.totalorder %s2879_s29, %s2518_s30  ;;  %p2524_p7 = scmp.lt.s32.totalorder %s2518_s30, %s2518_s30 }
  0xa7   :  { %p2525_p8 = por %p2524_p7, %p2523_p6 }
  0xa9   :  { %p2526_p9 = pnand %p2525_p8, %p2519_p5 }
  0xab   :  { %2529 = shalt.err (!%p2526_p9)
}
  0xac   :  { %128 = dma.hbm_to_vmem [thread:$0]  %s3303_s8, 256, %s2879_s29, [#allocation17], %s2664_s25, %s2664_s25, %s2665_s24  }
  0xad   :  { %s2672_s27 = smov [#allocation21]   ;;  %s2673_s5 = smov [#allocation22]  }
  0xae   :  { %s146_s28 = sshll.u32 %s2672_s27, 4  ;;  %s159_s23 = sshll.u32 %s2673_s5, 4  ;;  %s147_s28 = int_to_ptr.vmem [resolvable:$true] %s146_s28  ;;  %s160_s23 = int_to_ptr.vmem [resolvable:$true] %s159_s23 }
  0xaf   :  { %s2530_s3 = scalar_lea.hbm %s3305_s10, 256 }
  0xb0   :  { %p2531_p10 = scmp.ne.s32.totalorder %s3305_s10, %s2530_s3  ;;  %p2534_p11 = scmp.lt.u32.totalorder %s2530_s3, %s3305_s10 }
  0xb2   :  { %p2536_p12 = pnand %p2534_p11, %p2531_p10 }
  0xb4   :  { %2539 = shalt.err (!%p2536_p12)
}
  0xb5   :  { %s2540_s8 = scalar_lea.vmem %s147_s28, 256  ;;  %p2545_p0 = scmp.lt.s32.totalorder %s147_s28, %s147_s28 }
  0xb6   :  { %p2541_p13 = scmp.ne.s32.totalorder %s147_s28, %s2540_s8  ;;  %p2546_p1 = scmp.lt.s32.totalorder %s2540_s8, %s2540_s8 }
  0xb8   :  { %p2547_p2 = por %p2546_p1, %p2545_p0 }
  0xba   :  { %p2548_p3 = pnand %p2547_p2, %p2541_p13 }
  0xbc   :  { %2551 = shalt.err (!%p2548_p3)
}
  0xbd   :  { %152 = dma.hbm_to_vmem [thread:$0]  %s3305_s10, 256, %s147_s28, [#allocation20], %s2664_s25, %s2664_s25, %s2665_s24  }
  0xbe   :  { %s2552_s20 = scalar_lea.hbm %s3306_s11, 16 }
  0xbf   :  { %p2553_p4 = scmp.ne.s32.totalorder %s3306_s11, %s2552_s20  ;;  %p2556_p5 = scmp.lt.u32.totalorder %s2552_s20, %s3306_s11 }
  0xc1   :  { %p2558_p6 = pnand %p2556_p5, %p2553_p4 }
  0xc3   :  { %2561 = shalt.err (!%p2558_p6)
}
  0xc4   :  { %s2562_s30 = scalar_lea.vmem %s160_s23, 16  ;;  %s2566_s6 = scalar_lea.vmem %s160_s23, 32 }
  0xc5   :  { %p2563_p7 = scmp.ne.s32.totalorder %s160_s23, %s2562_s30  ;;  %p2567_p8 = scmp.lt.s32.totalorder %s160_s23, %s160_s23 }
  0xc6   :  { %p2568_p9 = scmp.lt.s32.totalorder %s2566_s6, %s2562_s30 }
  0xc8   :  { %p2569_p10 = por %p2568_p9, %p2567_p8 }
  0xca   :  { %p2570_p11 = pnand %p2569_p10, %p2563_p7 }
  0xcc   :  { %2573 = shalt.err (!%p2570_p11)
}
  0xcd   :  { %162 = dma.hbm_to_vmem [thread:$0]  %s3306_s11, 16, %s160_s23, [#allocation23]  }
  0xce   :  { %2640 = dma.done.wait [#allocation5], 128  }
  0xcf   :  { %2641 = vsyncadd [#allocation5], 4294967168 }
  0xd0   :  { %2642 = dma.done.wait [#allocation8], 2080  }
  0xd1   :  { %2643 = vsyncadd [#allocation8], 4294965216 }
  0xd2   :  { %2644 = dma.done.wait [#allocation11], 272  }
  0xd3   :  { %2645 = vsyncadd [#allocation11], 4294967024 }
  0xd4   :  { %2646 = dma.done.wait [#allocation14], 272  }
  0xd5   :  { %2647 = vsyncadd [#allocation14], 4294967024 }
  0xd6   :  { %2648 = dma.done.wait [#allocation17], 272  }
  0xd7   :  { %2649 = vsyncadd [#allocation17], 4294967024 }
  0xd8   :  { %2650 = dma.done.wait [#allocation20], 512  }
  0xd9   :  { %2651 = vsyncadd [#allocation20], 4294966784 }
  0xda   :  { %2652 = dma.done.wait [#allocation23], 16  }
  0xdb   :  { %2653 = vsyncadd [#allocation23], 4294967280  ;;  %v2674_v0 = vmov 0.0   ;;  %vm2675_vm0 = vmmov 0   ;;  %v2676_v1 = vmov 1966171168   ;;  %v234_v3 = vlaneseq }
  0xdc   :  { %2025 = vmatprep.subr.bf16.mxu1 %v2674_v0  ;;  %2017 = vmatprep.subr.bf16.mxu0 %v2674_v0  ;;  %v232_v2 = vunpack.c.l.s4 %v2676_v1  ;;  %v2949_v6 = vld [vmem:[#allocation15] sm:$0xff]   ;;  %v2221_v7 = vld [vmem:[#allocation12] sm:$0xff]   ;;  %v2223_v9 = vld [vmem:[#allocation12 + $0x8] sm:$0xff]   ;;  %vm288_vm1 = vcmask 261120   ;;  %v2677_v35 = vmov 1983009808  }
  0xdd   :  { %2029 = vmatprep.mubr.msk.bf16.mxu1 %vm2675_vm0, %v2674_v0  ;;  %2021 = vmatprep.mubr.msk.bf16.mxu0 %vm2675_vm0, %v2674_v0  ;;  %v235_v5 = vshrl.u32 %v234_v3, 7  ;;  %v2952_v8 = vld [vmem:[#allocation15 + $0x8] sm:$0xff]   ;;  %v200_v12 = vld [vmem:[#allocation4] sm:$0x1]  ;;  %v201_v13 = vld [vmem:[#allocation4 + $0x1] sm:$0x1]  ;;  %v337_v36 = vunpack.c.l.s4 %v2677_v35 }
  0xde   :  { %v233_v4 = vunpack.c.0.s8 %v232_v2  ;;  %2026 = vmatpush3.bf16.msra.mxu1 %v2949_v6  ;;  %2018 = vmatpush3.bf16.msra.mxu0 %v2221_v7  ;;  %v2958_v11 = vld [vmem:[#allocation7] sm:$0x3]  ;;  %v202_v15 = vld [vmem:[#allocation4 + $0x2] sm:$0x1]  ;;  %v203_v16 = vld [vmem:[#allocation4 + $0x3] sm:$0x1]  ;;  %v227_v18 = vcombine.low %v200_v12, %v201_v13 }
  0xdf   :  { %2027 = vmatprep.subr.bf16.mxu1 %v2674_v0  ;;  %2019 = vmatprep.subr.bf16.mxu0 %v2674_v0  ;;  %v393_v14 = vpack.c.bf16 %v2958_v11, %v2958_v11  ;;  %v204_v17 = vld [vmem:[#allocation4 + $0x4] sm:$0x1]  ;;  %v205_v19 = vld [vmem:[#allocation4 + $0x5] sm:$0x1]  ;;  %v206_v20 = vld [vmem:[#allocation4 + $0x6] sm:$0x1]  ;;  %v228_v22 = vcombine.low %v202_v15, %v203_v16  ;;  %v338_v41 = vunpack.c.0.s8 %v337_v36 }
  0xe0   :  { %v2955_v10 = vsub.s32 %v233_v4, %v235_v5  ;;  %v207_v21 = vld [vmem:[#allocation4 + $0x7] sm:$0x1]  ;;  %v229_v23 = vcombine.low %v204_v17, %v205_v19  ;;  %v2985_v34 = vld [vmem:[#allocation16] ss:$0 sm:$0xff]  ;;  %v1891_v43 = vld [vmem:[#allocation13] ss:$0 sm:$0xff] }
  0xe1   :  { %v230_v24 = vcombine.low %v206_v20, %v207_v21  ;;  %v341_v44 = vsub.s32 %v338_v41, %v235_v5  ;;  %vm377_vm2 = vcmask 779264   ;;  %s2678_s11 = smov 96   ;;  %s2679_s26 = smov 32   ;;  %vm504_vm3 = vcmask 253952  }
  0xe2   :  { %2028 = vmatpush3.bf16.msra.mxu1 %v2952_v8  ;;  %2020 = vmatpush3.bf16.msra.mxu0 %v2223_v9  ;;  %v237_v25 = vrot.slane %v227_v18, %v2955_v10  ;;  %v244_v26 = vrot.slane %v228_v22, %v2955_v10  ;;  %v251_v27 = vrot.slane %v229_v23, %v2955_v10  ;;  %s2681_s28 = smov [#allocation27]   ;;  %vm1168_vm4 = vcmask 254976  }
  0xe3   :  { %2041 = vmatprep.subr.bf16.mxu1 %v2674_v0  ;;  %2033 = vmatprep.subr.bf16.mxu0 %v2674_v0  ;;  %v258_v28 = vrot.slane %v230_v24, %v2955_v10  ;;  %s1866_s5 = sshll.u32 %s2681_s28, 4  ;;  %s3252_s5 = int_to_ptr.vmem [resolvable:$true] %s1866_s5 }
  0xe4   :  { %v259_v29 = vcombine.low %v237_v25, %v244_v26 }
  0xe5   :  { %2030 = vmatmul.mubr.msk.bf16.vlgmr.msra.gmra.mrb[0].mxu1 %vm288_vm1, %v393_v14  ;;  %v260_v30 = vcombine.low %v251_v27, %v258_v28 }
  0xe6   :  { %2042 = vmatpush3.bf16.msra.mxu1 %v2949_v6  ;;  %2045 = vmatprep.mubr.msk.bf16.mxu1 %vm2675_vm0, %v2674_v0  ;;  %v267_v31 = vrot.slane %v259_v29, %v2955_v10 }
  0xe7   :  { %2043 = vmatprep.subr.bf16.mxu1 %v2674_v0  ;;  %v274_v32 = vrot.slane %v260_v30, %v2955_v10 }
  0xe9   :  { %v275_v33 = vcombine.low %v267_v31, %v274_v32 }
  0xea   :  { %2044 = vmatpush3.bf16.msra.mxu1 %v2952_v8 }
  0xeb   :  { %2057 = vmatprep.subr.bf16.mxu1 %v2674_v0  ;;  %2022 = vmatmul.mubr.msk.bf16.vlgmr.msra.gmra.mrb[0].mxu0 %vm288_vm1, %v275_v33 }
  0xec   :  { %2034 = vmatpush3.bf16.msra.mxu0 %v2949_v6  ;;  %2037 = vmatprep.mubr.msk.bf16.mxu0 %vm2675_vm0, %v2674_v0 }
  0xed   :  { %2035 = vmatprep.subr.bf16.mxu0 %v2674_v0 }
  0xf0   :  { %2036 = vmatpush3.bf16.msra.mxu0 %v2952_v8 }
  0xf1   :  { %2049 = vmatprep.subr.bf16.mxu0 %v2674_v0 }
 0x1b8   :  { %v449_v37 = vpop.f32.mrb[0].mxu1 }
 0x1b9   :  { %v450_v38 = vadd.f32 %v2985_v34, %v449_v37  ;;  %v2031_v39 = vpop.f32.mrb[1].mxu1 }
 0x1ba   :  { %v452_v40 = vpop.f32.mrb[2].mxu1 }
 0x1bb   :  { %463 = vrot.lane.b32.xlu0 %v450_v38, %s2664_s25  ;;  %v2032_v42 = vpop.f32.mrb[3].mxu1 }
 0x1be   :  { %v326_v45 = vpop.f32.mrb[0].mxu0 }
 0x1bf   :  { %v327_v46 = vadd.f32 %v1891_v43, %v326_v45  ;;  %v2023_v47 = vpop.f32.mrb[1].mxu0 }
 0x1c0   :  { %v329_v48 = vpop.f32.mrb[2].mxu0 }
 0x1c1   :  { %v335_v49 = vcombine.high %v327_v46, %v327_v46  ;;  %v342_v50 = vrot.slane %v327_v46, %v341_v44  ;;  %v330_v51 = vadd.f32 %v1891_v43, %v329_v48  ;;  %v2024_v52 = vpop.f32.mrb[3].mxu0 }
 0x1c3   :  { %v349_v53 = vrot.slane %v335_v49, %v341_v44  ;;  %v350_v54 = vcombine.high %v342_v50, %v342_v50  ;;  %378 = vst.msk [vmem:[#allocation2] sm:$0x3] %vm377_vm2, %v342_v50  ;;  %v352_v55 = vcombine.high %v330_v51, %v330_v51  ;;  %v359_v56 = vrot.slane %v330_v51, %v341_v44 }
 0x1c5   :  { %v351_v57 = vcombine.high %v349_v53, %v349_v53  ;;  %379 = vst.msk [vmem:[#allocation2 + $0x2] sm:$0x3] %vm377_vm2, %v350_v54  ;;  %380 = vst.msk [vmem:[#allocation2 + $0x4] sm:$0x3] %vm377_vm2, %v349_v53  ;;  %v366_v58 = vrot.slane %v352_v55, %v341_v44  ;;  %v367_v59 = vcombine.high %v359_v56, %v359_v56 }
 0x1c6   :  { %382 = vst.msk [vmem:[#allocation2 + $0x8] sm:$0x3] %vm377_vm2, %v359_v56 }
 0x1c7   :  { %381 = vst.msk [vmem:[#allocation2 + $0x6] sm:$0x3] %vm377_vm2, %v351_v57  ;;  %v368_v60 = vcombine.high %v366_v58, %v366_v58  ;;  %383 = vst.msk [vmem:[#allocation2 + $0xa] sm:$0x3] %vm377_vm2, %v367_v59 }
 0x1c8   :  { %384 = vst.msk [vmem:[#allocation2 + $0xc] sm:$0x3] %vm377_vm2, %v366_v58 }
 0x1c9   :  { %385 = vst.msk [vmem:[#allocation2 + $0xe] sm:$0x3] %vm377_vm2, %v368_v60 }
 0x1ca   :  { %v392_v61 = vld [vmem:[#allocation2] sm:$0x3] }
 0x1cb   :  { %v455_v62 = vadd.f32 %v450_v38, %v392_v61 }
 0x1cc   :  { %v507_v25 = vld [vmem:[#allocation2 + $0x2] sm:$0x3]  ;;  %v601_v49 = vld [vmem:[#allocation2 + $0x4] sm:$0x3] }
 0x1cd   :  { %v1899_v63 = vmul.f32 -1.442695, %v455_v62 }
 0x1cf   :  { %2246 = vpow2.f32 %v1899_v63 }
 0x1d9   :  { %v2247_v1 = vpop.eup %2246 }
 0x1da   :  { %v459_v2 = vadd.f32 1.0, %v2247_v1 }
 0x1dc   :  { %2248 = vrcp.f32 %v459_v2 }
 0x1e6   :  { %v2249_v3 = vpop.eup %2248 }
 0x1e7   :  { %v473_v14 = vsub.f32 1.0, %v2249_v3 }
 0x22d   :  { %v464_v4 = vpop.permute.xlu0 %463 }
 0x22e   :  { %v466_v5 = vmul.f32 %v2249_v3, %v464_v4 }
 0x230   :  { %468 = vrot.lane.b32.xlu0 %v466_v5, %s2664_s25 }
 0x2a2   :  { %v469_v7 = vpop.permute.xlu0 %468 }
 0x2a3   :  { %v471_v9 = vadd.f32 %v469_v7, %v392_v61 }
 0x2a5   :  { %2250 = vtanh.f32 %v471_v9 }
 0x2af   :  { %v2251_v12 = vpop.eup %2250 }
 0x2b0   :  { %475 = vrot.lane.b32.xlu1 %v2251_v12, %s2678_s11 }
 0x2b4   :  { %480 = vrot.lane.b32.xlu1 %v2958_v11, %s2679_s26 }
 0x322   :  { %v476_v13 = vpop.permute.xlu1 %475 }
 0x323   :  { %v478_v16 = vmul.f32 %v476_v13, %v473_v14  ;;  %v695_v13 = vld [vmem:[#allocation2 + $0x6] sm:$0x3] }
 0x326   :  { %v481_v15 = vpop.permute.xlu1 %480 }
 0x327   :  { %v483_v17 = vmul.f32 %v2249_v3, %v481_v15 }
 0x329   :  { %v484_v18 = vadd.f32 %v483_v17, %v478_v16 }
 0x32b   :  { %v3000_v19 = vpack.c.bf16 %v484_v18, %v484_v18 }
 0x32d   :  { %508 = vrot.lane.b32.xlu0 %v3000_v19, %s2678_s11 }
 0x39f   :  { %v509_v20 = vpop.permute.xlu0 %508 }
 0x3a0   :  { %2038 = vmatmul.mubr.msk.bf16.vlgmr.msra.gmra.mrb[4].mxu0 %vm288_vm1, %v509_v20 }
 0x3a1   :  { %2050 = vmatpush3.bf16.msra.mxu0 %v2949_v6  ;;  %2053 = vmatprep.mubr.msk.bf16.mxu0 %vm2675_vm0, %v2674_v0 }
 0x3a2   :  { %2051 = vmatprep.subr.bf16.mxu0 %v2674_v0 }
 0x3a5   :  { %2052 = vmatpush3.bf16.msra.mxu0 %v2952_v8 }
 0x3a6   :  { %2065 = vmatprep.subr.bf16.mxu0 %v2674_v0 }
 0x473   :  { %v547_v11 = vpop.f32.mrb[4].mxu0 }
 0x474   :  { %v548_v21 = vadd.f32 %v2985_v34, %v547_v11  ;;  %v2039_v22 = vpop.f32.mrb[5].mxu0 }
 0x475   :  { %v550_v23 = vpop.f32.mrb[6].mxu0 }
 0x476   :  { %561 = vrot.lane.b32.xlu1 %v548_v21, %s2664_s25  ;;  %v2040_v24 = vpop.f32.mrb[7].mxu0  ;;  %v553_v26 = vadd.f32 %v548_v21, %v507_v25 }
 0x478   :  { %v1901_v27 = vmul.f32 -1.442695, %v553_v26 }
 0x47a   :  { %2252 = vpow2.f32 %v1901_v27 }
 0x484   :  { %v2253_v28 = vpop.eup %2252 }
 0x485   :  { %v557_v29 = vadd.f32 1.0, %v2253_v28 }
 0x487   :  { %2254 = vrcp.f32 %v557_v29 }
 0x491   :  { %v2255_v30 = vpop.eup %2254 }
 0x492   :  { %v571_v37 = vsub.f32 1.0, %v2255_v30  ;;  %v577_v39 = vmul.f32 %v2255_v30, %v484_v18 }
 0x4e8   :  { %v562_v31 = vpop.permute.xlu1 %561 }
 0x4e9   :  { %v564_v32 = vmul.f32 %v2255_v30, %v562_v31 }
 0x4eb   :  { %566 = vrot.lane.b32.xlu0 %v564_v32, %s2664_s25 }
 0x55d   :  { %v567_v33 = vpop.permute.xlu0 %566 }
 0x55e   :  { %v569_v35 = vadd.f32 %v567_v33, %v507_v25 }
 0x560   :  { %2256 = vtanh.f32 %v569_v35 }
 0x56a   :  { %v2257_v36 = vpop.eup %2256 }
 0x56b   :  { %573 = vrot.lane.b32.xlu1 %v2257_v36, %s2678_s11 }
 0x5dd   :  { %v574_v38 = vpop.permute.xlu1 %573 }
 0x5de   :  { %v576_v40 = vmul.f32 %v574_v38, %v571_v37  ;;  %v789_v37 = vld [vmem:[#allocation2 + $0x8] sm:$0x3] }
 0x5e0   :  { %v578_v41 = vadd.f32 %v577_v39, %v576_v40 }
 0x5e2   :  { %v3015_v42 = vpack.c.bf16 %v578_v41, %v578_v41 }
 0x5e4   :  { %602 = vrot.lane.b32.xlu0 %v3015_v42, %s2678_s11 }
 0x656   :  { %v603_v43 = vpop.permute.xlu0 %602 }
 0x657   :  { %2046 = vmatmul.mubr.msk.bf16.vlgmr.msra.gmra.mrb[4].mxu1 %vm288_vm1, %v603_v43 }
 0x658   :  { %2058 = vmatpush3.bf16.msra.mxu1 %v2949_v6  ;;  %2061 = vmatprep.mubr.msk.bf16.mxu1 %vm2675_vm0, %v2674_v0 }
 0x659   :  { %2059 = vmatprep.subr.bf16.mxu1 %v2674_v0 }
 0x65c   :  { %2060 = vmatpush3.bf16.msra.mxu1 %v2952_v8 }
 0x65d   :  { %2073 = vmatprep.subr.bf16.mxu1 %v2674_v0 }
 0x72a   :  { %v641_v44 = vpop.f32.mrb[4].mxu1 }
 0x72b   :  { %v642_v45 = vadd.f32 %v2985_v34, %v641_v44  ;;  %v2047_v46 = vpop.f32.mrb[5].mxu1 }
 0x72c   :  { %v644_v47 = vpop.f32.mrb[6].mxu1 }
 0x72d   :  { %655 = vrot.lane.b32.xlu1 %v642_v45, %s2664_s25  ;;  %v2048_v48 = vpop.f32.mrb[7].mxu1  ;;  %v647_v50 = vadd.f32 %v642_v45, %v601_v49 }
 0x72f   :  { %v1903_v51 = vmul.f32 -1.442695, %v647_v50 }
 0x731   :  { %2258 = vpow2.f32 %v1903_v51 }
 0x73b   :  { %v2259_v52 = vpop.eup %2258 }
 0x73c   :  { %v651_v53 = vadd.f32 1.0, %v2259_v52 }
 0x73e   :  { %2260 = vrcp.f32 %v651_v53 }
 0x748   :  { %v2261_v54 = vpop.eup %2260 }
 0x749   :  { %v665_v60 = vsub.f32 1.0, %v2261_v54  ;;  %v671_v62 = vmul.f32 %v2261_v54, %v578_v41 }
 0x79f   :  { %v656_v55 = vpop.permute.xlu1 %655 }
 0x7a0   :  { %v658_v56 = vmul.f32 %v2261_v54, %v656_v55 }
 0x7a2   :  { %660 = vrot.lane.b32.xlu0 %v658_v56, %s2664_s25 }
 0x814   :  { %v661_v57 = vpop.permute.xlu0 %660 }
 0x815   :  { %v663_v58 = vadd.f32 %v661_v57, %v601_v49 }
 0x817   :  { %2262 = vtanh.f32 %v663_v58 }
 0x821   :  { %v2263_v59 = vpop.eup %2262 }
 0x822   :  { %667 = vrot.lane.b32.xlu1 %v2263_v59, %s2678_s11 }
 0x894   :  { %v668_v61 = vpop.permute.xlu1 %667 }
 0x895   :  { %v670_v63 = vmul.f32 %v668_v61, %v665_v60  ;;  %v883_v61 = vld [vmem:[#allocation2 + $0xa] sm:$0x3] }
 0x897   :  { %v672_v1 = vadd.f32 %v671_v62, %v670_v63 }
 0x899   :  { %v3030_v2 = vpack.c.bf16 %v672_v1, %v672_v1 }
 0x89b   :  { %696 = vrot.lane.b32.xlu0 %v3030_v2, %s2678_s11 }
 0x90d   :  { %v697_v3 = vpop.permute.xlu0 %696 }
 0x90e   :  { %2054 = vmatmul.mubr.msk.bf16.vlgmr.msra.gmra.mrb[8].mxu0 %vm288_vm1, %v697_v3 }
 0x90f   :  { %2066 = vmatpush3.bf16.msra.mxu0 %v2949_v6  ;;  %2069 = vmatprep.mubr.msk.bf16.mxu0 %vm2675_vm0, %v2674_v0 }
 0x910   :  { %2067 = vmatprep.subr.bf16.mxu0 %v2674_v0 }
 0x913   :  { %2068 = vmatpush3.bf16.msra.mxu0 %v2952_v8 }
 0x914   :  { %2081 = vmatprep.subr.bf16.mxu0 %v2674_v0 }
 0x9e1   :  { %v735_v4 = vpop.f32.mrb[8].mxu0 }
 0x9e2   :  { %v736_v5 = vadd.f32 %v2985_v34, %v735_v4  ;;  %v2055_v7 = vpop.f32.mrb[9].mxu0 }
 0x9e3   :  { %v738_v9 = vpop.f32.mrb[10].mxu0 }
 0x9e4   :  { %749 = vrot.lane.b32.xlu1 %v736_v5, %s2664_s25  ;;  %v2056_v12 = vpop.f32.mrb[11].mxu0  ;;  %v741_v14 = vadd.f32 %v736_v5, %v695_v13 }
 0x9e6   :  { %v1905_v15 = vmul.f32 -1.442695, %v741_v14 }
 0x9e8   :  { %2264 = vpow2.f32 %v1905_v15 }
 0x9f2   :  { %v2265_v16 = vpop.eup %2264 }
 0x9f3   :  { %v745_v17 = vadd.f32 1.0, %v2265_v16 }
 0x9f5   :  { %2266 = vrcp.f32 %v745_v17 }
 0x9ff   :  { %v2267_v18 = vpop.eup %2266 }
 0xa00   :  { %v759_v24 = vsub.f32 1.0, %v2267_v18  ;;  %v765_v26 = vmul.f32 %v2267_v18, %v672_v1 }
 0xa56   :  { %v750_v20 = vpop.permute.xlu1 %749 }
 0xa57   :  { %v752_v11 = vmul.f32 %v2267_v18, %v750_v20 }
 0xa59   :  { %754 = vrot.lane.b32.xlu0 %v752_v11, %s2664_s25 }
 0xacb   :  { %v755_v21 = vpop.permute.xlu0 %754 }
 0xacc   :  { %v757_v22 = vadd.f32 %v755_v21, %v695_v13 }
 0xace   :  { %2268 = vtanh.f32 %v757_v22 }
 0xad8   :  { %v2269_v23 = vpop.eup %2268 }
 0xad9   :  { %761 = vrot.lane.b32.xlu1 %v2269_v23, %s2678_s11 }
 0xb4b   :  { %v762_v25 = vpop.permute.xlu1 %761 }
 0xb4c   :  { %v764_v27 = vmul.f32 %v762_v25, %v759_v24  ;;  %v977_v24 = vld [vmem:[#allocation2 + $0xc] sm:$0x3] }
 0xb4e   :  { %v766_v28 = vadd.f32 %v765_v26, %v764_v27 }
 0xb50   :  { %v3045_v29 = vpack.c.bf16 %v766_v28, %v766_v28 }
 0xb52   :  { %790 = vrot.lane.b32.xlu0 %v3045_v29, %s2678_s11 }
 0xbc4   :  { %v791_v30 = vpop.permute.xlu0 %790 }
 0xbc5   :  { %2062 = vmatmul.mubr.msk.bf16.vlgmr.msra.gmra.mrb[8].mxu1 %vm288_vm1, %v791_v30 }
 0xbc6   :  { %2074 = vmatpush3.bf16.msra.mxu1 %v2949_v6  ;;  %2077 = vmatprep.mubr.msk.bf16.mxu1 %vm2675_vm0, %v2674_v0 }
 0xbc7   :  { %2075 = vmatprep.subr.bf16.mxu1 %v2674_v0 }
 0xbca   :  { %2076 = vmatpush3.bf16.msra.mxu1 %v2952_v8 }
 0xbcb   :  { %2089 = vmatprep.subr.bf16.mxu1 %v2674_v0 }
 0xc98   :  { %v829_v31 = vpop.f32.mrb[8].mxu1 }
 0xc99   :  { %v830_v32 = vadd.f32 %v2985_v34, %v829_v31  ;;  %v2063_v33 = vpop.f32.mrb[9].mxu1 }
 0xc9a   :  { %v832_v35 = vpop.f32.mrb[10].mxu1 }
 0xc9b   :  { %843 = vrot.lane.b32.xlu1 %v830_v32, %s2664_s25  ;;  %v2064_v36 = vpop.f32.mrb[11].mxu1  ;;  %v835_v38 = vadd.f32 %v830_v32, %v789_v37 }
 0xc9d   :  { %v1907_v39 = vmul.f32 -1.442695, %v835_v38 }
 0xc9f   :  { %2270 = vpow2.f32 %v1907_v39 }
 0xca9   :  { %v2271_v40 = vpop.eup %2270 }
 0xcaa   :  { %v839_v41 = vadd.f32 1.0, %v2271_v40 }
 0xcac   :  { %2272 = vrcp.f32 %v839_v41 }
 0xcb6   :  { %v2273_v43 = vpop.eup %2272 }
 0xcb7   :  { %v853_v49 = vsub.f32 1.0, %v2273_v43  ;;  %v859_v51 = vmul.f32 %v2273_v43, %v766_v28 }
 0xd0d   :  { %v844_v44 = vpop.permute.xlu1 %843 }
 0xd0e   :  { %v846_v45 = vmul.f32 %v2273_v43, %v844_v44 }
 0xd10   :  { %848 = vrot.lane.b32.xlu0 %v846_v45, %s2664_s25 }
 0xd82   :  { %v849_v46 = vpop.permute.xlu0 %848 }
 0xd83   :  { %v851_v47 = vadd.f32 %v849_v46, %v789_v37 }
 0xd85   :  { %2274 = vtanh.f32 %v851_v47 }
 0xd8f   :  { %v2275_v48 = vpop.eup %2274 }
 0xd90   :  { %855 = vrot.lane.b32.xlu1 %v2275_v48, %s2678_s11 }
 0xe02   :  { %v856_v50 = vpop.permute.xlu1 %855 }
 0xe03   :  { %v858_v52 = vmul.f32 %v856_v50, %v853_v49  ;;  %v1071_v50 = vld [vmem:[#allocation2 + $0xe] sm:$0x3] }
 0xe05   :  { %v860_v53 = vadd.f32 %v859_v51, %v858_v52 }
 0xe07   :  { %v3060_v54 = vpack.c.bf16 %v860_v53, %v860_v53 }
 0xe09   :  { %884 = vrot.lane.b32.xlu0 %v3060_v54, %s2678_s11 }
 0xe7b   :  { %v885_v55 = vpop.permute.xlu0 %884 }
 0xe7c   :  { %2070 = vmatmul.mubr.msk.bf16.vlgmr.msra.gmra.mrb[12].mxu0 %vm288_vm1, %v885_v55 }
 0xe7d   :  { %2082 = vmatpush3.bf16.msra.mxu0 %v2949_v6  ;;  %2085 = vmatprep.mubr.msk.bf16.mxu0 %vm2675_vm0, %v2674_v0 }
 0xe7e   :  { %2083 = vmatprep.subr.bf16.mxu0 %v2674_v0 }
 0xe81   :  { %2084 = vmatpush3.bf16.msra.mxu0 %v2952_v8 }
 0xe82   :  { %2097 = vmatprep.subr.bf16.mxu0 %v2674_v0 }
 0xf4f   :  { %v923_v56 = vpop.f32.mrb[12].mxu0 }
 0xf50   :  { %v924_v57 = vadd.f32 %v2985_v34, %v923_v56  ;;  %v2071_v58 = vpop.f32.mrb[13].mxu0 }
 0xf51   :  { %v926_v59 = vpop.f32.mrb[14].mxu0 }
 0xf52   :  { %937 = vrot.lane.b32.xlu1 %v924_v57, %s2664_s25  ;;  %v2072_v60 = vpop.f32.mrb[15].mxu0  ;;  %v929_v62 = vadd.f32 %v924_v57, %v883_v61  ;;  %v493_v59 = vrot.slane %v3000_v19, %v2955_v10 }
 0xf53   :  { %v681_v60 = vrot.slane %v3030_v2, %v2955_v10 }
 0xf54   :  { %v1909_v6 = vmul.f32 -1.442695, %v929_v62  ;;  %v869_v62 = vrot.slane %v3060_v54, %v2955_v10 }
 0xf56   :  { %2276 = vpow2.f32 %v1909_v6  ;;  %v876_v6 = vrot.slane %v869_v62, %v2955_v10 }
 0xf60   :  { %v2277_v63 = vpop.eup %2276 }
 0xf61   :  { %v933_v1 = vadd.f32 1.0, %v2277_v63 }
 0xf63   :  { %2278 = vrcp.f32 %v933_v1 }
 0xf6d   :  { %v2279_v3 = vpop.eup %2278 }
 0xf6e   :  { %v947_v12 = vsub.f32 1.0, %v2279_v3  ;;  %v953_v14 = vmul.f32 %v2279_v3, %v860_v53 }
 0xfc4   :  { %v938_v4 = vpop.permute.xlu1 %937 }
 0xfc5   :  { %v940_v8 = vmul.f32 %v2279_v3, %v938_v4 }
 0xfc7   :  { %942 = vrot.lane.b32.xlu0 %v940_v8, %s2664_s25  ;;  %v587_v8 = vrot.slane %v3015_v42, %v2955_v10 }
0x1039   :  { %v943_v5 = vpop.permute.xlu0 %942 }
0x103a   :  { %v945_v7 = vadd.f32 %v943_v5, %v883_v61  ;;  %v688_v61 = vrot.slane %v681_v60, %v2955_v10 }
0x103c   :  { %2280 = vtanh.f32 %v945_v7 }
0x1046   :  { %v2281_v9 = vpop.eup %2280 }
0x1047   :  { %949 = vrot.lane.b32.xlu1 %v2281_v9, %s2678_s11  ;;  %v594_v9 = vrot.slane %v587_v8, %v2955_v10 }
0x10b9   :  { %v950_v13 = vpop.permute.xlu1 %949 }
0x10ba   :  { %v952_v15 = vmul.f32 %v950_v13, %v947_v12  ;;  %v775_v12 = vrot.slane %v3045_v29, %v2955_v10  ;;  %v2225_v29 = vld [vmem:[#allocation18 + $0x8] sm:$0xff]  }
0x10bc   :  { %v954_v16 = vadd.f32 %v953_v14, %v952_v15  ;;  %v782_v13 = vrot.slane %v775_v12, %v2955_v10  ;;  %v2224_v15 = vld [vmem:[#allocation18] sm:$0xff]  }
0x10be   :  { %v3075_v17 = vpack.c.bf16 %v954_v16, %v954_v16 }
0x10c0   :  { %978 = vrot.lane.b32.xlu0 %v3075_v17, %s2678_s11  ;;  %v963_v42 = vrot.slane %v3075_v17, %v2955_v10 }
0x10c2   :  { %v970_v14 = vrot.slane %v963_v42, %v2955_v10 }
0x1132   :  { %v979_v18 = vpop.permute.xlu0 %978 }
0x1133   :  { %2078 = vmatmul.mubr.msk.bf16.vlgmr.msra.gmra.mrb[12].mxu1 %vm288_vm1, %v979_v18 }
0x1134   :  { %2093 = vmatprep.mubr.msk.bf16.mxu1 %vm2675_vm0, %v2674_v0  ;;  %2090 = vmatpush3.bf16.msra.mxu1 %v2224_v15 }
0x1135   :  { %2091 = vmatprep.subr.bf16.mxu1 %v2674_v0 }
0x1138   :  { %2092 = vmatpush3.bf16.msra.mxu1 %v2225_v29 }
0x1139   :  { %2117 = vmatprep.subr.bf16.mxu1 %v2674_v0 }
0x1206   :  { %v1017_v20 = vpop.f32.mrb[12].mxu1 }
0x1207   :  { %v1018_v11 = vadd.f32 %v2985_v34, %v1017_v20  ;;  %v2079_v21 = vpop.f32.mrb[13].mxu1 }
0x1208   :  { %v1020_v22 = vpop.f32.mrb[14].mxu1 }
0x1209   :  { %1031 = vrot.lane.b32.xlu1 %v1018_v11, %s2664_s25  ;;  %v2080_v23 = vpop.f32.mrb[15].mxu1  ;;  %v1023_v25 = vadd.f32 %v1018_v11, %v977_v24 }
0x120b   :  { %v1911_v26 = vmul.f32 -1.442695, %v1023_v25 }
0x120d   :  { %2282 = vpow2.f32 %v1911_v26 }
0x1217   :  { %v2283_v27 = vpop.eup %2282 }
0x1218   :  { %v1027_v28 = vadd.f32 1.0, %v2283_v27  ;;  %v3142_v27 = vld [vmem:[#allocation9] sm:$0xff]  }
0x121a   :  { %2284 = vrcp.f32 %v1027_v28  ;;  %v1396_v28 = vsel %vm288_vm1, %v3142_v27, 0 }
0x1224   :  { %v2285_v30 = vpop.eup %2284 }
0x1225   :  { %v1041_v37 = vsub.f32 1.0, %v2285_v30  ;;  %v1047_v39 = vmul.f32 %v2285_v30, %v954_v16 }
0x127b   :  { %v1032_v31 = vpop.permute.xlu1 %1031 }
0x127c   :  { %v1034_v32 = vmul.f32 %v2285_v30, %v1032_v31  ;;  %v3147_v30 = vld [vmem:[#allocation9 + $0x8] sm:$0xff]  }
0x127d   :  { %v1399_v31 = vsel %vm288_vm1, %v3147_v30, 0 }
0x127e   :  { %1036 = vrot.lane.b32.xlu0 %v1034_v32, %s2664_s25  ;;  %v3152_v32 = vld [vmem:[#allocation9 + $0x10] sm:$0xff]  }
0x12f0   :  { %v1037_v33 = vpop.permute.xlu0 %1036 }
0x12f1   :  { %v1039_v35 = vadd.f32 %v1037_v33, %v977_v24  ;;  %v1402_v33 = vsel %vm288_vm1, %v3152_v32, 0 }
0x12f3   :  { %2286 = vtanh.f32 %v1039_v35  ;;  %v3157_v35 = vld [vmem:[#allocation9 + $0x18] sm:$0xff]  }
0x12fd   :  { %v2287_v36 = vpop.eup %2286 }
0x12fe   :  { %1043 = vrot.lane.b32.xlu1 %v2287_v36, %s2678_s11  ;;  %v1405_v36 = vsel %vm288_vm1, %v3157_v35, 0 }
0x1370   :  { %v1044_v38 = vpop.permute.xlu1 %1043 }
0x1371   :  { %v1046_v40 = vmul.f32 %v1044_v38, %v1041_v37  ;;  %v3162_v37 = vld [vmem:[#allocation9 + $0x20] sm:$0xff]  }
0x1372   :  { %v1408_v38 = vsel %vm288_vm1, %v3162_v37, 0 }
0x1373   :  { %v3086_v41 = vadd.f32 %v1047_v39, %v1046_v40  ;;  %v3167_v39 = vld [vmem:[#allocation9 + $0x28] sm:$0xff]  }
0x1374   :  { %v1411_v40 = vsel %vm288_vm1, %v3167_v39, 0 }
0x1375   :  { %v1049_v43 = vpack.c.bf16 %v3086_v41, %v3086_v41 }
0x1377   :  { %1072 = vrot.lane.b32.xlu0 %v1049_v43, %s2678_s11  ;;  %v1057_v19 = vrot.slane %v1049_v43, %v2955_v10 }
0x1379   :  { %v1064_v63 = vrot.slane %v1057_v19, %v2955_v10 }
0x13e9   :  { %v1073_v44 = vpop.permute.xlu0 %1072 }
0x13ea   :  { %2086 = vmatmul.mubr.msk.bf16.vlgmr.msra.gmra.mrb[16].mxu0 %vm288_vm1, %v1073_v44  ;;  %v3177_v44 = vld [vmem:[#allocation9 + $0x38] sm:$0xff]  }
0x13eb   :  { %2113 = vmatprep.mubr.msk.bf16.mxu0 %vm2675_vm0, %v2674_v0  ;;  %2098 = vmatpush3.bf16.xpose.msra.mxu0 %v1396_v28  ;;  %v2235_v28 = vld [vmem:[#allocation9 + $0x60] sm:$0xff]  }
0x13ec   :  { %2099 = vmatprep.subr.bf16.mxu0 %v2674_v0 }
0x13f3   :  { %2100 = vmatpush3.bf16.xpose.msra.mxu0 %v1399_v31  ;;  %v1515_v31 = vsel %vm288_vm1, %v2235_v28, 0 }
0x13f4   :  { %2101 = vmatprep.subr.bf16.mxu0 %v2674_v0 }
0x13fb   :  { %2102 = vmatpush3.bf16.xpose.msra.mxu0 %v1402_v33  ;;  %v2237_v33 = vld [vmem:[#allocation9 + $0x68] sm:$0xff]  }
0x13fc   :  { %2103 = vmatprep.subr.bf16.mxu0 %v2674_v0 }
0x1403   :  { %2104 = vmatpush3.bf16.xpose.msra.mxu0 %v1405_v36  ;;  %v1518_v36 = vsel %vm288_vm1, %v2237_v33, 0 }
0x1404   :  { %2105 = vmatprep.subr.bf16.mxu0 %v2674_v0 }
0x140b   :  { %2106 = vmatpush3.bf16.xpose.msra.mxu0 %v1408_v38  ;;  %v2239_v38 = vld [vmem:[#allocation9 + $0x70] sm:$0xff]  }
0x140c   :  { %2107 = vmatprep.subr.bf16.mxu0 %v2674_v0 }
0x1413   :  { %2108 = vmatpush3.bf16.xpose.msra.mxu0 %v1411_v40  ;;  %v1521_v40 = vsel %vm288_vm1, %v2239_v38, 0 }
0x1414   :  { %2109 = vmatprep.subr.bf16.mxu0 %v2674_v0 }
0x14bd   :  { %v1111_v45 = vpop.f32.mrb[16].mxu0 }
0x14be   :  { %v1112_v46 = vadd.f32 %v2985_v34, %v1111_v45  ;;  %v2087_v47 = vpop.f32.mrb[17].mxu0  ;;  %v500_v34 = vrot.slane %v493_v59, %v2955_v10  ;;  %v1417_v45 = vsel %vm288_vm1, %v3177_v44, 0 }
0x14bf   :  { %v1114_v48 = vpop.f32.mrb[18].mxu0 }
0x14c0   :  { %1125 = vrot.lane.b32.xlu1 %v1112_v46, %s2664_s25  ;;  %v2088_v49 = vpop.f32.mrb[19].mxu0  ;;  %v1117_v51 = vadd.f32 %v1112_v46, %v1071_v50 }
0x14c2   :  { %v1913_v52 = vmul.f32 -1.442695, %v1117_v51 }
0x14c4   :  { %2288 = vpow2.f32 %v1913_v52 }
0x14ce   :  { %v2289_v53 = vpop.eup %2288 }
0x14cf   :  { %v1121_v55 = vadd.f32 1.0, %v2289_v53 }
0x14d1   :  { %2290 = vrcp.f32 %v1121_v55 }
0x14db   :  { %v2291_v56 = vpop.eup %2290 }
0x14dc   :  { %v1135_v16 = vsub.f32 1.0, %v2291_v56  ;;  %v1141_v20 = vmul.f32 %v2291_v56, %v3086_v41  ;;  %v3172_v41 = vld [vmem:[#allocation9 + $0x30] sm:$0xff]  }
0x14dd   :  { %v1414_v43 = vsel %vm288_vm1, %v3172_v41, 0 }
0x14de   :  { %2110 = vmatpush3.bf16.xpose.msra.mxu0 %v1414_v43  ;;  %v2241_v43 = vld [vmem:[#allocation9 + $0x78] sm:$0xff]  }
0x14df   :  { %2111 = vmatprep.subr.bf16.mxu0 %v2674_v0 }
0x14e6   :  { %2112 = vmatpush3.bf16.xpose.msra.mxu0 %v1417_v45  ;;  %v1524_v45 = vsel %vm288_vm1, %v2241_v43, 0 }
0x14e7   :  { %2137 = vmatprep.subr.bf16.mxu0 %v2674_v0 }
0x1532   :  { %v1126_v57 = vpop.permute.xlu1 %1125 }
0x1533   :  { %v1128_v58 = vmul.f32 %v2291_v56, %v1126_v57 }
0x1535   :  { %1130 = vrot.lane.b32.xlu0 %v1128_v58, %s2664_s25  ;;  %s2680_s25 = smov [#allocation25]  }
0x1536   :  { %s1857_s27 = sshll.u32 %s2680_s25, 4  ;;  %s1858_s27 = int_to_ptr.vmem [resolvable:$true] %s1857_s27 }
0x1537   :  { %s2574_s23 = scalar_lea.vmem %s1858_s27, 32  ;;  %p2579_p13 = scmp.lt.s32.totalorder %s1858_s27, %s1858_s27 }
0x1538   :  { %p2575_p12 = scmp.ne.s32.totalorder %s1858_s27, %s2574_s23  ;;  %p2580_p0 = scmp.lt.s32.totalorder %s2574_s23, %s2574_s23 }
0x1539   :  { %501 = vrot.lane.b32.xlu0 %v500_v34, %s2678_s11 }
0x153a   :  { %p2581_p1 = por %p2580_p0, %p2579_p13 }
0x153c   :  { %p2582_p2 = pnand %p2581_p1, %p2575_p12 }
0x153d   :  { %689 = vrot.lane.b32.xlu0 %v688_v61, %s2678_s11 }
0x1541   :  { %877 = vrot.lane.b32.xlu0 %v876_v6, %s2678_s11 }
0x1545   :  { %1065 = vrot.lane.b32.xlu0 %v1064_v63, %s2678_s11 }
0x15a7   :  { %v1131_v2 = vpop.permute.xlu0 %1130 }
0x15a8   :  { %v1133_v1 = vadd.f32 %v1131_v2, %v1071_v50 }
0x15aa   :  { %2292 = vtanh.f32 %v1133_v1 }
0x15ab   :  { %v502_v3 = vpop.permute.xlu0 %501 }
0x15ac   :  { %505 = vst.msk [vmem:[#allocation3] sm:$0x1] %vm504_vm3, %v502_v3 }
0x15af   :  { %v690_v54 = vpop.permute.xlu0 %689 }
0x15b0   :  { %693 = vst.msk [vmem:[#allocation3 + $0x2] sm:$0x1] %vm504_vm3, %v690_v54 }
0x15b3   :  { %v878_v4 = vpop.permute.xlu0 %877  ;;  %v1170_v50 = vld [vmem:[#allocation3] sm:$0x1] }
0x15b4   :  { %v2293_v5 = vpop.eup %2292  ;;  %881 = vst.msk [vmem:[#allocation3 + $0x4] sm:$0x1] %vm504_vm3, %v878_v4  ;;  %v1181_v59 = vshrl.u32 %v1170_v50, 16 }
0x15b5   :  { %1137 = vrot.lane.b32.xlu1 %v2293_v5, %s2678_s11 }
0x15b7   :  { %v1066_v7 = vpop.permute.xlu0 %1065  ;;  %v1172_v49 = vld [vmem:[#allocation3 + $0x2] sm:$0x1] }
0x15b8   :  { %1069 = vst.msk [vmem:[#allocation3 + $0x6] sm:$0x1] %vm504_vm3, %v1066_v7  ;;  %v1187_v58 = vshrl.u32 %v1172_v49, 16 }
0x15b9   :  { %595 = vrot.lane.b32.xlu1 %v594_v9, %s2678_s11 }
0x15bb   :  { %v1174_v55 = vld [vmem:[#allocation3 + $0x4] sm:$0x1] }
0x15bc   :  { %v1193_v19 = vshrl.u32 %v1174_v55, 16 }
0x15bd   :  { %783 = vrot.lane.b32.xlu1 %v782_v13, %s2678_s11 }
0x15bf   :  { %v1176_v56 = vld [vmem:[#allocation3 + $0x6] sm:$0x1] }
0x15c0   :  { %v1199_v63 = vshrl.u32 %v1176_v56, 16 }
0x15c1   :  { %971 = vrot.lane.b32.xlu1 %v970_v14, %s2678_s11 }
0x1627   :  { %v1138_v18 = vpop.permute.xlu1 %1137 }
0x1628   :  { %v1140_v11 = vmul.f32 %v1138_v18, %v1135_v16  ;;  %v2227_v18 = vld [vmem:[#allocation9 + $0x40] sm:$0xff]  }
0x162a   :  { %v3131_v21 = vadd.f32 %v1141_v20, %v1140_v11 }
0x162b   :  { %v596_v22 = vpop.permute.xlu1 %595 }
0x162c   :  { %v1143_v17 = vpack.c.bf16 %v3131_v21, %v3131_v21  ;;  %599 = vst.msk [vmem:[#allocation3 + $0x1] sm:$0x1] %vm504_vm3, %v596_v22  ;;  %v1503_v22 = vsel %vm288_vm1, %v2227_v18, 0 }
0x162e   :  { %v1151_v23 = vrot.slane %v1143_v17, %v2955_v10  ;;  %v2229_v17 = vld [vmem:[#allocation9 + $0x48] sm:$0xff]  }
0x162f   :  { %v784_v24 = vpop.permute.xlu1 %783 }
0x1630   :  { %787 = vst.msk [vmem:[#allocation3 + $0x3] sm:$0x1] %vm504_vm3, %v784_v24  ;;  %v1158_v25 = vrot.slane %v1151_v23, %v2955_v10  ;;  %v1506_v23 = vsel %vm288_vm1, %v2229_v17, 0 }
0x1632   :  { %1159 = vrot.lane.b32.xlu1 %v1158_v25, %s2678_s11  ;;  %v2233_v25 = vld [vmem:[#allocation9 + $0x58] sm:$0xff]  }
0x1633   :  { %v972_v26 = vpop.permute.xlu1 %971  ;;  %v1171_v48 = vld [vmem:[#allocation3 + $0x1] sm:$0x1] }
0x1634   :  { %975 = vst.msk [vmem:[#allocation3 + $0x5] sm:$0x1] %vm504_vm3, %v972_v26  ;;  %v1182_v53 = vshrl.u32 %v1171_v48, 16  ;;  %v1180_v34 = vpack.i.b16 %v1171_v48, %v1170_v50  ;;  %v1512_v26 = vsel %vm288_vm1, %v2233_v25, 0 }
0x1636   :  { %v1183_v6 = vpack.i.b16 %v1182_v53, %v1181_v59 }
0x1637   :  { %v1173_v47 = vld [vmem:[#allocation3 + $0x3] sm:$0x1] }
0x1638   :  { %v1188_v51 = vshrl.u32 %v1173_v47, 16  ;;  %v1186_v57 = vpack.i.b16 %v1173_v47, %v1172_v49 }
0x163a   :  { %v1189_v60 = vpack.i.b16 %v1188_v51, %v1187_v58  ;;  %v1238_v54 = vcombine.low %v1180_v34, %v1186_v57 }
0x163b   :  { %v1175_v52 = vld [vmem:[#allocation3 + $0x5] sm:$0x1] }
0x163c   :  { %v1194_v61 = vshrl.u32 %v1175_v52, 16  ;;  %v1192_v2 = vpack.i.b16 %v1175_v52, %v1174_v55  ;;  %v1240_v7 = vcombine.low %v1183_v6, %v1189_v60  ;;  %v1248_v12 = vrot.slane %v1238_v54, %v2955_v10 }
0x163e   :  { %v1195_v4 = vpack.i.b16 %v1194_v61, %v1193_v19  ;;  %v1262_v42 = vrot.slane %v1240_v7, %v2955_v10  ;;  %v2243_v7 = vld [vmem:[#allocation19 + $0x8] sm:$0xff]  }
0x16a4   :  { %v1160_v46 = vpop.permute.xlu1 %1159 }
0x16a5   :  { %1163 = vst.msk [vmem:[#allocation3 + $0x7] sm:$0x1] %vm504_vm3, %v1160_v46 }
0x16ac   :  { %v1177_v62 = vld [vmem:[#allocation3 + $0x7] sm:$0x1] }
0x16ad   :  { %v1198_v1 = vpack.i.b16 %v1177_v62, %v1176_v56  ;;  %v1200_v3 = vshrl.u32 %v1177_v62, 16 }
0x16af   :  { %v1201_v8 = vpack.i.b16 %v1200_v3, %v1199_v63  ;;  %v1239_v5 = vcombine.low %v1192_v2, %v1198_v1  ;;  %v2244_v1 = vld [vmem:[#allocation21] sm:$0xff]  }
0x16b1   :  { %v1241_v9 = vcombine.low %v1195_v4, %v1201_v8  ;;  %v1255_v13 = vrot.slane %v1239_v5, %v2955_v10  ;;  %v2242_v8 = vld [vmem:[#allocation19] sm:$0xff]  }
0x16b3   :  { %v1269_v14 = vrot.slane %v1241_v9, %v2955_v10  ;;  %v1270_v15 = vcombine.low %v1248_v12, %v1255_v13  ;;  %v2245_v9 = vld [vmem:[#allocation21 + $0x8] sm:$0xff]  }
0x16b5   :  { %v1271_v16 = vcombine.low %v1262_v42, %v1269_v14  ;;  %v1278_v29 = vrot.slane %v1270_v15, %v2955_v10 }
0x16b7   :  { %v1285_v20 = vrot.slane %v1271_v16, %v2955_v10  ;;  %v2231_v10 = vld [vmem:[#allocation9 + $0x50] sm:$0xff]  }
0x16b8   :  { %v1509_v24 = vsel %vm288_vm1, %v2231_v10, 0 }
0x16b9   :  { %v3189_v11 = vcombine.low %v1278_v29, %v1285_v20 }
0x16bb   :  { %2094 = vmatmul.mubr.msk.bf16.vlgmr.msra.gmra.mrb[16].mxu1 %vm288_vm1, %v3189_v11 }
0x16bc   :  { %2118 = vmatpush3.bf16.xpose.msra.mxu1 %v1503_v22  ;;  %2133 = vmatprep.mubr.msk.bf16.mxu1 %vm2675_vm0, %v2674_v0 }
0x16bd   :  { %2119 = vmatprep.subr.bf16.mxu1 %v2674_v0 }
0x16c4   :  { %2120 = vmatpush3.bf16.xpose.msra.mxu1 %v1506_v23 }
0x16c5   :  { %2121 = vmatprep.subr.bf16.mxu1 %v2674_v0 }
0x16cc   :  { %2122 = vmatpush3.bf16.xpose.msra.mxu1 %v1509_v24  ;;  %v1943_v24 = vld [vmem:[#allocation22] ss:$0 sm:$0xff] }
0x16cd   :  { %2123 = vmatprep.subr.bf16.mxu1 %v2674_v0 }
0x16d4   :  { %2124 = vmatpush3.bf16.xpose.msra.mxu1 %v1512_v26 }
0x16d5   :  { %2125 = vmatprep.subr.bf16.mxu1 %v2674_v0 }
0x16dc   :  { %2126 = vmatpush3.bf16.xpose.msra.mxu1 %v1515_v31 }
0x16dd   :  { %2127 = vmatprep.subr.bf16.mxu1 %v2674_v0 }
0x16e4   :  { %2128 = vmatpush3.bf16.xpose.msra.mxu1 %v1518_v36 }
0x16e5   :  { %2129 = vmatprep.subr.bf16.mxu1 %v2674_v0 }
0x16ec   :  { %2130 = vmatpush3.bf16.xpose.msra.mxu1 %v1521_v40 }
0x16ed   :  { %2131 = vmatprep.subr.bf16.mxu1 %v2674_v0 }
0x16f4   :  { %2132 = vmatpush3.bf16.xpose.msra.mxu1 %v1524_v45 }
0x16f5   :  { %2157 = vmatprep.subr.bf16.mxu1 %v2674_v0 }
0x178e   :  { %v1336_v46 = vpop.f32.mrb[16].mxu1 }
0x178f   :  { %v1343_v47 = vpack.c.bf16 %v1336_v46, %v1336_v46  ;;  %v2095_v48 = vpop.f32.mrb[17].mxu1 }
0x1790   :  { %v1339_v49 = vpop.f32.mrb[18].mxu1 }
0x1791   :  { %v1344_v50 = vpack.c.bf16 %v1339_v49, %v1339_v49  ;;  %v2096_v51 = vpop.f32.mrb[19].mxu1  ;;  %2114 = vmatmul.mubr.msk.bf16.vlgmr.msra.gmra.mrb[20].mxu0 %vm288_vm1, %v1343_v47 }
0x1792   :  { %2138 = vmatpush3.bf16.msra.mxu0 %v3142_v27  ;;  %2153 = vmatprep.mubr.msk.bf16.mxu0 %vm2675_vm0, %v2674_v0  ;;  %v1917_v27 = vld [vmem:[#allocation10] ss:$0 sm:$0xff] }
0x1793   :  { %2134 = vmatmul.mubr.msk.bf16.vlgmr.msra.gmra.mrb[20].mxu1 %vm288_vm1, %v1344_v50  ;;  %2139 = vmatprep.subr.bf16.mxu0 %v2674_v0 }
0x1794   :  { %2158 = vmatpush3.bf16.msra.mxu1 %v2227_v18  ;;  %2173 = vmatprep.mubr.msk.bf16.mxu1 %vm2675_vm0, %v2674_v0 }
0x1795   :  { %2159 = vmatprep.subr.bf16.mxu1 %v2674_v0 }
0x1796   :  { %2140 = vmatpush3.bf16.msra.mxu0 %v3147_v30 }
0x1797   :  { %2141 = vmatprep.subr.bf16.mxu0 %v2674_v0 }
0x1798   :  { %2160 = vmatpush3.bf16.msra.mxu1 %v2229_v17 }
0x1799   :  { %2161 = vmatprep.subr.bf16.mxu1 %v2674_v0 }
0x179a   :  { %2142 = vmatpush3.bf16.msra.mxu0 %v3152_v32 }
0x179b   :  { %2143 = vmatprep.subr.bf16.mxu0 %v2674_v0 }
0x179c   :  { %2162 = vmatpush3.bf16.msra.mxu1 %v2231_v10 }
0x179d   :  { %2163 = vmatprep.subr.bf16.mxu1 %v2674_v0 }
0x179e   :  { %2144 = vmatpush3.bf16.msra.mxu0 %v3157_v35 }
0x179f   :  { %2145 = vmatprep.subr.bf16.mxu0 %v2674_v0 }
0x17a0   :  { %2164 = vmatpush3.bf16.msra.mxu1 %v2233_v25 }
0x17a1   :  { %2165 = vmatprep.subr.bf16.mxu1 %v2674_v0 }
0x17a2   :  { %2146 = vmatpush3.bf16.msra.mxu0 %v3162_v37 }
0x17a3   :  { %2147 = vmatprep.subr.bf16.mxu0 %v2674_v0 }
0x17a4   :  { %2166 = vmatpush3.bf16.msra.mxu1 %v2235_v28 }
0x17a5   :  { %2167 = vmatprep.subr.bf16.mxu1 %v2674_v0 }
0x17a6   :  { %2148 = vmatpush3.bf16.msra.mxu0 %v3167_v39 }
0x17a7   :  { %2149 = vmatprep.subr.bf16.mxu0 %v2674_v0 }
0x17a8   :  { %2168 = vmatpush3.bf16.msra.mxu1 %v2237_v33 }
0x17a9   :  { %2169 = vmatprep.subr.bf16.mxu1 %v2674_v0 }
0x17aa   :  { %2150 = vmatpush3.bf16.msra.mxu0 %v3172_v41 }
0x17ab   :  { %2151 = vmatprep.subr.bf16.mxu0 %v2674_v0 }
0x17ac   :  { %2170 = vmatpush3.bf16.msra.mxu1 %v2239_v38 }
0x17ad   :  { %2171 = vmatprep.subr.bf16.mxu1 %v2674_v0 }
0x17ae   :  { %2152 = vmatpush3.bf16.msra.mxu0 %v3177_v44 }
0x17af   :  { %2177 = vmatprep.subr.bf16.mxu0 %v2674_v0 }
0x17b0   :  { %2172 = vmatpush3.bf16.msra.mxu1 %v2241_v43 }
0x17b1   :  { %2185 = vmatprep.subr.bf16.mxu1 %v2674_v0 }
0x1864   :  { %v1453_v30 = vpop.f32.mrb[20].mxu0 }
0x1865   :  { %v1454_v32 = vadd.f32 %v1917_v27, %v1453_v30  ;;  %v2115_v35 = vpop.f32.mrb[21].mxu0 }
0x1866   :  { %v1456_v37 = vpop.f32.mrb[22].mxu0  ;;  %v1560_v39 = vpop.f32.mrb[20].mxu1 }
0x1867   :  { %v1561_v52 = vadd.f32 %v1917_v27, %v1560_v39  ;;  %v2135_v41 = vpop.f32.mrb[21].mxu1  ;;  %1566 = vmax.xlane.f32.xlu0 %v1454_v32  ;;  %v2116_v53 = vpop.f32.mrb[23].mxu0 }
0x1868   :  { %v1563_v55 = vpop.f32.mrb[22].mxu1 }
0x1869   :  { %1568 = vmax.xlane.f32.xlu1 %v1561_v52  ;;  %v2136_v56 = vpop.f32.mrb[23].mxu1 }
0x18f4   :  { %v1567_v57 = vpop.xlane.xlu0 %1566 }
0x18f5   :  { %v1570_v44 = vsub.f32 %v1454_v32, %v1567_v57 }
0x18f6   :  { %v1569_v58 = vpop.xlane.xlu1 %1568 }
0x18f7   :  { %v1572_v59 = vmul.f32 1.442695, %v1570_v44  ;;  %v1571_v34 = vsub.f32 %v1561_v52, %v1569_v58 }
0x18f9   :  { %2294 = vpow2.f32 %v1572_v59  ;;  %v1574_v60 = vmul.f32 1.442695, %v1571_v34 }
0x18fb   :  { %2296 = vpow2.f32 %v1574_v60 }
0x1903   :  { %v2295_v61 = vpop.eup %2294 }
0x1904   :  { %1576 = vadd.xlane.f32.xlu0 %v2295_v61 }
0x1905   :  { %v2297_v62 = vpop.eup %2296 }
0x1908   :  { %1578 = vadd.xlane.f32.xlu0 %v2297_v62 }
0x1991   :  { %v1577_v6 = vpop.xlane.xlu0 %1576 }
0x1992   :  { %2298 = vrcp.f32 %v1577_v6 }
0x1995   :  { %v1579_v19 = vpop.xlane.xlu0 %1578 }
0x1996   :  { %2300 = vrcp.f32 %v1579_v19 }
0x199c   :  { %v2299_v63 = vpop.eup %2298 }
0x199d   :  { %v1582_v2 = vmul.f32 %v2299_v63, %v2295_v61 }
0x199f   :  { %v1584_v3 = vpack.c.bf16 %v1582_v2, %v1582_v2  ;;  %1837 = vst [vmem:[#allocation27] sm:$0xff] %v1582_v2 }
0x19a0   :  { %v2301_v54 = vpop.eup %2300 }
0x19a1   :  { %2154 = vmatmul.mubr.bf16.vlgmr.msra.gmra.mrb[24].mxu0 %v1584_v3  ;;  %v1583_v4 = vmul.f32 %v2301_v54, %v2297_v62 }
0x19a2   :  { %2178 = vmatpush3.bf16.msra.mxu0 %v2244_v1  ;;  %2181 = vmatprep.mubr.msk.bf16.mxu0 %vm2675_vm0, %v2674_v0 }
0x19a3   :  { %v1585_v5 = vpack.c.bf16 %v1583_v4, %v1583_v4  ;;  %1838 = vst [vmem:[#allocation27 + $0x8] sm:$0xff] %v1583_v4  ;;  %2179 = vmatprep.subr.bf16.mxu0 %v2674_v0 }
0x19a5   :  { %2174 = vmatmul.mubr.bf16.vlgmr.msra.gmra.mrb[24].mxu1 %v1585_v5 }
0x19a6   :  { %2186 = vmatpush3.bf16.msra.mxu1 %v2242_v8  ;;  %2189 = vmatprep.mubr.msk.bf16.mxu1 %vm2675_vm0, %v2674_v0 }
0x19a7   :  { %2187 = vmatprep.subr.bf16.mxu1 %v2674_v0  ;;  %2180 = vmatpush3.bf16.msra.mxu0 %v2245_v9 }
0x19aa   :  { %2188 = vmatpush3.bf16.msra.mxu1 %v2243_v7 }
0x19ad   :  { %2190 = vmatmul.mubr.msk.bf16.vlgmr.msra.gmra.mrb[28].mxu1 %vm288_vm1, %v3189_v11 }
0x1a74   :  { %v1628_v12 = vpop.f32.mrb[24].mxu0 }
0x1a75   :  { %v2155_v13 = vpop.f32.mrb[25].mxu0 }
0x1a76   :  { %v1631_v42 = vpop.f32.mrb[26].mxu0 }
0x1a77   :  { %v2156_v14 = vpop.f32.mrb[27].mxu0 }
0x1a78   :  { %v1676_v15 = vpop.f32.mrb[24].mxu1 }
0x1a79   :  { %v1944_v16 = vpack.c.bf16 %v1676_v15, %v1628_v12  ;;  %v2175_v18 = vpop.f32.mrb[25].mxu1 }
0x1a7a   :  { %v1679_v29 = vpop.f32.mrb[26].mxu1 }
0x1a7b   :  { %v2176_v20 = vpop.f32.mrb[27].mxu1  ;;  %2182 = vmatmul.mubr.msk.bf16.vlgmr.msra.gmra.mrb[28].mxu0 %vm288_vm1, %v1944_v16 }
0x1a80   :  { %v1799_v22 = vpop.f32.mrb[28].mxu1 }
0x1a81   :  { %v2191_v17 = vpop.f32.mrb[29].mxu1 }
0x1a82   :  { %v1802_v0 = vpop.f32.mrb[30].mxu1 }
0x1a83   :  { %v2192_v23 = vpop.f32.mrb[31].mxu1 }
0x1b4e   :  { %v1746_v10 = vpop.f32.mrb[28].mxu0 }
0x1b4f   :  { %v1800_v11 = vadd.f32 %v1799_v22, %v1746_v10  ;;  %v2183_v25 = vpop.f32.mrb[29].mxu0 }
0x1b50   :  { %v1749_v26 = vpop.f32.mrb[30].mxu0 }
0x1b51   :  { %v1803_v28 = vadd.f32 %v1802_v0, %v1749_v26  ;;  %v2184_v31 = vpop.f32.mrb[31].mxu0  ;;  %v1813_v33 = vadd.f32 %v1943_v24, %v1800_v11 }
0x1b53   :  { %1815 = vmax.xlane.f32.xlu1 %v1813_v33  ;;  %v1814_v36 = vadd.f32 %v1943_v24, %v1803_v28 }
0x1b55   :  { %1817 = vmax.xlane.f32.xlu0 %v1814_v36 }
0x1be0   :  { %v1816_v38 = vpop.xlane.xlu1 %1815 }
0x1be1   :  { %v1819_v40 = vsub.f32 %v1813_v33, %v1816_v38 }
0x1be2   :  { %v1818_v43 = vpop.xlane.xlu0 %1817 }
0x1be3   :  { %v1821_v45 = vmul.f32 1.442695, %v1819_v40  ;;  %v1820_v46 = vsub.f32 %v1814_v36, %v1818_v43 }
0x1be5   :  { %2302 = vpow2.f32 %v1821_v45  ;;  %v1823_v47 = vmul.f32 1.442695, %v1820_v46 }
0x1be7   :  { %2304 = vpow2.f32 %v1823_v47 }
0x1bef   :  { %v2303_v48 = vpop.eup %2302 }
0x1bf0   :  { %1825 = vadd.xlane.f32.xlu1 %v2303_v48 }
0x1bf1   :  { %v2305_v49 = vpop.eup %2304 }
0x1bf2   :  { %1827 = vadd.xlane.f32.xlu0 %v2305_v49 }
0x1c01   :  { %1165 = vrot.lane.b32.xlu1 %v3131_v21, %s2678_s11 }
0x1c7d   :  { %v1826_v50 = vpop.xlane.xlu1 %1825 }
0x1c7e   :  { %2306 = vlog2.f32 %v1826_v50 }
0x1c7f   :  { %v1828_v51 = vpop.xlane.xlu0 %1827 }
0x1c80   :  { %2308 = vlog2.f32 %v1828_v51 }
0x1c81   :  { %v1166_v27 = vpop.permute.xlu1 %1165 }
0x1c82   :  { %1169 = vst.msk [vmem:[#allocation25] sm:$0x3] %vm1168_vm4, %v1166_v27 }
0x1c83   :  { %2585 = shalt.err (!%p2582_p2)
}
0x1c84   :  { %s2586_s3 = scalar_lea.hbm %s3308_s13, 32 }
0x1c85   :  { %p2587_p3 = scmp.ne.s32.totalorder %s3308_s13, %s2586_s3  ;;  %p2590_p4 = scmp.lt.u32.totalorder %s2586_s3, %s3308_s13 }
0x1c87   :  { %p2592_p5 = pnand %p2590_p4, %p2587_p3 }
0x1c89   :  { %2595 = shalt.err (!%p2592_p5)
}
0x1c8a   :  { %1860 = dma.vmem_to_hbm [thread:$0]  %s1858_s27, 32, %s3308_s13, [#allocation26]  }
0x1c8b   :  { %s2596_s19 = scalar_lea.vmem %s3252_s5, 256  ;;  %p2601_p7 = scmp.lt.s32.totalorder %s3252_s5, %s3252_s5 }
0x1c8c   :  { %p2597_p6 = scmp.ne.s32.totalorder %s3252_s5, %s2596_s19  ;;  %p2602_p8 = scmp.lt.s32.totalorder %s2596_s19, %s2596_s19 }
0x1c8e   :  { %p2603_p9 = por %p2602_p8, %p2601_p7 }
0x1c90   :  { %p2604_p10 = pnand %p2603_p9, %p2597_p6 }
0x1c92   :  { %2607 = shalt.err (!%p2604_p10)
}
0x1c93   :  { %s2608_s20 = scalar_lea.hbm %s3309_s14, 256 }
0x1c94   :  { %p2609_p11 = scmp.ne.s32.totalorder %s3309_s14, %s2608_s20  ;;  %p2612_p12 = scmp.lt.u32.totalorder %s2608_s20, %s3309_s14 }
0x1c96   :  { %p2614_p13 = pnand %p2612_p12, %p2609_p11 }
0x1c98   :  { %2617 = shalt.err (!%p2614_p13)
}
0x1c99   :  { %s2682_s13 = smov 128   ;;  %s2683_s30 = smov 8   ;;  %v2307_v21 = vpop.eup %2306 }
0x1c9a   :  { %1872 = dma.vmem_to_hbm [thread:$0]  %s3252_s5, 256, %s3309_s14, [#allocation26], %s2682_s13, %s2682_s13, %s2683_s30   ;;  %v1830_v30 = vmul.f32 0.6931472, %v2307_v21  ;;  %v2309_v32 = vpop.eup %2308 }
0x1c9b   :  { %s2684_s24 = smov [#allocation24]   ;;  %v1832_v37 = vmul.f32 0.6931472, %v2309_v32 }
0x1c9c   :  { %s1844_s11 = sshll.u32 %s2684_s24, 4  ;;  %v1833_v35 = vsub.f32 %v1819_v40, %v1830_v30  ;;  %s1845_s11 = int_to_ptr.vmem [resolvable:$true] %s1844_s11 }
0x1c9d   :  { %v1834_v39 = vsub.f32 %v1820_v46, %v1832_v37  ;;  %s2618_s26 = scalar_lea.vmem %s1845_s11, 256  ;;  %p2623_p1 = scmp.lt.s32.totalorder %s1845_s11, %s1845_s11 }
0x1c9e   :  { %1835 = vst [vmem:[#allocation24] sm:$0xff] %v1833_v35  ;;  %p2619_p0 = scmp.ne.s32.totalorder %s1845_s11, %s2618_s26  ;;  %p2624_p2 = scmp.lt.s32.totalorder %s2618_s26, %s2618_s26 }
0x1c9f   :  { %1836 = vst [vmem:[#allocation24 + $0x8] sm:$0xff] %v1834_v39 }
0x1ca0   :  { %p2625_p3 = por %p2624_p2, %p2623_p1 }
0x1ca2   :  { %p2626_p4 = pnand %p2625_p3, %p2619_p0 }
0x1ca4   :  { %2629 = shalt.err (!%p2626_p4)
}
0x1ca5   :  { %s2630_s27 = scalar_lea.hbm %s3307_s12, 256 }
0x1ca6   :  { %p2631_p5 = scmp.ne.s32.totalorder %s3307_s12, %s2630_s27  ;;  %p2634_p6 = scmp.lt.u32.totalorder %s2630_s27, %s3307_s12 }
0x1ca8   :  { %p2636_p7 = pnand %p2634_p6, %p2631_p5 }
0x1caa   :  { %2639 = shalt.err (!%p2636_p7)
}
0x1cab   :  { %1850 = dma.vmem_to_hbm [thread:$0]  %s1845_s11, 256, %s3307_s12, [#allocation6], %s2682_s13, %s2682_s13, %s2683_s30  }
0x1cac   :  { %2654 = dma.done.wait [#allocation6], 256  }
0x1cad   :  { %2655 = vsyncadd [#allocation6], 4294967040 }
0x1cae   :  { %2656 = dma.done.wait [#allocation26], 288  }
0x1caf   :  { %2657 = vsyncadd [#allocation26], 4294967008 }
0x1cb0   :  { %1882 = vsyncpa [#allocation5], 1 }
0x1cb1   :  { %1883 = vsyncpa [#allocation8], 1 }
0x1cb2   :  { %1884 = vsyncpa [#allocation11], 1 }
0x1cb3   :  { %1885 = vsyncpa [#allocation14], 1 }
0x1cb4   :  { %1886 = vsyncpa [#allocation17], 1 }
0x1cb5   :  { %1887 = vsyncpa [#allocation20], 1 }
0x1cb6   :  { %1888 = vsyncpa [#allocation23], 1 }
0x1cb7   :  { %1889 = vsyncpa [#allocation6], 1 }
0x1cb8   :  { %1890 = vsyncpa [#allocation26], 1 }

// kernel: tpu_custom_call.1
= control target key start
LH: loop header
LB: loop body
LE: loop exit
PB: predicated region body
PF: predicated region fallthrough
CT: control target
= control target key end

     0   :  { %20 = vsyncpa [#allocation5], 0  ;;  %s3295_s0 = inlined_call_operand.hbm [shape: bf16[8,2,32], index: 0, kind: input, shape index: {}]   ;;  %s3296_s1 = inlined_call_operand.hbm [shape: f32[2,32], index: 1, kind: input, shape index: {}]   ;;  %s3297_s2 = inlined_call_operand.hbm [shape: bf16[2,128,32], index: 2, kind: input, shape index: {}]   ;;  %s3298_s3 = inlined_call_operand.hbm [shape: f32[1,128], index: 3, kind: input, shape index: {}]   ;;  %s3299_s4 = inlined_call_operand.hbm [shape: bf16[32,96], index: 4, kind: input, shape index: {}]   ;;  %s3300_s5 = inlined_call_operand.hbm [shape: f32[1,96], index: 5, kind: input, shape index: {}]   ;;  %s3301_s6 = inlined_call_operand.hbm [shape: bf16[32,96], index: 6, kind: input, shape index: {}]   ;;  %s3302_s7 = inlined_call_operand.hbm [shape: f32[1,96], index: 7, kind: input, shape index: {}]   ;;  %s3303_s8 = inlined_call_operand.hbm [shape: bf16[32,32], index: 8, kind: input, shape index: {}]   ;;  %s3304_s9 = inlined_call_operand.hbm [shape: bf16[32,128], index: 9, kind: input, shape index: {}]   ;;  %s3305_s10 = inlined_call_operand.hbm [shape: bf16[32,128], index: 10, kind: input, shape index: {}]   ;;  %s3306_s11 = inlined_call_operand.hbm [shape: f32[1,128], index: 11, kind: input, shape index: {}]   ;;  %s3307_s12 = inlined_call_operand.hbm [shape: f32[2,8,128], index: 12, kind: output, shape index: {0}]   ;;  %s3308_s13 = inlined_call_operand.hbm [shape: f32[2,32], index: 13, kind: output, shape index: {1}]   ;;  %s3309_s14 = inlined_call_operand.hbm [shape: f32[2,8,128], index: 14, kind: output, shape index: {2}]  }
   0x1   :  { %21 = vsyncpa [#allocation8], 0 }
   0x2   :  { %22 = vsyncpa [#allocation11], 0 }
   0x3   :  { %23 = vsyncpa [#allocation14], 0 }
   0x4   :  { %24 = vsyncpa [#allocation17], 0 }
   0x5   :  { %25 = vsyncpa [#allocation20], 0 }
   0x6   :  { %26 = vsyncpa [#allocation23], 0 }
   0x7   :  { %27 = vsyncpa [#allocation6], 0 }
   0x8   :  { %28 = vsyncpa [#allocation26], 0  ;;  %s2658_s29 = smov [#allocation7]   ;;  %s2659_s15 = smov [#allocation10]  }
   0x9   :  { %s47_s30 = sshll.u32 %s2658_s29, 4  ;;  %s69_s16 = sshll.u32 %s2659_s15, 4  ;;  %s48_s30 = int_to_ptr.vmem [resolvable:$true] %s47_s30  ;;  %s70_s16 = int_to_ptr.vmem [resolvable:$true] %s69_s16 }
   0xa   :  { %s2310_s19 = scalar_lea.hbm %s3296_s1, 32 }
   0xb   :  { %p2311_p0 = scmp.ne.s32.totalorder %s3296_s1, %s2310_s19  ;;  %p2314_p1 = scmp.lt.u32.totalorder %s2310_s19, %s3296_s1 }
   0xd   :  { %p2316_p2 = pnand %p2314_p1, %p2311_p0 }
   0xf   :  { %2319 = shalt.err (!%p2316_p2)
}
  0x10   :  { %s2320_s24 = scalar_lea.vmem %s48_s30, 32  ;;  %p2325_p4 = scmp.lt.s32.totalorder %s48_s30, %s48_s30 }
  0x11   :  { %p2321_p3 = scmp.ne.s32.totalorder %s48_s30, %s2320_s24  ;;  %p2326_p5 = scmp.lt.s32.totalorder %s2320_s24, %s2320_s24 }
  0x13   :  { %p2327_p6 = por %p2326_p5, %p2325_p4 }
  0x15   :  { %p2328_p7 = pnand %p2327_p6, %p2321_p3 }
  0x17   :  { %2331 = shalt.err (!%p2328_p7)
}
  0x18   :  { %50 = dma.hbm_to_vmem [thread:$0]  %s3296_s1, 32, %s48_s30, [#allocation8]  }
  0x19   :  { %s2332_s29 = scalar_lea.hbm %s3298_s3, 16 }
  0x1a   :  { %p2333_p8 = scmp.ne.s32.totalorder %s3298_s3, %s2332_s29  ;;  %p2336_p9 = scmp.lt.u32.totalorder %s2332_s29, %s3298_s3 }
  0x1c   :  { %p2338_p10 = pnand %p2336_p9, %p2333_p8 }
  0x1e   :  { %2341 = shalt.err (!%p2338_p10)
}
  0x1f   :  { %s2342_s20 = scalar_lea.vmem %s70_s16, 16  ;;  %s2346_s21 = scalar_lea.vmem %s70_s16, 32 }
  0x20   :  { %p2343_p11 = scmp.ne.s32.totalorder %s70_s16, %s2342_s20  ;;  %p2347_p12 = scmp.lt.s32.totalorder %s70_s16, %s70_s16 }
  0x21   :  { %p2348_p13 = scmp.lt.s32.totalorder %s2346_s21, %s2342_s20 }
  0x23   :  { %p2349_p0 = por %p2348_p13, %p2347_p12 }
  0x25   :  { %p2350_p1 = pnand %p2349_p0, %p2343_p11 }
  0x27   :  { %2353 = shalt.err (!%p2350_p1)
}
  0x28   :  { %72 = dma.hbm_to_vmem [thread:$0]  %s3298_s3, 16, %s70_s16, [#allocation11]  }
  0x29   :  { %s2660_s22 = smov [#allocation13]   ;;  %s2661_s24 = smov [#allocation16]  }
  0x2a   :  { %s91_s23 = sshll.u32 %s2660_s22, 4  ;;  %s113_s25 = sshll.u32 %s2661_s24, 4  ;;  %s92_s23 = int_to_ptr.vmem [resolvable:$true] %s91_s23  ;;  %s114_s25 = int_to_ptr.vmem [resolvable:$true] %s113_s25 }
  0x2b   :  { %s2354_s28 = scalar_lea.hbm %s3300_s5, 16 }
  0x2c   :  { %p2355_p2 = scmp.ne.s32.totalorder %s3300_s5, %s2354_s28  ;;  %p2358_p3 = scmp.lt.u32.totalorder %s2354_s28, %s3300_s5 }
  0x2e   :  { %p2360_p4 = pnand %p2358_p3, %p2355_p2 }
  0x30   :  { %2363 = shalt.err (!%p2360_p4)
}
  0x31   :  { %s2364_s3 = scalar_lea.vmem %s92_s23, 16  ;;  %s2368_s16 = scalar_lea.vmem %s92_s23, 32 }
  0x32   :  { %p2365_p5 = scmp.ne.s32.totalorder %s92_s23, %s2364_s3  ;;  %p2369_p6 = scmp.lt.s32.totalorder %s92_s23, %s92_s23 }
  0x33   :  { %p2370_p7 = scmp.lt.s32.totalorder %s2368_s16, %s2364_s3 }
  0x35   :  { %p2371_p8 = por %p2370_p7, %p2369_p6 }
  0x37   :  { %p2372_p9 = pnand %p2371_p8, %p2365_p5 }
  0x39   :  { %2375 = shalt.err (!%p2372_p9)
}
  0x3a   :  { %94 = dma.hbm_to_vmem [thread:$0]  %s3300_s5, 16, %s92_s23, [#allocation14]  }
  0x3b   :  { %s2376_s30 = scalar_lea.hbm %s3302_s7, 16 }
  0x3c   :  { %p2377_p10 = scmp.ne.s32.totalorder %s3302_s7, %s2376_s30  ;;  %p2380_p11 = scmp.lt.u32.totalorder %s2376_s30, %s3302_s7 }
  0x3e   :  { %p2382_p12 = pnand %p2380_p11, %p2377_p10 }
  0x40   :  { %2385 = shalt.err (!%p2382_p12)
}
  0x41   :  { %s2386_s28 = scalar_lea.vmem %s114_s25, 16  ;;  %s2390_s29 = scalar_lea.vmem %s114_s25, 32 }
  0x42   :  { %p2387_p13 = scmp.ne.s32.totalorder %s114_s25, %s2386_s28  ;;  %p2391_p0 = scmp.lt.s32.totalorder %s114_s25, %s114_s25 }
  0x43   :  { %p2392_p1 = scmp.lt.s32.totalorder %s2390_s29, %s2386_s28 }
  0x45   :  { %p2393_p2 = por %p2392_p1, %p2391_p0 }
  0x47   :  { %p2394_p3 = pnand %p2393_p2, %p2387_p13 }
  0x49   :  { %2397 = shalt.err (!%p2394_p3)
}
  0x4a   :  { %116 = dma.hbm_to_vmem [thread:$0]  %s3302_s7, 16, %s114_s25, [#allocation17]  }
  0x4b   :  { %s2662_s15 = smov [#allocation19]   ;;  %s2663_s18 = smov [#allocation4]  }
  0x4c   :  { %s134_s17 = sshll.u32 %s2662_s15, 4  ;;  %s34_s3 = sshll.u32 %s2663_s18, 4  ;;  %s135_s17 = int_to_ptr.vmem [resolvable:$true] %s134_s17  ;;  %s2808_s3 = int_to_ptr.vmem [resolvable:$true] %s34_s3 }
  0x4d   :  { %s2398_s20 = scalar_lea.hbm %s3304_s9, 256 }
  0x4e   :  { %p2399_p4 = scmp.ne.s32.totalorder %s3304_s9, %s2398_s20  ;;  %p2402_p5 = scmp.lt.u32.totalorder %s2398_s20, %s3304_s9 }
  0x50   :  { %p2404_p6 = pnand %p2402_p5, %p2399_p4 }
  0x52   :  { %2407 = shalt.err (!%p2404_p6)
}
  0x53   :  { %s2408_s7 = scalar_lea.vmem %s135_s17, 256  ;;  %p2413_p8 = scmp.lt.s32.totalorder %s135_s17, %s135_s17 }
  0x54   :  { %p2409_p7 = scmp.ne.s32.totalorder %s135_s17, %s2408_s7  ;;  %p2414_p9 = scmp.lt.s32.totalorder %s2408_s7, %s2408_s7 }
  0x56   :  { %p2415_p10 = por %p2414_p9, %p2413_p8 }
  0x58   :  { %p2416_p11 = pnand %p2415_p10, %p2409_p7 }
  0x5a   :  { %2419 = shalt.err (!%p2416_p11)
}
  0x5b   :  { %s2664_s25 = smov 64   ;;  %s2665_s24 = smov 4  }
  0x5c   :  { %140 = dma.hbm_to_vmem [thread:$0]  %s3304_s9, 256, %s135_s17, [#allocation20], %s2664_s25, %s2664_s25, %s2665_s24  }
  0x5d   :  { %s2420_s5 = scalar_lea.hbm %s3295_s0, 128 }
  0x5e   :  { %p2421_p12 = scmp.ne.s32.totalorder %s3295_s0, %s2420_s5  ;;  %p2424_p13 = scmp.lt.u32.totalorder %s2420_s5, %s3295_s0 }
  0x60   :  { %p2426_p0 = pnand %p2424_p13, %p2421_p12 }
  0x62   :  { %2429 = shalt.err (!%p2426_p0)
}
  0x63   :  { %s2430_s19 = scalar_lea.vmem %s2808_s3, 128  ;;  %p2435_p2 = scmp.lt.s32.totalorder %s2808_s3, %s2808_s3 }
  0x64   :  { %p2431_p1 = scmp.ne.s32.totalorder %s2808_s3, %s2430_s19  ;;  %p2436_p3 = scmp.lt.s32.totalorder %s2430_s19, %s2430_s19 }
  0x66   :  { %p2437_p4 = por %p2436_p3, %p2435_p2 }
  0x68   :  { %p2438_p5 = pnand %p2437_p4, %p2431_p1 }
  0x6a   :  { %2441 = shalt.err (!%p2438_p5)
}
  0x6b   :  { %s2666_s9 = smov 16   ;;  %s2667_s17 = smov 1  }
  0x6c   :  { %40 = dma.hbm_to_vmem [thread:$0]  %s3295_s0, 128, %s2808_s3, [#allocation5], %s2666_s9, %s2666_s9, %s2667_s17  }
  0x6d   :  { %s2668_s1 = smov [#allocation9]   ;;  %s2669_s22 = smov [#allocation12]  }
  0x6e   :  { %s56_s30 = sshll.u32 %s2668_s1, 4  ;;  %s78_s7 = sshll.u32 %s2669_s22, 4  ;;  %s57_s30 = int_to_ptr.vmem [resolvable:$true] %s56_s30  ;;  %s2842_s7 = int_to_ptr.vmem [resolvable:$true] %s78_s7 }
  0x6f   :  { %s2442_s28 = scalar_lea.hbm %s3297_s2, 2048 }
  0x70   :  { %p2443_p6 = scmp.ne.s32.totalorder %s3297_s2, %s2442_s28  ;;  %p2446_p7 = scmp.lt.u32.totalorder %s2442_s28, %s3297_s2 }
  0x72   :  { %p2448_p8 = pnand %p2446_p7, %p2443_p6 }
  0x74   :  { %2451 = shalt.err (!%p2448_p8)
}
  0x75   :  { %s2452_s0 = scalar_lea.vmem %s57_s30, 2048  ;;  %p2457_p10 = scmp.lt.s32.totalorder %s57_s30, %s57_s30 }
  0x76   :  { %p2453_p9 = scmp.ne.s32.totalorder %s57_s30, %s2452_s0  ;;  %p2458_p11 = scmp.lt.s32.totalorder %s2452_s0, %s2452_s0 }
  0x78   :  { %p2459_p12 = por %p2458_p11, %p2457_p10 }
  0x7a   :  { %p2460_p13 = pnand %p2459_p12, %p2453_p9 }
  0x7c   :  { %2463 = shalt.err (!%p2460_p13)
}
  0x7d   :  { %62 = dma.hbm_to_vmem [thread:$0]  %s3297_s2, 2048, %s57_s30, [#allocation8], %s2664_s25, %s2664_s25, %s2665_s24  }
  0x7e   :  { %s2464_s9 = scalar_lea.hbm %s3299_s4, 256 }
  0x7f   :  { %p2465_p0 = scmp.ne.s32.totalorder %s3299_s4, %s2464_s9  ;;  %p2468_p1 = scmp.lt.u32.totalorder %s2464_s9, %s3299_s4 }
  0x81   :  { %p2470_p2 = pnand %p2468_p1, %p2465_p0 }
  0x83   :  { %2473 = shalt.err (!%p2470_p2)
}
  0x84   :  { %s2474_s22 = scalar_lea.vmem %s2842_s7, 256  ;;  %p2479_p4 = scmp.lt.s32.totalorder %s2842_s7, %s2842_s7 }
  0x85   :  { %p2475_p3 = scmp.ne.s32.totalorder %s2842_s7, %s2474_s22  ;;  %p2480_p5 = scmp.lt.s32.totalorder %s2474_s22, %s2474_s22 }
  0x87   :  { %p2481_p6 = por %p2480_p5, %p2479_p4 }
  0x89   :  { %p2482_p7 = pnand %p2481_p6, %p2475_p3 }
  0x8b   :  { %2485 = shalt.err (!%p2482_p7)
}
  0x8c   :  { %84 = dma.hbm_to_vmem [thread:$0]  %s3299_s4, 256, %s2842_s7, [#allocation11], %s2664_s25, %s2664_s25, %s2665_s24  }
  0x8d   :  { %s2670_s26 = smov [#allocation15]   ;;  %s2671_s28 = smov [#allocation18]  }
  0x8e   :  { %s100_s27 = sshll.u32 %s2670_s26, 4  ;;  %s122_s29 = sshll.u32 %s2671_s28, 4  ;;  %s101_s27 = int_to_ptr.vmem [resolvable:$true] %s100_s27  ;;  %s2879_s29 = int_to_ptr.vmem [resolvable:$true] %s122_s29 }
  0x8f   :  { %s2486_s15 = scalar_lea.hbm %s3301_s6, 256 }
  0x90   :  { %p2487_p8 = scmp.ne.s32.totalorder %s3301_s6, %s2486_s15  ;;  %p2490_p9 = scmp.lt.u32.totalorder %s2486_s15, %s3301_s6 }
  0x92   :  { %p2492_p10 = pnand %p2490_p9, %p2487_p8 }
  0x94   :  { %2495 = shalt.err (!%p2492_p10)
}
  0x95   :  { %s2496_s4 = scalar_lea.vmem %s101_s27, 256  ;;  %p2501_p12 = scmp.lt.s32.totalorder %s101_s27, %s101_s27 }
  0x96   :  { %p2497_p11 = scmp.ne.s32.totalorder %s101_s27, %s2496_s4  ;;  %p2502_p13 = scmp.lt.s32.totalorder %s2496_s4, %s2496_s4 }
  0x98   :  { %p2503_p0 = por %p2502_p13, %p2501_p12 }
  0x9a   :  { %p2504_p1 = pnand %p2503_p0, %p2497_p11 }
  0x9c   :  { %2507 = shalt.err (!%p2504_p1)
}
  0x9d   :  { %106 = dma.hbm_to_vmem [thread:$0]  %s3301_s6, 256, %s101_s27, [#allocation14], %s2664_s25, %s2664_s25, %s2665_s24  }
  0x9e   :  { %s2508_s20 = scalar_lea.hbm %s3303_s8, 256 }
  0x9f   :  { %p2509_p2 = scmp.ne.s32.totalorder %s3303_s8, %s2508_s20  ;;  %p2512_p3 = scmp.lt.u32.totalorder %s2508_s20, %s3303_s8 }
  0xa1   :  { %p2514_p4 = pnand %p2512_p3, %p2509_p2 }
  0xa3   :  { %2517 = shalt.err (!%p2514_p4)
}
  0xa4   :  { %s2518_s30 = scalar_lea.vmem %s2879_s29, 256  ;;  %p2523_p6 = scmp.lt.s32.totalorder %s2879_s29, %s2879_s29 }
  0xa5   :  { %p2519_p5 = scmp.ne.s32.totalorder %s2879_s29, %s2518_s30  ;;  %p2524_p7 = scmp.lt.s32.totalorder %s2518_s30, %s2518_s30 }
  0xa7   :  { %p2525_p8 = por %p2524_p7, %p2523_p6 }
  0xa9   :  { %p2526_p9 = pnand %p2525_p8, %p2519_p5 }
  0xab   :  { %2529 = shalt.err (!%p2526_p9)
}
  0xac   :  { %128 = dma.hbm_to_vmem [thread:$0]  %s3303_s8, 256, %s2879_s29, [#allocation17], %s2664_s25, %s2664_s25, %s2665_s24  }
  0xad   :  { %s2672_s27 = smov [#allocation21]   ;;  %s2673_s5 = smov [#allocation22]  }
  0xae   :  { %s146_s28 = sshll.u32 %s2672_s27, 4  ;;  %s159_s23 = sshll.u32 %s2673_s5, 4  ;;  %s147_s28 = int_to_ptr.vmem [resolvable:$true] %s146_s28  ;;  %s160_s23 = int_to_ptr.vmem [resolvable:$true] %s159_s23 }
  0xaf   :  { %s2530_s3 = scalar_lea.hbm %s3305_s10, 256 }
  0xb0   :  { %p2531_p10 = scmp.ne.s32.totalorder %s3305_s10, %s2530_s3  ;;  %p2534_p11 = scmp.lt.u32.totalorder %s2530_s3, %s3305_s10 }
  0xb2   :  { %p2536_p12 = pnand %p2534_p11, %p2531_p10 }
  0xb4   :  { %2539 = shalt.err (!%p2536_p12)
}
  0xb5   :  { %s2540_s8 = scalar_lea.vmem %s147_s28, 256  ;;  %p2545_p0 = scmp.lt.s32.totalorder %s147_s28, %s147_s28 }
  0xb6   :  { %p2541_p13 = scmp.ne.s32.totalorder %s147_s28, %s2540_s8  ;;  %p2546_p1 = scmp.lt.s32.totalorder %s2540_s8, %s2540_s8 }
  0xb8   :  { %p2547_p2 = por %p2546_p1, %p2545_p0 }
  0xba   :  { %p2548_p3 = pnand %p2547_p2, %p2541_p13 }
  0xbc   :  { %2551 = shalt.err (!%p2548_p3)
}
  0xbd   :  { %152 = dma.hbm_to_vmem [thread:$0]  %s3305_s10, 256, %s147_s28, [#allocation20], %s2664_s25, %s2664_s25, %s2665_s24  }
  0xbe   :  { %s2552_s20 = scalar_lea.hbm %s3306_s11, 16 }
  0xbf   :  { %p2553_p4 = scmp.ne.s32.totalorder %s3306_s11, %s2552_s20  ;;  %p2556_p5 = scmp.lt.u32.totalorder %s2552_s20, %s3306_s11 }
  0xc1   :  { %p2558_p6 = pnand %p2556_p5, %p2553_p4 }
  0xc3   :  { %2561 = shalt.err (!%p2558_p6)
}
  0xc4   :  { %s2562_s30 = scalar_lea.vmem %s160_s23, 16  ;;  %s2566_s6 = scalar_lea.vmem %s160_s23, 32 }
  0xc5   :  { %p2563_p7 = scmp.ne.s32.totalorder %s160_s23, %s2562_s30  ;;  %p2567_p8 = scmp.lt.s32.totalorder %s160_s23, %s160_s23 }
  0xc6   :  { %p2568_p9 = scmp.lt.s32.totalorder %s2566_s6, %s2562_s30 }
  0xc8   :  { %p2569_p10 = por %p2568_p9, %p2567_p8 }
  0xca   :  { %p2570_p11 = pnand %p2569_p10, %p2563_p7 }
  0xcc   :  { %2573 = shalt.err (!%p2570_p11)
}
  0xcd   :  { %162 = dma.hbm_to_vmem [thread:$0]  %s3306_s11, 16, %s160_s23, [#allocation23]  }
  0xce   :  { %2640 = dma.done.wait [#allocation5], 128  }
  0xcf   :  { %2641 = vsyncadd [#allocation5], 4294967168 }
  0xd0   :  { %2642 = dma.done.wait [#allocation8], 2080  }
  0xd1   :  { %2643 = vsyncadd [#allocation8], 4294965216 }
  0xd2   :  { %2644 = dma.done.wait [#allocation11], 272  }
  0xd3   :  { %2645 = vsyncadd [#allocation11], 4294967024 }
  0xd4   :  { %2646 = dma.done.wait [#allocation14], 272  }
  0xd5   :  { %2647 = vsyncadd [#allocation14], 4294967024 }
  0xd6   :  { %2648 = dma.done.wait [#allocation17], 272  }
  0xd7   :  { %2649 = vsyncadd [#allocation17], 4294967024 }
  0xd8   :  { %2650 = dma.done.wait [#allocation20], 512  }
  0xd9   :  { %2651 = vsyncadd [#allocation20], 4294966784 }
  0xda   :  { %2652 = dma.done.wait [#allocation23], 16  }
  0xdb   :  { %2653 = vsyncadd [#allocation23], 4294967280  ;;  %v2674_v0 = vmov 0.0   ;;  %vm2675_vm0 = vmmov 0   ;;  %v2676_v1 = vmov 1966171168   ;;  %v234_v3 = vlaneseq }
  0xdc   :  { %2025 = vmatprep.subr.bf16.mxu1 %v2674_v0  ;;  %2017 = vmatprep.subr.bf16.mxu0 %v2674_v0  ;;  %v232_v2 = vunpack.c.l.s4 %v2676_v1  ;;  %v2949_v6 = vld [vmem:[#allocation15] sm:$0xff]   ;;  %v2221_v7 = vld [vmem:[#allocation12] sm:$0xff]   ;;  %v2223_v9 = vld [vmem:[#allocation12 + $0x8] sm:$0xff]   ;;  %vm288_vm1 = vcmask 261120   ;;  %v2677_v35 = vmov 1983009808  }
  0xdd   :  { %2029 = vmatprep.mubr.msk.bf16.mxu1 %vm2675_vm0, %v2674_v0  ;;  %2021 = vmatprep.mubr.msk.bf16.mxu0 %vm2675_vm0, %v2674_v0  ;;  %v235_v5 = vshrl.u32 %v234_v3, 7  ;;  %v2952_v8 = vld [vmem:[#allocation15 + $0x8] sm:$0xff]   ;;  %v200_v12 = vld [vmem:[#allocation4] sm:$0x1]  ;;  %v201_v13 = vld [vmem:[#allocation4 + $0x1] sm:$0x1]  ;;  %v337_v36 = vunpack.c.l.s4 %v2677_v35 }
  0xde   :  { %v233_v4 = vunpack.c.0.s8 %v232_v2  ;;  %2026 = vmatpush3.bf16.msra.mxu1 %v2949_v6  ;;  %2018 = vmatpush3.bf16.msra.mxu0 %v2221_v7  ;;  %v2958_v11 = vld [vmem:[#allocation7] sm:$0x3]  ;;  %v202_v15 = vld [vmem:[#allocation4 + $0x2] sm:$0x1]  ;;  %v203_v16 = vld [vmem:[#allocation4 + $0x3] sm:$0x1]  ;;  %v227_v18 = vcombine.low %v200_v12, %v201_v13 }
  0xdf   :  { %2027 = vmatprep.subr.bf16.mxu1 %v2674_v0  ;;  %2019 = vmatprep.subr.bf16.mxu0 %v2674_v0  ;;  %v393_v14 = vpack.c.bf16 %v2958_v11, %v2958_v11  ;;  %v204_v17 = vld [vmem:[#allocation4 + $0x4] sm:$0x1]  ;;  %v205_v19 = vld [vmem:[#allocation4 + $0x5] sm:$0x1]  ;;  %v206_v20 = vld [vmem:[#allocation4 + $0x6] sm:$0x1]  ;;  %v228_v22 = vcombine.low %v202_v15, %v203_v16  ;;  %v338_v41 = vunpack.c.0.s8 %v337_v36 }
  0xe0   :  { %v2955_v10 = vsub.s32 %v233_v4, %v235_v5  ;;  %v207_v21 = vld [vmem:[#allocation4 + $0x7] sm:$0x1]  ;;  %v229_v23 = vcombine.low %v204_v17, %v205_v19  ;;  %v2985_v34 = vld [vmem:[#allocation16] ss:$0 sm:$0xff]  ;;  %v1891_v43 = vld [vmem:[#allocation13] ss:$0 sm:$0xff] }
  0xe1   :  { %v230_v24 = vcombine.low %v206_v20, %v207_v21  ;;  %v341_v44 = vsub.s32 %v338_v41, %v235_v5  ;;  %vm377_vm2 = vcmask 779264   ;;  %s2678_s11 = smov 96   ;;  %s2679_s26 = smov 32   ;;  %vm504_vm3 = vcmask 253952  }
  0xe2   :  { %2028 = vmatpush3.bf16.msra.mxu1 %v2952_v8  ;;  %2020 = vmatpush3.bf16.msra.mxu0 %v2223_v9  ;;  %v237_v25 = vrot.slane %v227_v18, %v2955_v10  ;;  %v244_v26 = vrot.slane %v228_v22, %v2955_v10  ;;  %v251_v27 = vrot.slane %v229_v23, %v2955_v10  ;;  %s2681_s28 = smov [#allocation27]   ;;  %vm1168_vm4 = vcmask 254976  }
  0xe3   :  { %2041 = vmatprep.subr.bf16.mxu1 %v2674_v0  ;;  %2033 = vmatprep.subr.bf16.mxu0 %v2674_v0  ;;  %v258_v28 = vrot.slane %v230_v24, %v2955_v10  ;;  %s1866_s5 = sshll.u32 %s2681_s28, 4  ;;  %s3252_s5 = int_to_ptr.vmem [resolvable:$true] %s1866_s5 }
  0xe4   :  { %v259_v29 = vcombine.low %v237_v25, %v244_v26 }
  0xe5   :  { %2030 = vmatmul.mubr.msk.bf16.vlgmr.msra.gmra.mrb[0].mxu1 %vm288_vm1, %v393_v14  ;;  %v260_v30 = vcombine.low %v251_v27, %v258_v28 }
  0xe6   :  { %2042 = vmatpush3.bf16.msra.mxu1 %v2949_v6  ;;  %2045 = vmatprep.mubr.msk.bf16.mxu1 %vm2675_vm0, %v2674_v0  ;;  %v267_v31 = vrot.slane %v259_v29, %v2955_v10 }
  0xe7   :  { %2043 = vmatprep.subr.bf16.mxu1 %v2674_v0  ;;  %v274_v32 = vrot.slane %v260_v30, %v2955_v10 }
  0xe9   :  { %v275_v33 = vcombine.low %v267_v31, %v274_v32 }
  0xea   :  { %2044 = vmatpush3.bf16.msra.mxu1 %v2952_v8 }
  0xeb   :  { %2057 = vmatprep.subr.bf16.mxu1 %v2674_v0  ;;  %2022 = vmatmul.mubr.msk.bf16.vlgmr.msra.gmra.mrb[0].mxu0 %vm288_vm1, %v275_v33 }
  0xec   :  { %2034 = vmatpush3.bf16.msra.mxu0 %v2949_v6  ;;  %2037 = vmatprep.mubr.msk.bf16.mxu0 %vm2675_vm0, %v2674_v0 }
  0xed   :  { %2035 = vmatprep.subr.bf16.mxu0 %v2674_v0 }
  0xf0   :  { %2036 = vmatpush3.bf16.msra.mxu0 %v2952_v8 }
  0xf1   :  { %2049 = vmatprep.subr.bf16.mxu0 %v2674_v0 }
 0x1b8   :  { %v449_v37 = vpop.f32.mrb[0].mxu1 }
 0x1b9   :  { %v450_v38 = vadd.f32 %v2985_v34, %v449_v37  ;;  %v2031_v39 = vpop.f32.mrb[1].mxu1 }
 0x1ba   :  { %v452_v40 = vpop.f32.mrb[2].mxu1 }
 0x1bb   :  { %463 = vrot.lane.b32.xlu0 %v450_v38, %s2664_s25  ;;  %v2032_v42 = vpop.f32.mrb[3].mxu1 }
 0x1be   :  { %v326_v45 = vpop.f32.mrb[0].mxu0 }
 0x1bf   :  { %v327_v46 = vadd.f32 %v1891_v43, %v326_v45  ;;  %v2023_v47 = vpop.f32.mrb[1].mxu0 }
 0x1c0   :  { %v329_v48 = vpop.f32.mrb[2].mxu0 }
 0x1c1   :  { %v335_v49 = vcombine.high %v327_v46, %v327_v46  ;;  %v342_v50 = vrot.slane %v327_v46, %v341_v44  ;;  %v330_v51 = vadd.f32 %v1891_v43, %v329_v48  ;;  %v2024_v52 = vpop.f32.mrb[3].mxu0 }
 0x1c3   :  { %v349_v53 = vrot.slane %v335_v49, %v341_v44  ;;  %v350_v54 = vcombine.high %v342_v50, %v342_v50  ;;  %378 = vst.msk [vmem:[#allocation2] sm:$0x3] %vm377_vm2, %v342_v50  ;;  %v352_v55 = vcombine.high %v330_v51, %v330_v51  ;;  %v359_v56 = vrot.slane %v330_v51, %v341_v44 }
 0x1c5   :  { %v351_v57 = vcombine.high %v349_v53, %v349_v53  ;;  %379 = vst.msk [vmem:[#allocation2 + $0x2] sm:$0x3] %vm377_vm2, %v350_v54  ;;  %380 = vst.msk [vmem:[#allocation2 + $0x4] sm:$0x3] %vm377_vm2, %v349_v53  ;;  %v366_v58 = vrot.slane %v352_v55, %v341_v44  ;;  %v367_v59 = vcombine.high %v359_v56, %v359_v56 }
 0x1c6   :  { %382 = vst.msk [vmem:[#allocation2 + $0x8] sm:$0x3] %vm377_vm2, %v359_v56 }
 0x1c7   :  { %381 = vst.msk [vmem:[#allocation2 + $0x6] sm:$0x3] %vm377_vm2, %v351_v57  ;;  %v368_v60 = vcombine.high %v366_v58, %v366_v58  ;;  %383 = vst.msk [vmem:[#allocation2 + $0xa] sm:$0x3] %vm377_vm2, %v367_v59 }
 0x1c8   :  { %384 = vst.msk [vmem:[#allocation2 + $0xc] sm:$0x3] %vm377_vm2, %v366_v58 }
 0x1c9   :  { %385 = vst.msk [vmem:[#allocation2 + $0xe] sm:$0x3] %vm377_vm2, %v368_v60 }
 0x1ca   :  { %v392_v61 = vld [vmem:[#allocation2] sm:$0x3] }
 0x1cb   :  { %v455_v62 = vadd.f32 %v450_v38, %v392_v61 }
 0x1cc   :  { %v507_v25 = vld [vmem:[#allocation2 + $0x2] sm:$0x3]  ;;  %v601_v49 = vld [vmem:[#allocation2 + $0x4] sm:$0x3] }
 0x1cd   :  { %v1899_v63 = vmul.f32 -1.442695, %v455_v62 }
 0x1cf   :  { %2246 = vpow2.f32 %v1899_v63 }
 0x1d9   :  { %v2247_v1 = vpop.eup %2246 }
 0x1da   :  { %v459_v2 = vadd.f32 1.0, %v2247_v1 }
 0x1dc   :  { %2248 = vrcp.f32 %v459_v2 }
 0x1e6   :  { %v2249_v3 = vpop.eup %2248 }
 0x1e7   :  { %v473_v14 = vsub.f32 1.0, %v2249_v3 }
 0x22d   :  { %v464_v4 = vpop.permute.xlu0 %463 }
 0x22e   :  { %v466_v5 = vmul.f32 %v2249_v3, %v464_v4 }
 0x230   :  { %468 = vrot.lane.b32.xlu0 %v466_v5, %s2664_s25 }
 0x2a2   :  { %v469_v7 = vpop.permute.xlu0 %468 }
 0x2a3   :  { %v471_v9 = vadd.f32 %v469_v7, %v392_v61 }
 0x2a5   :  { %2250 = vtanh.f32 %v471_v9 }
 0x2af   :  { %v2251_v12 = vpop.eup %2250 }
 0x2b0   :  { %475 = vrot.lane.b32.xlu1 %v2251_v12, %s2678_s11 }
 0x2b4   :  { %480 = vrot.lane.b32.xlu1 %v2958_v11, %s2679_s26 }
 0x322   :  { %v476_v13 = vpop.permute.xlu1 %475 }
 0x323   :  { %v478_v16 = vmul.f32 %v476_v13, %v473_v14  ;;  %v695_v13 = vld [vmem:[#allocation2 + $0x6] sm:$0x3] }
 0x326   :  { %v481_v15 = vpop.permute.xlu1 %480 }
 0x327   :  { %v483_v17 = vmul.f32 %v2249_v3, %v481_v15 }
 0x329   :  { %v484_v18 = vadd.f32 %v483_v17, %v478_v16 }
 0x32b   :  { %v3000_v19 = vpack.c.bf16 %v484_v18, %v484_v18 }
 0x32d   :  { %508 = vrot.lane.b32.xlu0 %v3000_v19, %s2678_s11 }
 0x39f   :  { %v509_v20 = vpop.permute.xlu0 %508 }
 0x3a0   :  { %2038 = vmatmul.mubr.msk.bf16.vlgmr.msra.gmra.mrb[4].mxu0 %vm288_vm1, %v509_v20 }
 0x3a1   :  { %2050 = vmatpush3.bf16.msra.mxu0 %v2949_v6  ;;  %2053 = vmatprep.mubr.msk.bf16.mxu0 %vm2675_vm0, %v2674_v0 }
 0x3a2   :  { %2051 = vmatprep.subr.bf16.mxu0 %v2674_v0 }
 0x3a5   :  { %2052 = vmatpush3.bf16.msra.mxu0 %v2952_v8 }
 0x3a6   :  { %2065 = vmatprep.subr.bf16.mxu0 %v2674_v0 }
 0x473   :  { %v547_v11 = vpop.f32.mrb[4].mxu0 }
 0x474   :  { %v548_v21 = vadd.f32 %v2985_v34, %v547_v11  ;;  %v2039_v22 = vpop.f32.mrb[5].mxu0 }
 0x475   :  { %v550_v23 = vpop.f32.mrb[6].mxu0 }
 0x476   :  { %561 = vrot.lane.b32.xlu1 %v548_v21, %s2664_s25  ;;  %v2040_v24 = vpop.f32.mrb[7].mxu0  ;;  %v553_v26 = vadd.f32 %v548_v21, %v507_v25 }
 0x478   :  { %v1901_v27 = vmul.f32 -1.442695, %v553_v26 }
 0x47a   :  { %2252 = vpow2.f32 %v1901_v27 }
 0x484   :  { %v2253_v28 = vpop.eup %2252 }
 0x485   :  { %v557_v29 = vadd.f32 1.0, %v2253_v28 }
 0x487   :  { %2254 = vrcp.f32 %v557_v29 }
 0x491   :  { %v2255_v30 = vpop.eup %2254 }
 0x492   :  { %v571_v37 = vsub.f32 1.0, %v2255_v30  ;;  %v577_v39 = vmul.f32 %v2255_v30, %v484_v18 }
 0x4e8   :  { %v562_v31 = vpop.permute.xlu1 %561 }
 0x4e9   :  { %v564_v32 = vmul.f32 %v2255_v30, %v562_v31 }
 0x4eb   :  { %566 = vrot.lane.b32.xlu0 %v564_v32, %s2664_s25 }
 0x55d   :  { %v567_v33 = vpop.permute.xlu0 %566 }
 0x55e   :  { %v569_v35 = vadd.f32 %v567_v33, %v507_v25 }
 0x560   :  { %2256 = vtanh.f32 %v569_v35 }
 0x56a   :  { %v2257_v36 = vpop.eup %2256 }
 0x56b   :  { %573 = vrot.lane.b32.xlu1 %v2257_v36, %s2678_s11 }
 0x5dd   :  { %v574_v38 = vpop.permute.xlu1 %573 }
 0x5de   :  { %v576_v40 = vmul.f32 %v574_v38, %v571_v37  ;;  %v789_v37 = vld [vmem:[#allocation2 + $0x8] sm:$0x3] }
 0x5e0   :  { %v578_v41 = vadd.f32 %v577_v39, %v576_v40 }
 0x5e2   :  { %v3015_v42 = vpack.c.bf16 %v578_v41, %v578_v41 }
 0x5e4   :  { %602 = vrot.lane.b32.xlu0 %v3015_v42, %s2678_s11 }
 0x656   :  { %v603_v43 = vpop.permute.xlu0 %602 }
 0x657   :  { %2046 = vmatmul.mubr.msk.bf16.vlgmr.msra.gmra.mrb[4].mxu1 %vm288_vm1, %v603_v43 }
 0x658   :  { %2058 = vmatpush3.bf16.msra.mxu1 %v2949_v6  ;;  %2061 = vmatprep.mubr.msk.bf16.mxu1 %vm2675_vm0, %v2674_v0 }
 0x659   :  { %2059 = vmatprep.subr.bf16.mxu1 %v2674_v0 }
 0x65c   :  { %2060 = vmatpush3.bf16.msra.mxu1 %v2952_v8 }
 0x65d   :  { %2073 = vmatprep.subr.bf16.mxu1 %v2674_v0 }
 0x72a   :  { %v641_v44 = vpop.f32.mrb[4].mxu1 }
 0x72b   :  { %v642_v45 = vadd.f32 %v2985_v34, %v641_v44  ;;  %v2047_v46 = vpop.f32.mrb[5].mxu1 }
 0x72c   :  { %v644_v47 = vpop.f32.mrb[6].mxu1 }
 0x72d   :  { %655 = vrot.lane.b32.xlu1 %v642_v45, %s2664_s25  ;;  %v2048_v48 = vpop.f32.mrb[7].mxu1  ;;  %v647_v50 = vadd.f32 %v642_v45, %v601_v49 }
 0x72f   :  { %v1903_v51 = vmul.f32 -1.442695, %v647_v50 }
 0x731   :  { %2258 = vpow2.f32 %v1903_v51 }
 0x73b   :  { %v2259_v52 = vpop.eup %2258 }
 0x73c   :  { %v651_v53 = vadd.f32 1.0, %v2259_v52 }
 0x73e   :  { %2260 = vrcp.f32 %v651_v53 }
 0x748   :  { %v2261_v54 = vpop.eup %2260 }
 0x749   :  { %v665_v60 = vsub.f32 1.0, %v2261_v54  ;;  %v671_v62 = vmul.f32 %v2261_v54, %v578_v41 }
 0x79f   :  { %v656_v55 = vpop.permute.xlu1 %655 }
 0x7a0   :  { %v658_v56 = vmul.f32 %v2261_v54, %v656_v55 }
 0x7a2   :  { %660 = vrot.lane.b32.xlu0 %v658_v56, %s2664_s25 }
 0x814   :  { %v661_v57 = vpop.permute.xlu0 %660 }
 0x815   :  { %v663_v58 = vadd.f32 %v661_v57, %v601_v49 }
 0x817   :  { %2262 = vtanh.f32 %v663_v58 }
 0x821   :  { %v2263_v59 = vpop.eup %2262 }
 0x822   :  { %667 = vrot.lane.b32.xlu1 %v2263_v59, %s2678_s11 }
 0x894   :  { %v668_v61 = vpop.permute.xlu1 %667 }
 0x895   :  { %v670_v63 = vmul.f32 %v668_v61, %v665_v60  ;;  %v883_v61 = vld [vmem:[#allocation2 + $0xa] sm:$0x3] }
 0x897   :  { %v672_v1 = vadd.f32 %v671_v62, %v670_v63 }
 0x899   :  { %v3030_v2 = vpack.c.bf16 %v672_v1, %v672_v1 }
 0x89b   :  { %696 = vrot.lane.b32.xlu0 %v3030_v2, %s2678_s11 }
 0x90d   :  { %v697_v3 = vpop.permute.xlu0 %696 }
 0x90e   :  { %2054 = vmatmul.mubr.msk.bf16.vlgmr.msra.gmra.mrb[8].mxu0 %vm288_vm1, %v697_v3 }
 0x90f   :  { %2066 = vmatpush3.bf16.msra.mxu0 %v2949_v6  ;;  %2069 = vmatprep.mubr.msk.bf16.mxu0 %vm2675_vm0, %v2674_v0 }
 0x910   :  { %2067 = vmatprep.subr.bf16.mxu0 %v2674_v0 }
 0x913   :  { %2068 = vmatpush3.bf16.msra.mxu0 %v2952_v8 }
 0x914   :  { %2081 = vmatprep.subr.bf16.mxu0 %v2674_v0 }
 0x9e1   :  { %v735_v4 = vpop.f32.mrb[8].mxu0 }
 0x9e2   :  { %v736_v5 = vadd.f32 %v2985_v34, %v735_v4  ;;  %v2055_v7 = vpop.f32.mrb[9].mxu0 }
 0x9e3   :  { %v738_v9 = vpop.f32.mrb[10].mxu0 }
 0x9e4   :  { %749 = vrot.lane.b32.xlu1 %v736_v5, %s2664_s25  ;;  %v2056_v12 = vpop.f32.mrb[11].mxu0  ;;  %v741_v14 = vadd.f32 %v736_v5, %v695_v13 }
 0x9e6   :  { %v1905_v15 = vmul.f32 -1.442695, %v741_v14 }
 0x9e8   :  { %2264 = vpow2.f32 %v1905_v15 }
 0x9f2   :  { %v2265_v16 = vpop.eup %2264 }
 0x9f3   :  { %v745_v17 = vadd.f32 1.0, %v2265_v16 }
 0x9f5   :  { %2266 = vrcp.f32 %v745_v17 }
 0x9ff   :  { %v2267_v18 = vpop.eup %2266 }
 0xa00   :  { %v759_v24 = vsub.f32 1.0, %v2267_v18  ;;  %v765_v26 = vmul.f32 %v2267_v18, %v672_v1 }
 0xa56   :  { %v750_v20 = vpop.permute.xlu1 %749 }
 0xa57   :  { %v752_v11 = vmul.f32 %v2267_v18, %v750_v20 }
 0xa59   :  { %754 = vrot.lane.b32.xlu0 %v752_v11, %s2664_s25 }
 0xacb   :  { %v755_v21 = vpop.permute.xlu0 %754 }
 0xacc   :  { %v757_v22 = vadd.f32 %v755_v21, %v695_v13 }
 0xace   :  { %2268 = vtanh.f32 %v757_v22 }
 0xad8   :  { %v2269_v23 = vpop.eup %2268 }
 0xad9   :  { %761 = vrot.lane.b32.xlu1 %v2269_v23, %s2678_s11 }
 0xb4b   :  { %v762_v25 = vpop.permute.xlu1 %761 }
 0xb4c   :  { %v764_v27 = vmul.f32 %v762_v25, %v759_v24  ;;  %v977_v24 = vld [vmem:[#allocation2 + $0xc] sm:$0x3] }
 0xb4e   :  { %v766_v28 = vadd.f32 %v765_v26, %v764_v27 }
 0xb50   :  { %v3045_v29 = vpack.c.bf16 %v766_v28, %v766_v28 }
 0xb52   :  { %790 = vrot.lane.b32.xlu0 %v3045_v29, %s2678_s11 }
 0xbc4   :  { %v791_v30 = vpop.permute.xlu0 %790 }
 0xbc5   :  { %2062 = vmatmul.mubr.msk.bf16.vlgmr.msra.gmra.mrb[8].mxu1 %vm288_vm1, %v791_v30 }
 0xbc6   :  { %2074 = vmatpush3.bf16.msra.mxu1 %v2949_v6  ;;  %2077 = vmatprep.mubr.msk.bf16.mxu1 %vm2675_vm0, %v2674_v0 }
 0xbc7   :  { %2075 = vmatprep.subr.bf16.mxu1 %v2674_v0 }
 0xbca   :  { %2076 = vmatpush3.bf16.msra.mxu1 %v2952_v8 }
 0xbcb   :  { %2089 = vmatprep.subr.bf16.mxu1 %v2674_v0 }
 0xc98   :  { %v829_v31 = vpop.f32.mrb[8].mxu1 }
 0xc99   :  { %v830_v32 = vadd.f32 %v2985_v34, %v829_v31  ;;  %v2063_v33 = vpop.f32.mrb[9].mxu1 }
 0xc9a   :  { %v832_v35 = vpop.f32.mrb[10].mxu1 }
 0xc9b   :  { %843 = vrot.lane.b32.xlu1 %v830_v32, %s2664_s25  ;;  %v2064_v36 = vpop.f32.mrb[11].mxu1  ;;  %v835_v38 = vadd.f32 %v830_v32, %v789_v37 }
 0xc9d   :  { %v1907_v39 = vmul.f32 -1.442695, %v835_v38 }
 0xc9f   :  { %2270 = vpow2.f32 %v1907_v39 }
 0xca9   :  { %v2271_v40 = vpop.eup %2270 }
 0xcaa   :  { %v839_v41 = vadd.f32 1.0, %v2271_v40 }
 0xcac   :  { %2272 = vrcp.f32 %v839_v41 }
 0xcb6   :  { %v2273_v43 = vpop.eup %2272 }
 0xcb7   :  { %v853_v49 = vsub.f32 1.0, %v2273_v43  ;;  %v859_v51 = vmul.f32 %v2273_v43, %v766_v28 }
 0xd0d   :  { %v844_v44 = vpop.permute.xlu1 %843 }
 0xd0e   :  { %v846_v45 = vmul.f32 %v2273_v43, %v844_v44 }
 0xd10   :  { %848 = vrot.lane.b32.xlu0 %v846_v45, %s2664_s25 }
 0xd82   :  { %v849_v46 = vpop.permute.xlu0 %848 }
 0xd83   :  { %v851_v47 = vadd.f32 %v849_v46, %v789_v37 }
 0xd85   :  { %2274 = vtanh.f32 %v851_v47 }
 0xd8f   :  { %v2275_v48 = vpop.eup %2274 }
 0xd90   :  { %855 = vrot.lane.b32.xlu1 %v2275_v48, %s2678_s11 }
 0xe02   :  { %v856_v50 = vpop.permute.xlu1 %855 }
 0xe03   :  { %v858_v52 = vmul.f32 %v856_v50, %v853_v49  ;;  %v1071_v50 = vld [vmem:[#allocation2 + $0xe] sm:$0x3] }
 0xe05   :  { %v860_v53 = vadd.f32 %v859_v51, %v858_v52 }
 0xe07   :  { %v3060_v54 = vpack.c.bf16 %v860_v53, %v860_v53 }
 0xe09   :  { %884 = vrot.lane.b32.xlu0 %v3060_v54, %s2678_s11 }
 0xe7b   :  { %v885_v55 = vpop.permute.xlu0 %884 }
 0xe7c   :  { %2070 = vmatmul.mubr.msk.bf16.vlgmr.msra.gmra.mrb[12].mxu0 %vm288_vm1, %v885_v55 }
 0xe7d   :  { %2082 = vmatpush3.bf16.msra.mxu0 %v2949_v6  ;;  %2085 = vmatprep.mubr.msk.bf16.mxu0 %vm2675_vm0, %v2674_v0 }
 0xe7e   :  { %2083 = vmatprep.subr.bf16.mxu0 %v2674_v0 }
 0xe81   :  { %2084 = vmatpush3.bf16.msra.mxu0 %v2952_v8 }
 0xe82   :  { %2097 = vmatprep.subr.bf16.mxu0 %v2674_v0 }
 0xf4f   :  { %v923_v56 = vpop.f32.mrb[12].mxu0 }
 0xf50   :  { %v924_v57 = vadd.f32 %v2985_v34, %v923_v56  ;;  %v2071_v58 = vpop.f32.mrb[13].mxu0 }
 0xf51   :  { %v926_v59 = vpop.f32.mrb[14].mxu0 }
 0xf52   :  { %937 = vrot.lane.b32.xlu1 %v924_v57, %s2664_s25  ;;  %v2072_v60 = vpop.f32.mrb[15].mxu0  ;;  %v929_v62 = vadd.f32 %v924_v57, %v883_v61  ;;  %v493_v59 = vrot.slane %v3000_v19, %v2955_v10 }
 0xf53   :  { %v681_v60 = vrot.slane %v3030_v2, %v2955_v10 }
 0xf54   :  { %v1909_v6 = vmul.f32 -1.442695, %v929_v62  ;;  %v869_v62 = vrot.slane %v3060_v54, %v2955_v10 }
 0xf56   :  { %2276 = vpow2.f32 %v1909_v6  ;;  %v876_v6 = vrot.slane %v869_v62, %v2955_v10 }
 0xf60   :  { %v2277_v63 = vpop.eup %2276 }
 0xf61   :  { %v933_v1 = vadd.f32 1.0, %v2277_v63 }
 0xf63   :  { %2278 = vrcp.f32 %v933_v1 }
 0xf6d   :  { %v2279_v3 = vpop.eup %2278 }
 0xf6e   :  { %v947_v12 = vsub.f32 1.0, %v2279_v3  ;;  %v953_v14 = vmul.f32 %v2279_v3, %v860_v53 }
 0xfc4   :  { %v938_v4 = vpop.permute.xlu1 %937 }
 0xfc5   :  { %v940_v8 = vmul.f32 %v2279_v3, %v938_v4 }
 0xfc7   :  { %942 = vrot.lane.b32.xlu0 %v940_v8, %s2664_s25  ;;  %v587_v8 = vrot.slane %v3015_v42, %v2955_v10 }
0x1039   :  { %v943_v5 = vpop.permute.xlu0 %942 }
0x103a   :  { %v945_v7 = vadd.f32 %v943_v5, %v883_v61  ;;  %v688_v61 = vrot.slane %v681_v60, %v2955_v10 }
0x103c   :  { %2280 = vtanh.f32 %v945_v7 }
0x1046   :  { %v2281_v9 = vpop.eup %2280 }
0x1047   :  { %949 = vrot.lane.b32.xlu1 %v2281_v9, %s2678_s11  ;;  %v594_v9 = vrot.slane %v587_v8, %v2955_v10 }
0x10b9   :  { %v950_v13 = vpop.permute.xlu1 %949 }
0x10ba   :  { %v952_v15 = vmul.f32 %v950_v13, %v947_v12  ;;  %v775_v12 = vrot.slane %v3045_v29, %v2955_v10  ;;  %v2225_v29 = vld [vmem:[#allocation18 + $0x8] sm:$0xff]  }
0x10bc   :  { %v954_v16 = vadd.f32 %v953_v14, %v952_v15  ;;  %v782_v13 = vrot.slane %v775_v12, %v2955_v10  ;;  %v2224_v15 = vld [vmem:[#allocation18] sm:$0xff]  }
0x10be   :  { %v3075_v17 = vpack.c.bf16 %v954_v16, %v954_v16 }
0x10c0   :  { %978 = vrot.lane.b32.xlu0 %v3075_v17, %s2678_s11  ;;  %v963_v42 = vrot.slane %v3075_v17, %v2955_v10 }
0x10c2   :  { %v970_v14 = vrot.slane %v963_v42, %v2955_v10 }
0x1132   :  { %v979_v18 = vpop.permute.xlu0 %978 }
0x1133   :  { %2078 = vmatmul.mubr.msk.bf16.vlgmr.msra.gmra.mrb[12].mxu1 %vm288_vm1, %v979_v18 }
0x1134   :  { %2093 = vmatprep.mubr.msk.bf16.mxu1 %vm2675_vm0, %v2674_v0  ;;  %2090 = vmatpush3.bf16.msra.mxu1 %v2224_v15 }
0x1135   :  { %2091 = vmatprep.subr.bf16.mxu1 %v2674_v0 }
0x1138   :  { %2092 = vmatpush3.bf16.msra.mxu1 %v2225_v29 }
0x1139   :  { %2117 = vmatprep.subr.bf16.mxu1 %v2674_v0 }
0x1206   :  { %v1017_v20 = vpop.f32.mrb[12].mxu1 }
0x1207   :  { %v1018_v11 = vadd.f32 %v2985_v34, %v1017_v20  ;;  %v2079_v21 = vpop.f32.mrb[13].mxu1 }
0x1208   :  { %v1020_v22 = vpop.f32.mrb[14].mxu1 }
0x1209   :  { %1031 = vrot.lane.b32.xlu1 %v1018_v11, %s2664_s25  ;;  %v2080_v23 = vpop.f32.mrb[15].mxu1  ;;  %v1023_v25 = vadd.f32 %v1018_v11, %v977_v24 }
0x120b   :  { %v1911_v26 = vmul.f32 -1.442695, %v1023_v25 }
0x120d   :  { %2282 = vpow2.f32 %v1911_v26 }
0x1217   :  { %v2283_v27 = vpop.eup %2282 }
0x1218   :  { %v1027_v28 = vadd.f32 1.0, %v2283_v27  ;;  %v3142_v27 = vld [vmem:[#allocation9] sm:$0xff]  }
0x121a   :  { %2284 = vrcp.f32 %v1027_v28  ;;  %v1396_v28 = vsel %vm288_vm1, %v3142_v27, 0 }
0x1224   :  { %v2285_v30 = vpop.eup %2284 }
0x1225   :  { %v1041_v37 = vsub.f32 1.0, %v2285_v30  ;;  %v1047_v39 = vmul.f32 %v2285_v30, %v954_v16 }
0x127b   :  { %v1032_v31 = vpop.permute.xlu1 %1031 }
0x127c   :  { %v1034_v32 = vmul.f32 %v2285_v30, %v1032_v31  ;;  %v3147_v30 = vld [vmem:[#allocation9 + $0x8] sm:$0xff]  }
0x127d   :  { %v1399_v31 = vsel %vm288_vm1, %v3147_v30, 0 }
0x127e   :  { %1036 = vrot.lane.b32.xlu0 %v1034_v32, %s2664_s25  ;;  %v3152_v32 = vld [vmem:[#allocation9 + $0x10] sm:$0xff]  }
0x12f0   :  { %v1037_v33 = vpop.permute.xlu0 %1036 }
0x12f1   :  { %v1039_v35 = vadd.f32 %v1037_v33, %v977_v24  ;;  %v1402_v33 = vsel %vm288_vm1, %v3152_v32, 0 }
0x12f3   :  { %2286 = vtanh.f32 %v1039_v35  ;;  %v3157_v35 = vld [vmem:[#allocation9 + $0x18] sm:$0xff]  }
0x12fd   :  { %v2287_v36 = vpop.eup %2286 }
0x12fe   :  { %1043 = vrot.lane.b32.xlu1 %v2287_v36, %s2678_s11  ;;  %v1405_v36 = vsel %vm288_vm1, %v3157_v35, 0 }
0x1370   :  { %v1044_v38 = vpop.permute.xlu1 %1043 }
0x1371   :  { %v1046_v40 = vmul.f32 %v1044_v38, %v1041_v37  ;;  %v3162_v37 = vld [vmem:[#allocation9 + $0x20] sm:$0xff]  }
0x1372   :  { %v1408_v38 = vsel %vm288_vm1, %v3162_v37, 0 }
0x1373   :  { %v3086_v41 = vadd.f32 %v1047_v39, %v1046_v40  ;;  %v3167_v39 = vld [vmem:[#allocation9 + $0x28] sm:$0xff]  }
0x1374   :  { %v1411_v40 = vsel %vm288_vm1, %v3167_v39, 0 }
0x1375   :  { %v1049_v43 = vpack.c.bf16 %v3086_v41, %v3086_v41 }
0x1377   :  { %1072 = vrot.lane.b32.xlu0 %v1049_v43, %s2678_s11  ;;  %v1057_v19 = vrot.slane %v1049_v43, %v2955_v10 }
0x1379   :  { %v1064_v63 = vrot.slane %v1057_v19, %v2955_v10 }
0x13e9   :  { %v1073_v44 = vpop.permute.xlu0 %1072 }
0x13ea   :  { %2086 = vmatmul.mubr.msk.bf16.vlgmr.msra.gmra.mrb[16].mxu0 %vm288_vm1, %v1073_v44  ;;  %v3177_v44 = vld [vmem:[#allocation9 + $0x38] sm:$0xff]  }
0x13eb   :  { %2113 = vmatprep.mubr.msk.bf16.mxu0 %vm2675_vm0, %v2674_v0  ;;  %2098 = vmatpush3.bf16.xpose.msra.mxu0 %v1396_v28  ;;  %v2235_v28 = vld [vmem:[#allocation9 + $0x60] sm:$0xff]  }
0x13ec   :  { %2099 = vmatprep.subr.bf16.mxu0 %v2674_v0 }
0x13f3   :  { %2100 = vmatpush3.bf16.xpose.msra.mxu0 %v1399_v31  ;;  %v1515_v31 = vsel %vm288_vm1, %v2235_v28, 0 }
0x13f4   :  { %2101 = vmatprep.subr.bf16.mxu0 %v2674_v0 }
0x13fb   :  { %2102 = vmatpush3.bf16.xpose.msra.mxu0 %v1402_v33  ;;  %v2237_v33 = vld [vmem:[#allocation9 + $0x68] sm:$0xff]  }
0x13fc   :  { %2103 = vmatprep.subr.bf16.mxu0 %v2674_v0 }
0x1403   :  { %2104 = vmatpush3.bf16.xpose.msra.mxu0 %v1405_v36  ;;  %v1518_v36 = vsel %vm288_vm1, %v2237_v33, 0 }
0x1404   :  { %2105 = vmatprep.subr.bf16.mxu0 %v2674_v0 }
0x140b   :  { %2106 = vmatpush3.bf16.xpose.msra.mxu0 %v1408_v38  ;;  %v2239_v38 = vld [vmem:[#allocation9 + $0x70] sm:$0xff]  }
0x140c   :  { %2107 = vmatprep.subr.bf16.mxu0 %v2674_v0 }
0x1413   :  { %2108 = vmatpush3.bf16.xpose.msra.mxu0 %v1411_v40  ;;  %v1521_v40 = vsel %vm288_vm1, %v2239_v38, 0 }
0x1414   :  { %2109 = vmatprep.subr.bf16.mxu0 %v2674_v0 }
0x14bd   :  { %v1111_v45 = vpop.f32.mrb[16].mxu0 }
0x14be   :  { %v1112_v46 = vadd.f32 %v2985_v34, %v1111_v45  ;;  %v2087_v47 = vpop.f32.mrb[17].mxu0  ;;  %v500_v34 = vrot.slane %v493_v59, %v2955_v10  ;;  %v1417_v45 = vsel %vm288_vm1, %v3177_v44, 0 }
0x14bf   :  { %v1114_v48 = vpop.f32.mrb[18].mxu0 }
0x14c0   :  { %1125 = vrot.lane.b32.xlu1 %v1112_v46, %s2664_s25  ;;  %v2088_v49 = vpop.f32.mrb[19].mxu0  ;;  %v1117_v51 = vadd.f32 %v1112_v46, %v1071_v50 }
0x14c2   :  { %v1913_v52 = vmul.f32 -1.442695, %v1117_v51 }
0x14c4   :  { %2288 = vpow2.f32 %v1913_v52 }
0x14ce   :  { %v2289_v53 = vpop.eup %2288 }
0x14cf   :  { %v1121_v55 = vadd.f32 1.0, %v2289_v53 }
0x14d1   :  { %2290 = vrcp.f32 %v1121_v55 }
0x14db   :  { %v2291_v56 = vpop.eup %2290 }
0x14dc   :  { %v1135_v16 = vsub.f32 1.0, %v2291_v56  ;;  %v1141_v20 = vmul.f32 %v2291_v56, %v3086_v41  ;;  %v3172_v41 = vld [vmem:[#allocation9 + $0x30] sm:$0xff]  }
0x14dd   :  { %v1414_v43 = vsel %vm288_vm1, %v3172_v41, 0 }
0x14de   :  { %2110 = vmatpush3.bf16.xpose.msra.mxu0 %v1414_v43  ;;  %v2241_v43 = vld [vmem:[#allocation9 + $0x78] sm:$0xff]  }
0x14df   :  { %2111 = vmatprep.subr.bf16.mxu0 %v2674_v0 }
0x14e6   :  { %2112 = vmatpush3.bf16.xpose.msra.mxu0 %v1417_v45  ;;  %v1524_v45 = vsel %vm288_vm1, %v2241_v43, 0 }
0x14e7   :  { %2137 = vmatprep.subr.bf16.mxu0 %v2674_v0 }
0x1532   :  { %v1126_v57 = vpop.permute.xlu1 %1125 }
0x1533   :  { %v1128_v58 = vmul.f32 %v2291_v56, %v1126_v57 }
0x1535   :  { %1130 = vrot.lane.b32.xlu0 %v1128_v58, %s2664_s25  ;;  %s2680_s25 = smov [#allocation25]  }
0x1536   :  { %s1857_s27 = sshll.u32 %s2680_s25, 4  ;;  %s1858_s27 = int_to_ptr.vmem [resolvable:$true] %s1857_s27 }
0x1537   :  { %s2574_s23 = scalar_lea.vmem %s1858_s27, 32  ;;  %p2579_p13 = scmp.lt.s32.totalorder %s1858_s27, %s1858_s27 }
0x1538   :  { %p2575_p12 = scmp.ne.s32.totalorder %s1858_s27, %s2574_s23  ;;  %p2580_p0 = scmp.lt.s32.totalorder %s2574_s23, %s2574_s23 }
0x1539   :  { %501 = vrot.lane.b32.xlu0 %v500_v34, %s2678_s11 }
0x153a   :  { %p2581_p1 = por %p2580_p0, %p2579_p13 }
0x153c   :  { %p2582_p2 = pnand %p2581_p1, %p2575_p12 }
0x153d   :  { %689 = vrot.lane.b32.xlu0 %v688_v61, %s2678_s11 }
0x1541   :  { %877 = vrot.lane.b32.xlu0 %v876_v6, %s2678_s11 }
0x1545   :  { %1065 = vrot.lane.b32.xlu0 %v1064_v63, %s2678_s11 }
0x15a7   :  { %v1131_v2 = vpop.permute.xlu0 %1130 }
0x15a8   :  { %v1133_v1 = vadd.f32 %v1131_v2, %v1071_v50 }
0x15aa   :  { %2292 = vtanh.f32 %v1133_v1 }
0x15ab   :  { %v502_v3 = vpop.permute.xlu0 %501 }
0x15ac   :  { %505 = vst.msk [vmem:[#allocation3] sm:$0x1] %vm504_vm3, %v502_v3 }
0x15af   :  { %v690_v54 = vpop.permute.xlu0 %689 }
0x15b0   :  { %693 = vst.msk [vmem:[#allocation3 + $0x2] sm:$0x1] %vm504_vm3, %v690_v54 }
0x15b3   :  { %v878_v4 = vpop.permute.xlu0 %877  ;;  %v1170_v50 = vld [vmem:[#allocation3] sm:$0x1] }
0x15b4   :  { %v2293_v5 = vpop.eup %2292  ;;  %881 = vst.msk [vmem:[#allocation3 + $0x4] sm:$0x1] %vm504_vm3, %v878_v4  ;;  %v1181_v59 = vshrl.u32 %v1170_v50, 16 }
0x15b5   :  { %1137 = vrot.lane.b32.xlu1 %v2293_v5, %s2678_s11 }
0x15b7   :  { %v1066_v7 = vpop.permute.xlu0 %1065  ;;  %v1172_v49 = vld [vmem:[#allocation3 + $0x2] sm:$0x1] }
0x15b8   :  { %1069 = vst.msk [vmem:[#allocation3 + $0x6] sm:$0x1] %vm504_vm3, %v1066_v7  ;;  %v1187_v58 = vshrl.u32 %v1172_v49, 16 }
0x15b9   :  { %595 = vrot.lane.b32.xlu1 %v594_v9, %s2678_s11 }
0x15bb   :  { %v1174_v55 = vld [vmem:[#allocation3 + $0x4] sm:$0x1] }
0x15bc   :  { %v1193_v19 = vshrl.u32 %v1174_v55, 16 }
0x15bd   :  { %783 = vrot.lane.b32.xlu1 %v782_v13, %s2678_s11 }
0x15bf   :  { %v1176_v56 = vld [vmem:[#allocation3 + $0x6] sm:$0x1] }
0x15c0   :  { %v1199_v63 = vshrl.u32 %v1176_v56, 16 }
0x15c1   :  { %971 = vrot.lane.b32.xlu1 %v970_v14, %s2678_s11 }
0x1627   :  { %v1138_v18 = vpop.permute.xlu1 %1137 }
0x1628   :  { %v1140_v11 = vmul.f32 %v1138_v18, %v1135_v16  ;;  %v2227_v18 = vld [vmem:[#allocation9 + $0x40] sm:$0xff]  }
0x162a   :  { %v3131_v21 = vadd.f32 %v1141_v20, %v1140_v11 }
0x162b   :  { %v596_v22 = vpop.permute.xlu1 %595 }
0x162c   :  { %v1143_v17 = vpack.c.bf16 %v3131_v21, %v3131_v21  ;;  %599 = vst.msk [vmem:[#allocation3 + $0x1] sm:$0x1] %vm504_vm3, %v596_v22  ;;  %v1503_v22 = vsel %vm288_vm1, %v2227_v18, 0 }
0x162e   :  { %v1151_v23 = vrot.slane %v1143_v17, %v2955_v10  ;;  %v2229_v17 = vld [vmem:[#allocation9 + $0x48] sm:$0xff]  }
0x162f   :  { %v784_v24 = vpop.permute.xlu1 %783 }
0x1630   :  { %787 = vst.msk [vmem:[#allocation3 + $0x3] sm:$0x1] %vm504_vm3, %v784_v24  ;;  %v1158_v25 = vrot.slane %v1151_v23, %v2955_v10  ;;  %v1506_v23 = vsel %vm288_vm1, %v2229_v17, 0 }
0x1632   :  { %1159 = vrot.lane.b32.xlu1 %v1158_v25, %s2678_s11  ;;  %v2233_v25 = vld [vmem:[#allocation9 + $0x58] sm:$0xff]  }
0x1633   :  { %v972_v26 = vpop.permute.xlu1 %971  ;;  %v1171_v48 = vld [vmem:[#allocation3 + $0x1] sm:$0x1] }
0x1634   :  { %975 = vst.msk [vmem:[#allocation3 + $0x5] sm:$0x1] %vm504_vm3, %v972_v26  ;;  %v1182_v53 = vshrl.u32 %v1171_v48, 16  ;;  %v1180_v34 = vpack.i.b16 %v1171_v48, %v1170_v50  ;;  %v1512_v26 = vsel %vm288_vm1, %v2233_v25, 0 }
0x1636   :  { %v1183_v6 = vpack.i.b16 %v1182_v53, %v1181_v59 }
0x1637   :  { %v1173_v47 = vld [vmem:[#allocation3 + $0x3] sm:$0x1] }
0x1638   :  { %v1188_v51 = vshrl.u32 %v1173_v47, 16  ;;  %v1186_v57 = vpack.i.b16 %v1173_v47, %v1172_v49 }
0x163a   :  { %v1189_v60 = vpack.i.b16 %v1188_v51, %v1187_v58  ;;  %v1238_v54 = vcombine.low %v1180_v34, %v1186_v57 }
0x163b   :  { %v1175_v52 = vld [vmem:[#allocation3 + $0x5] sm:$0x1] }
0x163c   :  { %v1194_v61 = vshrl.u32 %v1175_v52, 16  ;;  %v1192_v2 = vpack.i.b16 %v1175_v52, %v1174_v55  ;;  %v1240_v7 = vcombine.low %v1183_v6, %v1189_v60  ;;  %v1248_v12 = vrot.slane %v1238_v54, %v2955_v10 }
0x163e   :  { %v1195_v4 = vpack.i.b16 %v1194_v61, %v1193_v19  ;;  %v1262_v42 = vrot.slane %v1240_v7, %v2955_v10  ;;  %v2243_v7 = vld [vmem:[#allocation19 + $0x8] sm:$0xff]  }
0x16a4   :  { %v1160_v46 = vpop.permute.xlu1 %1159 }
0x16a5   :  { %1163 = vst.msk [vmem:[#allocation3 + $0x7] sm:$0x1] %vm504_vm3, %v1160_v46 }
0x16ac   :  { %v1177_v62 = vld [vmem:[#allocation3 + $0x7] sm:$0x1] }
0x16ad   :  { %v1198_v1 = vpack.i.b16 %v1177_v62, %v1176_v56  ;;  %v1200_v3 = vshrl.u32 %v1177_v62, 16 }
0x16af   :  { %v1201_v8 = vpack.i.b16 %v1200_v3, %v1199_v63  ;;  %v1239_v5 = vcombine.low %v1192_v2, %v1198_v1  ;;  %v2244_v1 = vld [vmem:[#allocation21] sm:$0xff]  }
0x16b1   :  { %v1241_v9 = vcombine.low %v1195_v4, %v1201_v8  ;;  %v1255_v13 = vrot.slane %v1239_v5, %v2955_v10  ;;  %v2242_v8 = vld [vmem:[#allocation19] sm:$0xff]  }
0x16b3   :  { %v1269_v14 = vrot.slane %v1241_v9, %v2955_v10  ;;  %v1270_v15 = vcombine.low %v1248_v12, %v1255_v13  ;;  %v2245_v9 = vld [vmem:[#allocation21 + $0x8] sm:$0xff]  }
0x16b5   :  { %v1271_v16 = vcombine.low %v1262_v42, %v1269_v14  ;;  %v1278_v29 = vrot.slane %v1270_v15, %v2955_v10 }
0x16b7   :  { %v1285_v20 = vrot.slane %v1271_v16, %v2955_v10  ;;  %v2231_v10 = vld [vmem:[#allocation9 + $0x50] sm:$0xff]  }
0x16b8   :  { %v1509_v24 = vsel %vm288_vm1, %v2231_v10, 0 }
0x16b9   :  { %v3189_v11 = vcombine.low %v1278_v29, %v1285_v20 }
0x16bb   :  { %2094 = vmatmul.mubr.msk.bf16.vlgmr.msra.gmra.mrb[16].mxu1 %vm288_vm1, %v3189_v11 }
0x16bc   :  { %2118 = vmatpush3.bf16.xpose.msra.mxu1 %v1503_v22  ;;  %2133 = vmatprep.mubr.msk.bf16.mxu1 %vm2675_vm0, %v2674_v0 }
0x16bd   :  { %2119 = vmatprep.subr.bf16.mxu1 %v2674_v0 }
0x16c4   :  { %2120 = vmatpush3.bf16.xpose.msra.mxu1 %v1506_v23 }
0x16c5   :  { %2121 = vmatprep.subr.bf16.mxu1 %v2674_v0 }
0x16cc   :  { %2122 = vmatpush3.bf16.xpose.msra.mxu1 %v1509_v24  ;;  %v1943_v24 = vld [vmem:[#allocation22] ss:$0 sm:$0xff] }
0x16cd   :  { %2123 = vmatprep.subr.bf16.mxu1 %v2674_v0 }
0x16d4   :  { %2124 = vmatpush3.bf16.xpose.msra.mxu1 %v1512_v26 }
0x16d5   :  { %2125 = vmatprep.subr.bf16.mxu1 %v2674_v0 }
0x16dc   :  { %2126 = vmatpush3.bf16.xpose.msra.mxu1 %v1515_v31 }
0x16dd   :  { %2127 = vmatprep.subr.bf16.mxu1 %v2674_v0 }
0x16e4   :  { %2128 = vmatpush3.bf16.xpose.msra.mxu1 %v1518_v36 }
0x16e5   :  { %2129 = vmatprep.subr.bf16.mxu1 %v2674_v0 }
0x16ec   :  { %2130 = vmatpush3.bf16.xpose.msra.mxu1 %v1521_v40 }
0x16ed   :  { %2131 = vmatprep.subr.bf16.mxu1 %v2674_v0 }
0x16f4   :  { %2132 = vmatpush3.bf16.xpose.msra.mxu1 %v1524_v45 }
0x16f5   :  { %2157 = vmatprep.subr.bf16.mxu1 %v2674_v0 }
0x178e   :  { %v1336_v46 = vpop.f32.mrb[16].mxu1 }
0x178f   :  { %v1343_v47 = vpack.c.bf16 %v1336_v46, %v1336_v46  ;;  %v2095_v48 = vpop.f32.mrb[17].mxu1 }
0x1790   :  { %v1339_v49 = vpop.f32.mrb[18].mxu1 }
0x1791   :  { %v1344_v50 = vpack.c.bf16 %v1339_v49, %v1339_v49  ;;  %v2096_v51 = vpop.f32.mrb[19].mxu1  ;;  %2114 = vmatmul.mubr.msk.bf16.vlgmr.msra.gmra.mrb[20].mxu0 %vm288_vm1, %v1343_v47 }
0x1792   :  { %2138 = vmatpush3.bf16.msra.mxu0 %v3142_v27  ;;  %2153 = vmatprep.mubr.msk.bf16.mxu0 %vm2675_vm0, %v2674_v0  ;;  %v1917_v27 = vld [vmem:[#allocation10] ss:$0 sm:$0xff] }
0x1793   :  { %2134 = vmatmul.mubr.msk.bf16.vlgmr.msra.gmra.mrb[20].mxu1 %vm288_vm1, %v1344_v50  ;;  %2139 = vmatprep.subr.bf16.mxu0 %v2674_v0 }
0x1794   :  { %2158 = vmatpush3.bf16.msra.mxu1 %v2227_v18  ;;  %2173 = vmatprep.mubr.msk.bf16.mxu1 %vm2675_vm0, %v2674_v0 }
0x1795   :  { %2159 = vmatprep.subr.bf16.mxu1 %v2674_v0 }
0x1796   :  { %2140 = vmatpush3.bf16.msra.mxu0 %v3147_v30 }
0x1797   :  { %2141 = vmatprep.subr.bf16.mxu0 %v2674_v0 }
0x1798   :  { %2160 = vmatpush3.bf16.msra.mxu1 %v2229_v17 }
0x1799   :  { %2161 = vmatprep.subr.bf16.mxu1 %v2674_v0 }
0x179a   :  { %2142 = vmatpush3.bf16.msra.mxu0 %v3152_v32 }
0x179b   :  { %2143 = vmatprep.subr.bf16.mxu0 %v2674_v0 }
0x179c   :  { %2162 = vmatpush3.bf16.msra.mxu1 %v2231_v10 }
0x179d   :  { %2163 = vmatprep.subr.bf16.mxu1 %v2674_v0 }
0x179e   :  { %2144 = vmatpush3.bf16.msra.mxu0 %v3157_v35 }
0x179f   :  { %2145 = vmatprep.subr.bf16.mxu0 %v2674_v0 }
0x17a0   :  { %2164 = vmatpush3.bf16.msra.mxu1 %v2233_v25 }
0x17a1   :  { %2165 = vmatprep.subr.bf16.mxu1 %v2674_v0 }
0x17a2   :  { %2146 = vmatpush3.bf16.msra.mxu0 %v3162_v37 }
0x17a3   :  { %2147 = vmatprep.subr.bf16.mxu0 %v2674_v0 }
0x17a4   :  { %2166 = vmatpush3.bf16.msra.mxu1 %v2235_v28 }
0x17a5   :  { %2167 = vmatprep.subr.bf16.mxu1 %v2674_v0 }
0x17a6   :  { %2148 = vmatpush3.bf16.msra.mxu0 %v3167_v39 }
0x17a7   :  { %2149 = vmatprep.subr.bf16.mxu0 %v2674_v0 }
0x17a8   :  { %2168 = vmatpush3.bf16.msra.mxu1 %v2237_v33 }
0x17a9   :  { %2169 = vmatprep.subr.bf16.mxu1 %v2674_v0 }
0x17aa   :  { %2150 = vmatpush3.bf16.msra.mxu0 %v3172_v41 }
0x17ab   :  { %2151 = vmatprep.subr.bf16.mxu0 %v2674_v0 }
0x17ac   :  { %2170 = vmatpush3.bf16.msra.mxu1 %v2239_v38 }
0x17ad   :  { %2171 = vmatprep.subr.bf16.mxu1 %v2674_v0 }
0x17ae   :  { %2152 = vmatpush3.bf16.msra.mxu0 %v3177_v44 }
0x17af   :  { %2177 = vmatprep.subr.bf16.mxu0 %v2674_v0 }
0x17b0   :  { %2172 = vmatpush3.bf16.msra.mxu1 %v2241_v43 }
0x17b1   :  { %2185 = vmatprep.subr.bf16.mxu1 %v2674_v0 }
0x1864   :  { %v1453_v30 = vpop.f32.mrb[20].mxu0 }
0x1865   :  { %v1454_v32 = vadd.f32 %v1917_v27, %v1453_v30  ;;  %v2115_v35 = vpop.f32.mrb[21].mxu0 }
0x1866   :  { %v1456_v37 = vpop.f32.mrb[22].mxu0  ;;  %v1560_v39 = vpop.f32.mrb[20].mxu1 }
0x1867   :  { %v1561_v52 = vadd.f32 %v1917_v27, %v1560_v39  ;;  %v2135_v41 = vpop.f32.mrb[21].mxu1  ;;  %1566 = vmax.xlane.f32.xlu0 %v1454_v32  ;;  %v2116_v53 = vpop.f32.mrb[23].mxu0 }
0x1868   :  { %v1563_v55 = vpop.f32.mrb[22].mxu1 }
0x1869   :  { %1568 = vmax.xlane.f32.xlu1 %v1561_v52  ;;  %v2136_v56 = vpop.f32.mrb[23].mxu1 }
0x18f4   :  { %v1567_v57 = vpop.xlane.xlu0 %1566 }
0x18f5   :  { %v1570_v44 = vsub.f32 %v1454_v32, %v1567_v57 }
0x18f6   :  { %v1569_v58 = vpop.xlane.xlu1 %1568 }
0x18f7   :  { %v1572_v59 = vmul.f32 1.442695, %v1570_v44  ;;  %v1571_v34 = vsub.f32 %v1561_v52, %v1569_v58 }
0x18f9   :  { %2294 = vpow2.f32 %v1572_v59  ;;  %v1574_v60 = vmul.f32 1.442695, %v1571_v34 }
0x18fb   :  { %2296 = vpow2.f32 %v1574_v60 }
0x1903   :  { %v2295_v61 = vpop.eup %2294 }
0x1904   :  { %1576 = vadd.xlane.f32.xlu0 %v2295_v61 }
0x1905   :  { %v2297_v62 = vpop.eup %2296 }
0x1908   :  { %1578 = vadd.xlane.f32.xlu0 %v2297_v62 }
0x1991   :  { %v1577_v6 = vpop.xlane.xlu0 %1576 }
0x1992   :  { %2298 = vrcp.f32 %v1577_v6 }
0x1995   :  { %v1579_v19 = vpop.xlane.xlu0 %1578 }
0x1996   :  { %2300 = vrcp.f32 %v1579_v19 }
0x199c   :  { %v2299_v63 = vpop.eup %2298 }
0x199d   :  { %v1582_v2 = vmul.f32 %v2299_v63, %v2295_v61 }
0x199f   :  { %v1584_v3 = vpack.c.bf16 %v1582_v2, %v1582_v2  ;;  %1837 = vst [vmem:[#allocation27] sm:$0xff] %v1582_v2 }
0x19a0   :  { %v2301_v54 = vpop.eup %2300 }
0x19a1   :  { %2154 = vmatmul.mubr.bf16.vlgmr.msra.gmra.mrb[24].mxu0 %v1584_v3  ;;  %v1583_v4 = vmul.f32 %v2301_v54, %v2297_v62 }
0x19a2   :  { %2178 = vmatpush3.bf16.msra.mxu0 %v2244_v1  ;;  %2181 = vmatprep.mubr.msk.bf16.mxu0 %vm2675_vm0, %v2674_v0 }
0x19a3   :  { %v1585_v5 = vpack.c.bf16 %v1583_v4, %v1583_v4  ;;  %1838 = vst [vmem:[#allocation27 + $0x8] sm:$0xff] %v1583_v4  ;;  %2179 = vmatprep.subr.bf16.mxu0 %v2674_v0 }
0x19a5   :  { %2174 = vmatmul.mubr.bf16.vlgmr.msra.gmra.mrb[24].mxu1 %v1585_v5 }
0x19a6   :  { %2186 = vmatpush3.bf16.msra.mxu1 %v2242_v8  ;;  %2189 = vmatprep.mubr.msk.bf16.mxu1 %vm2675_vm0, %v2674_v0 }
0x19a7   :  { %2187 = vmatprep.subr.bf16.mxu1 %v2674_v0  ;;  %2180 = vmatpush3.bf16.msra.mxu0 %v2245_v9 }
0x19aa   :  { %2188 = vmatpush3.bf16.msra.mxu1 %v2243_v7 }
0x19ad   :  { %2190 = vmatmul.mubr.msk.bf16.vlgmr.msra.gmra.mrb[28].mxu1 %vm288_vm1, %v3189_v11 }
0x1a74   :  { %v1628_v12 = vpop.f32.mrb[24].mxu0 }
0x1a75   :  { %v2155_v13 = vpop.f32.mrb[25].mxu0 }
0x1a76   :  { %v1631_v42 = vpop.f32.mrb[26].mxu0 }
0x1a77   :  { %v2156_v14 = vpop.f32.mrb[27].mxu0 }
0x1a78   :  { %v1676_v15 = vpop.f32.mrb[24].mxu1 }
0x1a79   :  { %v1944_v16 = vpack.c.bf16 %v1676_v15, %v1628_v12  ;;  %v2175_v18 = vpop.f32.mrb[25].mxu1 }
0x1a7a   :  { %v1679_v29 = vpop.f32.mrb[26].mxu1 }
0x1a7b   :  { %v2176_v20 = vpop.f32.mrb[27].mxu1  ;;  %2182 = vmatmul.mubr.msk.bf16.vlgmr.msra.gmra.mrb[28].mxu0 %vm288_vm1, %v1944_v16 }
0x1a80   :  { %v1799_v22 = vpop.f32.mrb[28].mxu1 }
0x1a81   :  { %v2191_v17 = vpop.f32.mrb[29].mxu1 }
0x1a82   :  { %v1802_v0 = vpop.f32.mrb[30].mxu1 }
0x1a83   :  { %v2192_v23 = vpop.f32.mrb[31].mxu1 }
0x1b4e   :  { %v1746_v10 = vpop.f32.mrb[28].mxu0 }
0x1b4f   :  { %v1800_v11 = vadd.f32 %v1799_v22, %v1746_v10  ;;  %v2183_v25 = vpop.f32.mrb[29].mxu0 }
0x1b50   :  { %v1749_v26 = vpop.f32.mrb[30].mxu0 }
0x1b51   :  { %v1803_v28 = vadd.f32 %v1802_v0, %v1749_v26  ;;  %v2184_v31 = vpop.f32.mrb[31].mxu0  ;;  %v1813_v33 = vadd.f32 %v1943_v24, %v1800_v11 }
0x1b53   :  { %1815 = vmax.xlane.f32.xlu1 %v1813_v33  ;;  %v1814_v36 = vadd.f32 %v1943_v24, %v1803_v28 }
0x1b55   :  { %1817 = vmax.xlane.f32.xlu0 %v1814_v36 }
0x1be0   :  { %v1816_v38 = vpop.xlane.xlu1 %1815 }
0x1be1   :  { %v1819_v40 = vsub.f32 %v1813_v33, %v1816_v38 }
0x1be2   :  { %v1818_v43 = vpop.xlane.xlu0 %1817 }
0x1be3   :  { %v1821_v45 = vmul.f32 1.442695, %v1819_v40  ;;  %v1820_v46 = vsub.f32 %v1814_v36, %v1818_v43 }
0x1be5   :  { %2302 = vpow2.f32 %v1821_v45  ;;  %v1823_v47 = vmul.f32 1.442695, %v1820_v46 }
0x1be7   :  { %2304 = vpow2.f32 %v1823_v47 }
0x1bef   :  { %v2303_v48 = vpop.eup %2302 }
0x1bf0   :  { %1825 = vadd.xlane.f32.xlu1 %v2303_v48 }
0x1bf1   :  { %v2305_v49 = vpop.eup %2304 }
0x1bf2   :  { %1827 = vadd.xlane.f32.xlu0 %v2305_v49 }
0x1c01   :  { %1165 = vrot.lane.b32.xlu1 %v3131_v21, %s2678_s11 }
0x1c7d   :  { %v1826_v50 = vpop.xlane.xlu1 %1825 }
0x1c7e   :  { %2306 = vlog2.f32 %v1826_v50 }
0x1c7f   :  { %v1828_v51 = vpop.xlane.xlu0 %1827 }
0x1c80   :  { %2308 = vlog2.f32 %v1828_v51 }
0x1c81   :  { %v1166_v27 = vpop.permute.xlu1 %1165 }
0x1c82   :  { %1169 = vst.msk [vmem:[#allocation25] sm:$0x3] %vm1168_vm4, %v1166_v27 }
0x1c83   :  { %2585 = shalt.err (!%p2582_p2)
}
0x1c84   :  { %s2586_s3 = scalar_lea.hbm %s3308_s13, 32 }
0x1c85   :  { %p2587_p3 = scmp.ne.s32.totalorder %s3308_s13, %s2586_s3  ;;  %p2590_p4 = scmp.lt.u32.totalorder %s2586_s3, %s3308_s13 }
0x1c87   :  { %p2592_p5 = pnand %p2590_p4, %p2587_p3 }
0x1c89   :  { %2595 = shalt.err (!%p2592_p5)
}
0x1c8a   :  { %1860 = dma.vmem_to_hbm [thread:$0]  %s1858_s27, 32, %s3308_s13, [#allocation26]  }
0x1c8b   :  { %s2596_s19 = scalar_lea.vmem %s3252_s5, 256  ;;  %p2601_p7 = scmp.lt.s32.totalorder %s3252_s5, %s3252_s5 }
0x1c8c   :  { %p2597_p6 = scmp.ne.s32.totalorder %s3252_s5, %s2596_s19  ;;  %p2602_p8 = scmp.lt.s32.totalorder %s2596_s19, %s2596_s19 }
0x1c8e   :  { %p2603_p9 = por %p2602_p8, %p2601_p7 }
0x1c90   :  { %p2604_p10 = pnand %p2603_p9, %p2597_p6 }
0x1c92   :  { %2607 = shalt.err (!%p2604_p10)
}
0x1c93   :  { %s2608_s20 = scalar_lea.hbm %s3309_s14, 256 }
0x1c94   :  { %p2609_p11 = scmp.ne.s32.totalorder %s3309_s14, %s2608_s20  ;;  %p2612_p12 = scmp.lt.u32.totalorder %s2608_s20, %s3309_s14 }
0x1c96   :  { %p2614_p13 = pnand %p2612_p12, %p2609_p11 }
0x1c98   :  { %2617 = shalt.err (!%p2614_p13)
}
0x1c99   :  { %s2682_s13 = smov 128   ;;  %s2683_s30 = smov 8   ;;  %v2307_v21 = vpop.eup %2306 }
0x1c9a   :  { %1872 = dma.vmem_to_hbm [thread:$0]  %s3252_s5, 256, %s3309_s14, [#allocation26], %s2682_s13, %s2682_s13, %s2683_s30   ;;  %v1830_v30 = vmul.f32 0.6931472, %v2307_v21  ;;  %v2309_v32 = vpop.eup %2308 }
0x1c9b   :  { %s2684_s24 = smov [#allocation24]   ;;  %v1832_v37 = vmul.f32 0.6931472, %v2309_v32 }
0x1c9c   :  { %s1844_s11 = sshll.u32 %s2684_s24, 4  ;;  %v1833_v35 = vsub.f32 %v1819_v40, %v1830_v30  ;;  %s1845_s11 = int_to_ptr.vmem [resolvable:$true] %s1844_s11 }
0x1c9d   :  { %v1834_v39 = vsub.f32 %v1820_v46, %v1832_v37  ;;  %s2618_s26 = scalar_lea.vmem %s1845_s11, 256  ;;  %p2623_p1 = scmp.lt.s32.totalorder %s1845_s11, %s1845_s11 }
0x1c9e   :  { %1835 = vst [vmem:[#allocation24] sm:$0xff] %v1833_v35  ;;  %p2619_p0 = scmp.ne.s32.totalorder %s1845_s11, %s2618_s26  ;;  %p2624_p2 = scmp.lt.s32.totalorder %s2618_s26, %s2618_s26 }
0x1c9f   :  { %1836 = vst [vmem:[#allocation24 + $0x8] sm:$0xff] %v1834_v39 }
0x1ca0   :  { %p2625_p3 = por %p2624_p2, %p2623_p1 }
0x1ca2   :  { %p2626_p4 = pnand %p2625_p3, %p2619_p0 }
0x1ca4   :  { %2629 = shalt.err (!%p2626_p4)
}
0x1ca5   :  { %s2630_s27 = scalar_lea.hbm %s3307_s12, 256 }
0x1ca6   :  { %p2631_p5 = scmp.ne.s32.totalorder %s3307_s12, %s2630_s27  ;;  %p2634_p6 = scmp.lt.u32.totalorder %s2630_s27, %s3307_s12 }
0x1ca8   :  { %p2636_p7 = pnand %p2634_p6, %p2631_p5 }
0x1caa   :  { %2639 = shalt.err (!%p2636_p7)
}
0x1cab   :  { %1850 = dma.vmem_to_hbm [thread:$0]  %s1845_s11, 256, %s3307_s12, [#allocation6], %s2682_s13, %s2682_s13, %s2683_s30  }
0x1cac   :  { %2654 = dma.done.wait [#allocation6], 256  }
0x1cad   :  { %2655 = vsyncadd [#allocation6], 4294967040 }
0x1cae   :  { %2656 = dma.done.wait [#allocation26], 288  }
0x1caf   :  { %2657 = vsyncadd [#allocation26], 4294967008 }
0x1cb0   :  { %1882 = vsyncpa [#allocation5], 1 }
0x1cb1   :  { %1883 = vsyncpa [#allocation8], 1 }
0x1cb2   :  { %1884 = vsyncpa [#allocation11], 1 }
0x1cb3   :  { %1885 = vsyncpa [#allocation14], 1 }
0x1cb4   :  { %1886 = vsyncpa [#allocation17], 1 }
0x1cb5   :  { %1887 = vsyncpa [#allocation20], 1 }
0x1cb6   :  { %1888 = vsyncpa [#allocation23], 1 }
0x1cb7   :  { %1889 = vsyncpa [#allocation6], 1 }
0x1cb8   :  { %1890 = vsyncpa [#allocation26], 1 }

</bundles_post_ra>
